<compile_context>
chip_gen: v6e
topology: v6e:2x2x1
jax: 0.10.0
libtpu: 0.0.40
codegen_flags: <defaults>
</compile_context>

<pallas_src>
import functools

import jax
import jax.numpy as jnp
import numpy as np
from jax.experimental import pallas as pl
from jax.experimental.pallas import tpu as pltpu


# ----------------------------- in-kernel building blocks ---------------------

def _lstm_cell(g, c, H):
    # g: [n, 4H] pre-activation gates, PyTorch gate order (i, f, g, o).
    i = jax.nn.sigmoid(g[:, 0 * H:1 * H])
    f = jax.nn.sigmoid(g[:, 1 * H:2 * H])
    gg = jnp.tanh(g[:, 2 * H:3 * H])
    o = jax.nn.sigmoid(g[:, 3 * H:4 * H])
    c_new = f * c + i * gg
    return o * jnp.tanh(c_new), c_new


def _bilstm(x, S, nb, wih, b8, whh_cat, wfc, bfc, H):
    """Bidirectional single-layer LSTM + fc head, all in VMEM/vregs.

    x       : [S*nb, D] f32, rows seq-major / batch-minor.
    wih     : [D, 8H] bf16, fwd gates in lanes [0,4H), bwd gates in [4H,8H).
    b8      : [1, 8H] f32.
    whh_cat : [H, 8H] f32 = concat(whh_f, whh_b) along lanes.
    Returns fc(concat(h_fwd_final, h_bwd_final)) : [nb, out_dim].
    """
    H4 = 4 * H
    # Input projection hoisted out of the recurrence: one lane-dense matmul.
    gates_in = jnp.dot(x.astype(jnp.bfloat16), wih,
                       preferred_element_type=jnp.float32) + b8      # [S*nb, 8H]
    # fwd state in rows [0, nb), bwd state in rows [nb, 2nb): a single
    # recurrent matmul per step feeds BOTH directions.
    h = jnp.zeros((2 * nb, H), jnp.float32)
    c = jnp.zeros((2 * nb, H), jnp.float32)
    for s in range(S):                         # unrolled: S is small & static
        sb = S - 1 - s
        g_rec = jnp.dot(h, whh_cat, preferred_element_type=jnp.float32)  # [2nb, 8H]
        g = jnp.concatenate(
            [gates_in[s * nb:(s + 1) * nb, 0:H4] + g_rec[0:nb, 0:H4],
             gates_in[sb * nb:(sb + 1) * nb, H4:2 * H4] + g_rec[nb:2 * nb, H4:2 * H4]],
            axis=0)                                                   # [2nb, 4H]
        h, c = _lstm_cell(g, c, H)
    hcat = jnp.concatenate([h[0:nb], h[nb:2 * nb]], axis=-1)          # [nb, 2H]
    return jnp.dot(hcat, wfc, preferred_element_type=jnp.float32) + bfc


def _fused_kernel(x_ref, wbig_ref, wpf_ref, wih_ref, wsm_ref, bias_ref, o_ref,
                  *, B, P, T, F, Hp, Hg, nc_pad):
    TB = T * B
    # ---- person CNN: 3x3 same-conv as ONE matmul over all output pixels
    #      (zero padding folded into the weight) -> ReLU -> global avg pool
    #      fused with the feature fc (second matmul) ----
    x = x_ref[...].astype(jnp.bfloat16)                        # [P*T*B, C*Hc*Wc]
    conv = jnp.dot(x, wbig_ref[...], preferred_element_type=jnp.float32)
    conv = jnp.maximum(conv + bias_ref[0:1, :], 0.0)           # [PTB, HW*C1]
    feats = (jnp.dot(conv.astype(jnp.bfloat16), wpf_ref[...],
                     preferred_element_type=jnp.float32)
             + bias_ref[1:2, 0:F])                             # [PTB, F]

    # static row offsets into the packed f32 weight slab
    r = 0
    p_whh = wsm_ref[r:r + Hp, :]; r += Hp                      # [Hp, 8Hp]
    g_whh = wsm_ref[r:r + Hg, :]; r += Hg                      # [Hg, 8Hg]
    p_wfc = wsm_ref[r:r + 2 * Hp, 0:F]; r += 2 * Hp            # [2Hp, F]
    g_wfc = wsm_ref[r:r + 2 * Hg, 0:Hg]; r += 2 * Hg           # [2Hg, Hg]
    cw = wsm_ref[r:r + Hg, 0:nc_pad]                           # [Hg, nc_pad]

    # ---- max over persons per (frame, sample); rows ordered (p, t, b) ----
    cnn_pooled = feats[0:TB, :]
    for p in range(1, P):
        cnn_pooled = jnp.maximum(cnn_pooled, feats[p * TB:(p + 1) * TB, :])  # [TB, F]

    # ---- person bi-LSTM: sequence over persons, batch over B*T frames ----
    plstm_out = _bilstm(feats, P, TB,
                        wih_ref[0:F, :], bias_ref[2:3, 0:8 * Hp],
                        p_whh, p_wfc, bias_ref[4:5, 0:F], Hp)   # [TB, F]

    # ---- frame feature = cat(max-pooled CNN feats, person-LSTM feats) ----
    group_input = jnp.concatenate([cnn_pooled, plstm_out], axis=-1)  # [TB, 2F]

    # ---- group bi-LSTM over time (batch = B samples) + classifier ----
    group_out = _bilstm(group_input, T, B,
                        wih_ref[F:3 * F, :], bias_ref[3:4, 0:8 * Hg],
                        g_whh, g_wfc, bias_ref[5:6, 0:Hg], Hg)   # [B, Hg]
    logits = (jnp.dot(group_out, cw, preferred_element_type=jnp.float32)
              + bias_ref[6:7, 0:nc_pad])                         # [B, nc_pad]
    o_ref[...] = logits


# ----------------------------- glue (plain JAX) ------------------------------

def _conv_gather_tables(C, H, W):
    """Static tables turning the 3x3 same-conv into a single matmul:
    W_big[q, s, :] = wc[kmap[q, s], :] * mask[q, s] with
      q = c*H*W + ii*W + jj   (flat input index),
      s = i*W + j             (flat output pixel),
      k = c*9 + di*3 + dj     (Conv2d weight [C1,C,3,3].reshape(C1,-1) order).
    Out-of-range taps (zero padding) get mask 0."""
    HW = H * W
    kmap = np.zeros((C * HW, HW), np.int32)
    mask = np.zeros((C * HW, HW), np.float32)
    for i in range(H):
        for j in range(W):
            s = i * W + j
            for di in range(3):
                for dj in range(3):
                    ii, jj = i + di - 1, j + dj - 1
                    if 0 <= ii < H and 0 <= jj < W:
                        for c in range(C):
                            q = c * HW + ii * W + jj
                            kmap[q, s] = c * 9 + di * 3 + dj
                            mask[q, s] = 1.0
    return kmap, mask


def _pack_weights(params, C, Hc, Wc):
    """Pack the 18 small weights/biases into 5 slabs (fewer refs => fewer
    per-call DMAs); big matmul operands are pre-cast to bf16."""
    bb, plm, gl, cls = (params["backbone"], params["person_lstm"],
                        params["group_lstm"], params["classifier"])
    C1 = bb["wc"].shape[1]
    F = bb["wf"].shape[1]
    Hp = plm["whh_f"].shape[0]
    Hg = gl["whh_f"].shape[0]
    assert Hp == Hg, "weight packing assumes equal person/group hidden dims"
    HW = Hc * Wc
    lanes = 8 * Hp                      # common lane width of the small slabs

    # 3x3 conv (+ zero pad) as a single [C*Hc*Wc, HW*C1] matmul weight.
    kmap, mask = _conv_gather_tables(C, Hc, Wc)
    w_big = (bb["wc"][kmap] * mask[:, :, None]).reshape(C * HW, HW * C1)
    w_big = w_big.astype(jnp.bfloat16)
    # Global average pool (1/HW) fused with the feature fc.
    w_pf = jnp.tile(bb["wf"] * (1.0 / HW), (HW, 1)).astype(jnp.bfloat16)  # [HW*C1, F]

    def lanes_pad(a):
        return jnp.pad(a, ((0, 0), (0, lanes - a.shape[1])))

    # bf16 slab: hoisted LSTM input projections (fwd || bwd along lanes).
    w_ih = jnp.concatenate(
        [jnp.concatenate([plm["wih_f"], plm["wih_b"]], axis=1),     # [F, 8Hp]
         jnp.concatenate([gl["wih_f"], gl["wih_b"]], axis=1)],      # [2F, 8Hg]
        axis=0).astype(jnp.bfloat16)

    # f32 slab: recurrent weights, LSTM fc heads, classifier weight.
    w_small = jnp.concatenate(
        [jnp.concatenate([plm["whh_f"], plm["whh_b"]], axis=1),     # [Hp, 8Hp]
         jnp.concatenate([gl["whh_f"], gl["whh_b"]], axis=1),       # [Hg, 8Hg]
         lanes_pad(plm["wfc"]), lanes_pad(gl["wfc"]),
         lanes_pad(cls["w"])], axis=0)

    # Bias slab: one bias per row, padded to the conv-activation lane width.
    blanes = HW * C1

    def row_pad(a):
        return jnp.pad(a, ((0, 0), (0, blanes - a.shape[1])))

    biases = jnp.concatenate(
        [jnp.tile(bb["bc"], (1, HW)),                                   # row 0
         row_pad(bb["bf"]),                                             # row 1
         row_pad(jnp.concatenate([plm["b_f"], plm["b_b"]], axis=1)),    # row 2
         row_pad(jnp.concatenate([gl["b_f"], gl["b_b"]], axis=1)),      # row 3
         row_pad(plm["bfc"]), row_pad(gl["bfc"]),                       # rows 4,5
         row_pad(cls["b"]),                                             # row 6
         jnp.zeros((1, blanes), jnp.float32)], axis=0)                  # row 7
    return w_big, w_pf, w_ih, w_small, biases, (F, Hp, Hg)


def init_params(key, C=3, C1=32, F=32, Hp=32, Hg=32, num_classes=8):
    ks = jax.random.split(key, 24)
    s = 0.1

    def nrm(k, shape):
        return jax.random.normal(k, shape, jnp.float32) * s

    def lstm_params(keys, D, H, O):
        return dict(
            wih_f=nrm(keys[0], (D, 4 * H)), whh_f=nrm(keys[1], (H, 4 * H)),
            b_f=nrm(keys[2], (1, 4 * H)),
            wih_b=nrm(keys[3], (D, 4 * H)), whh_b=nrm(keys[4], (H, 4 * H)),
            b_b=nrm(keys[5], (1, 4 * H)),
            wfc=nrm(keys[6], (2 * H, O)), bfc=nrm(keys[7], (1, O)))

    return dict(
        backbone=dict(wc=nrm(ks[0], (C * 9, C1)), bc=nrm(ks[1], (1, C1)),
                      wf=nrm(ks[2], (C1, F)), bf=nrm(ks[3], (1, F))),
        person_lstm=lstm_params(ks[4:12], F, Hp, F),
        group_lstm=lstm_params(ks[12:20], 2 * F, Hg, Hg),
        classifier=dict(w=nrm(ks[20], (Hg, num_classes)),
                        b=nrm(ks[21], (1, num_classes))),
    )


def group_activity_forward(frames, person_crops, params):
    """frames: [B, T, C, H, W] (shape only; use_scene_context=False)
       person_crops: [B, P, T, C, Hc, Wc]  ->  logits [B, num_classes]"""
    del frames                                   # scene context disabled
    B, P, T, C, Hc, Wc = person_crops.shape
    num_classes = params["classifier"]["w"].shape[1]
    nc_pad = 128                                 # lane-dense output width

    w_big, w_pf, w_ih, w_small, biases, (F, Hp, Hg) = _pack_weights(
        params, C, Hc, Wc)

    # Row order (p, t, b): the person bi-LSTM consumes rows directly
    # (seq = persons, batch = T*B frames) and its output / the max-pooled CNN
    # features come out in (t, b) order, which is exactly the seq-major layout
    # the group bi-LSTM needs (seq = T, batch = B).  Only a cheap crop
    # transpose+reshape happens outside the kernel -- no im2col in HBM.
    x = person_crops.transpose(1, 2, 0, 3, 4, 5).reshape(P * T * B, C * Hc * Wc)

    out = pl.pallas_call(
        functools.partial(_fused_kernel, B=B, P=P, T=T, F=F, Hp=Hp, Hg=Hg,
                          nc_pad=nc_pad),
        out_shape=jax.ShapeDtypeStruct((B, nc_pad), jnp.float32),
        grid=(1,),            # single fat program: whole batch resident in VMEM
        in_specs=[pl.BlockSpec(x.shape, lambda i: (0, 0)),
                  pl.BlockSpec(w_big.shape, lambda i: (0, 0)),
                  pl.BlockSpec(w_pf.shape, lambda i: (0, 0)),
                  pl.BlockSpec(w_ih.shape, lambda i: (0, 0)),
                  pl.BlockSpec(w_small.shape, lambda i: (0, 0)),
                  pl.BlockSpec(biases.shape, lambda i: (0, 0))],
        out_specs=pl.BlockSpec((B, nc_pad), lambda i: (0, 0)),
        compiler_params=pltpu.CompilerParams(
            dimension_semantics=("arbitrary",)),
    )(x, w_big, w_pf, w_ih, w_small, biases)
    return out[:, :num_classes]


# ----------------------------- main ------------------------------------------

if __name__ == "__main__":
    B, T, P = 2, 4, 3
    C, Hf, Wf = 3, 16, 16      # scene frames (shape fidelity only)
    Hc, Wc = 8, 8              # person crop spatial size
    num_classes = 8

    key = jax.random.PRNGKey(0)
    k1, k2, k3 = jax.random.split(key, 3)
    frames = jax.random.normal(k1, (B, T, C, Hf, Wf), jnp.float32)
    person_crops = jax.random.normal(k2, (B, P, T, C, Hc, Wc), jnp.float32)
    params = init_params(k3, C=C, C1=32, F=32, Hp=32, Hg=32,
                         num_classes=num_classes)

    fwd = jax.jit(group_activity_forward)
    logits = fwd(frames, person_crops, params)
    logits = jax.block_until_ready(logits)
    assert logits.shape == (B, num_classes) and logits.dtype == jnp.float32
    assert bool(jnp.all(jnp.isfinite(logits)))
    print("KERNEL_OK")
</pallas_src>

<mosaic_0001>
module attributes {stable_mosaic.version = 11 : i64} {
  func.func @_fused_kernel(%arg0: i32, %arg1: memref<24x192xf32, #tpu.memory_space<vmem>>, %arg2: memref<192x2048xbf16, #tpu.memory_space<vmem>>, %arg3: memref<2048x32xbf16, #tpu.memory_space<vmem>>, %arg4: memref<96x256xbf16, #tpu.memory_space<vmem>>, %arg5: memref<224x256xf32, #tpu.memory_space<vmem>>, %arg6: memref<8x2048xf32, #tpu.memory_space<vmem>>, %arg7: memref<2x128xf32, #tpu.memory_space<vmem>>) attributes {dimension_semantics = [#tpu.dimension_semantics<arbitrary>], iteration_bounds = array<i64: 1>, scalar_prefetch = 0 : i64, scratch_operands = 0 : i64, tpu.core_type = #tpu.core_type<tc>, window_params = [{pipeline_mode = #tpu.pipeline_mode<synchronous>, transform_indices = @transform_0, window_bounds = array<i64: 24, 192>}, {pipeline_mode = #tpu.pipeline_mode<synchronous>, transform_indices = @transform_1, window_bounds = array<i64: 192, 2048>}, {pipeline_mode = #tpu.pipeline_mode<synchronous>, transform_indices = @transform_2, window_bounds = array<i64: 2048, 32>}, {pipeline_mode = #tpu.pipeline_mode<synchronous>, transform_indices = @transform_3, window_bounds = array<i64: 96, 256>}, {pipeline_mode = #tpu.pipeline_mode<synchronous>, transform_indices = @transform_4, window_bounds = array<i64: 224, 256>}, {pipeline_mode = #tpu.pipeline_mode<synchronous>, transform_indices = @transform_5, window_bounds = array<i64: 8, 2048>}, {pipeline_mode = #tpu.pipeline_mode<synchronous>, transform_indices = @transform_6, window_bounds = array<i64: 2, 128>}]} {
    %c0 = arith.constant 0 : index
    %c0_0 = arith.constant 0 : index
    %0 = vector.load %arg1[%c0, %c0_0] : memref<24x192xf32, #tpu.memory_space<vmem>>, vector<24x192xf32>
    %1 = arith.truncf %0 : vector<24x192xf32> to vector<24x192xbf16>
    %c0_1 = arith.constant 0 : index
    %c0_2 = arith.constant 0 : index
    %2 = vector.load %arg2[%c0_1, %c0_2] : memref<192x2048xbf16, #tpu.memory_space<vmem>>, vector<192x2048xbf16>
    %cst = arith.constant dense<0.000000e+00> : vector<24x2048xf32>
    %3 = tpu.matmul %1, %2, %cst {dimension_numbers = #tpu.dot_dimension_numbers<[1], [0], [0], [1], [0, 0, 1, 1], [], []>} : vector<24x192xbf16>, vector<192x2048xbf16>, vector<24x2048xf32> -> vector<24x2048xf32>
    %c0_3 = arith.constant 0 : index
    %c0_4 = arith.constant 0 : index
    %4 = vector.load %arg6[%c0_3, %c0_4] : memref<8x2048xf32, #tpu.memory_space<vmem>>, vector<1x2048xf32>
    %5 = vector.broadcast %4 : vector<1x2048xf32> to vector<24x2048xf32>
    %6 = arith.addf %3, %5 : vector<24x2048xf32>
    %cst_5 = arith.constant 0.000000e+00 : f32
    %7 = vector.broadcast %cst_5 : f32 to vector<24x2048xf32>
    %8 = arith.maximumf %6, %7 : vector<24x2048xf32>
    %9 = arith.truncf %8 : vector<24x2048xf32> to vector<24x2048xbf16>
    %c0_6 = arith.constant 0 : index
    %c0_7 = arith.constant 0 : index
    %10 = vector.load %arg3[%c0_6, %c0_7] : memref<2048x32xbf16, #tpu.memory_space<vmem>>, vector<2048x32xbf16>
    %cst_8 = arith.constant dense<0.000000e+00> : vector<24x32xf32>
    %11 = tpu.matmul %9, %10, %cst_8 {dimension_numbers = #tpu.dot_dimension_numbers<[1], [0], [0], [1], [0, 0, 1, 1], [], []>} : vector<24x2048xbf16>, vector<2048x32xbf16>, vector<24x32xf32> -> vector<24x32xf32>
    %c1 = arith.constant 1 : index
    %c0_9 = arith.constant 0 : index
    %12 = vector.load %arg6[%c1, %c0_9] : memref<8x2048xf32, #tpu.memory_space<vmem>>, vector<1x32xf32>
    %13 = vector.broadcast %12 : vector<1x32xf32> to vector<24x32xf32>
    %14 = arith.addf %11, %13 : vector<24x32xf32>
    %c0_10 = arith.constant 0 : index
    %c0_11 = arith.constant 0 : index
    %15 = vector.load %arg5[%c0_10, %c0_11] : memref<224x256xf32, #tpu.memory_space<vmem>>, vector<32x256xf32>
    %c32 = arith.constant 32 : index
    %c0_12 = arith.constant 0 : index
    %16 = vector.load %arg5[%c32, %c0_12] : memref<224x256xf32, #tpu.memory_space<vmem>>, vector<32x256xf32>
    %c64 = arith.constant 64 : index
    %c0_13 = arith.constant 0 : index
    %17 = vector.load %arg5[%c64, %c0_13] : memref<224x256xf32, #tpu.memory_space<vmem>>, vector<64x32xf32>
    %c128 = arith.constant 128 : index
    %c0_14 = arith.constant 0 : index
    %18 = vector.load %arg5[%c128, %c0_14] : memref<224x256xf32, #tpu.memory_space<vmem>>, vector<64x32xf32>
    %c192 = arith.constant 192 : index
    %c0_15 = arith.constant 0 : index
    %19 = vector.load %arg5[%c192, %c0_15] : memref<224x256xf32, #tpu.memory_space<vmem>>, vector<32x128xf32>
    %20 = vector.extract_strided_slice %14 {offsets = [0, 0], sizes = [8, 32], strides = [1, 1]} : vector<24x32xf32> to vector<8x32xf32>
    %21 = vector.extract_strided_slice %14 {offsets = [8, 0], sizes = [8, 32], strides = [1, 1]} : vector<24x32xf32> to vector<8x32xf32>
    %22 = arith.maximumf %20, %21 : vector<8x32xf32>
    %23 = vector.extract_strided_slice %14 {offsets = [16, 0], sizes = [8, 32], strides = [1, 1]} : vector<24x32xf32> to vector<8x32xf32>
    %24 = arith.maximumf %22, %23 : vector<8x32xf32>
    %c0_16 = arith.constant 0 : index
    %c0_17 = arith.constant 0 : index
    %25 = vector.load %arg4[%c0_16, %c0_17] : memref<96x256xbf16, #tpu.memory_space<vmem>>, vector<32x256xbf16>
    %c2 = arith.constant 2 : index
    %c0_18 = arith.constant 0 : index
    %26 = vector.load %arg6[%c2, %c0_18] : memref<8x2048xf32, #tpu.memory_space<vmem>>, vector<1x256xf32>
    %c4 = arith.constant 4 : index
    %c0_19 = arith.constant 0 : index
    %27 = vector.load %arg6[%c4, %c0_19] : memref<8x2048xf32, #tpu.memory_space<vmem>>, vector<1x32xf32>
    %28 = arith.truncf %14 : vector<24x32xf32> to vector<24x32xbf16>
    %cst_20 = arith.constant dense<0.000000e+00> : vector<24x256xf32>
    %29 = tpu.matmul %28, %25, %cst_20 {dimension_numbers = #tpu.dot_dimension_numbers<[1], [0], [0], [1], [0, 0, 1, 1], [], []>} : vector<24x32xbf16>, vector<32x256xbf16>, vector<24x256xf32> -> vector<24x256xf32>
    %30 = vector.broadcast %26 : vector<1x256xf32> to vector<24x256xf32>
    %31 = arith.addf %29, %30 : vector<24x256xf32>
    %cst_21 = arith.constant 0.000000e+00 : f32
    %32 = vector.broadcast %cst_21 : f32 to vector<16x32xf32>
    %cst_22 = arith.constant 0.000000e+00 : f32
    %33 = vector.broadcast %cst_22 : f32 to vector<16x32xf32>
    %cst_23 = arith.constant dense<0.000000e+00> : vector<16x256xf32>
    %34 = tpu.matmul %32, %15, %cst_23 {dimension_numbers = #tpu.dot_dimension_numbers<[1], [0], [0], [1], [0, 0, 1, 1], [], []>} : vector<16x32xf32>, vector<32x256xf32>, vector<16x256xf32> -> vector<16x256xf32>
    %35 = vector.extract_strided_slice %31 {offsets = [0, 0], sizes = [8, 128], strides = [1, 1]} : vector<24x256xf32> to vector<8x128xf32>
    %36 = vector.extract_strided_slice %34 {offsets = [0, 0], sizes = [8, 128], strides = [1, 1]} : vector<16x256xf32> to vector<8x128xf32>
    %37 = arith.addf %35, %36 : vector<8x128xf32>
    %38 = vector.extract_strided_slice %31 {offsets = [16, 128], sizes = [8, 128], strides = [1, 1]} : vector<24x256xf32> to vector<8x128xf32>
    %39 = vector.extract_strided_slice %34 {offsets = [8, 128], sizes = [8, 128], strides = [1, 1]} : vector<16x256xf32> to vector<8x128xf32>
    %40 = arith.addf %38, %39 : vector<8x128xf32>
    %41 = tpu.concatenate %37, %40 in 0 : vector<8x128xf32>, vector<8x128xf32> -> vector<16x128xf32>
    %42 = vector.extract_strided_slice %41 {offsets = [0, 0], sizes = [16, 32], strides = [1, 1]} : vector<16x128xf32> to vector<16x32xf32>
    %43 = arith.negf %42 : vector<16x32xf32>
    %44 = math.exp %43 : vector<16x32xf32>
    %cst_24 = arith.constant 1.000000e+00 : f32
    %45 = vector.broadcast %cst_24 : f32 to vector<16x32xf32>
    %46 = arith.addf %45, %44 : vector<16x32xf32>
    %47 = arith.divf %45, %46 : vector<16x32xf32>
    %48 = vector.extract_strided_slice %41 {offsets = [0, 32], sizes = [16, 32], strides = [1, 1]} : vector<16x128xf32> to vector<16x32xf32>
    %49 = arith.negf %48 : vector<16x32xf32>
    %50 = math.exp %49 : vector<16x32xf32>
    %cst_25 = arith.constant 1.000000e+00 : f32
    %51 = vector.broadcast %cst_25 : f32 to vector<16x32xf32>
    %52 = arith.addf %51, %50 : vector<16x32xf32>
    %53 = arith.divf %51, %52 : vector<16x32xf32>
    %54 = vector.extract_strided_slice %41 {offsets = [0, 64], sizes = [16, 32], strides = [1, 1]} : vector<16x128xf32> to vector<16x32xf32>
    %55 = math.tanh %54 : vector<16x32xf32>
    %56 = vector.extract_strided_slice %41 {offsets = [0, 96], sizes = [16, 32], strides = [1, 1]} : vector<16x128xf32> to vector<16x32xf32>
    %57 = arith.negf %56 : vector<16x32xf32>
    %58 = math.exp %57 : vector<16x32xf32>
    %cst_26 = arith.constant 1.000000e+00 : f32
    %59 = vector.broadcast %cst_26 : f32 to vector<16x32xf32>
    %60 = arith.addf %59, %58 : vector<16x32xf32>
    %61 = arith.divf %59, %60 : vector<16x32xf32>
    %62 = arith.mulf %53, %33 : vector<16x32xf32>
    %63 = arith.mulf %47, %55 : vector<16x32xf32>
    %64 = arith.addf %62, %63 : vector<16x32xf32>
    %65 = math.tanh %64 : vector<16x32xf32>
    %66 = arith.mulf %61, %65 : vector<16x32xf32>
    %cst_27 = arith.constant dense<0.000000e+00> : vector<16x256xf32>
    %67 = tpu.matmul %66, %15, %cst_27 {dimension_numbers = #tpu.dot_dimension_numbers<[1], [0], [0], [1], [0, 0, 1, 1], [], []>} : vector<16x32xf32>, vector<32x256xf32>, vector<16x256xf32> -> vector<16x256xf32>
    %68 = vector.extract_strided_slice %31 {offsets = [8, 0], sizes = [8, 128], strides = [1, 1]} : vector<24x256xf32> to vector<8x128xf32>
    %69 = vector.extract_strided_slice %67 {offsets = [0, 0], sizes = [8, 128], strides = [1, 1]} : vector<16x256xf32> to vector<8x128xf32>
    %70 = arith.addf %68, %69 : vector<8x128xf32>
    %71 = vector.extract_strided_slice %31 {offsets = [8, 128], sizes = [8, 128], strides = [1, 1]} : vector<24x256xf32> to vector<8x128xf32>
    %72 = vector.extract_strided_slice %67 {offsets = [8, 128], sizes = [8, 128], strides = [1, 1]} : vector<16x256xf32> to vector<8x128xf32>
    %73 = arith.addf %71, %72 : vector<8x128xf32>
    %74 = tpu.concatenate %70, %73 in 0 : vector<8x128xf32>, vector<8x128xf32> -> vector<16x128xf32>
    %75 = vector.extract_strided_slice %74 {offsets = [0, 0], sizes = [16, 32], strides = [1, 1]} : vector<16x128xf32> to vector<16x32xf32>
    %76 = arith.negf %75 : vector<16x32xf32>
    %77 = math.exp %76 : vector<16x32xf32>
    %cst_28 = arith.constant 1.000000e+00 : f32
    %78 = vector.broadcast %cst_28 : f32 to vector<16x32xf32>
    %79 = arith.addf %78, %77 : vector<16x32xf32>
    %80 = arith.divf %78, %79 : vector<16x32xf32>
    %81 = vector.extract_strided_slice %74 {offsets = [0, 32], sizes = [16, 32], strides = [1, 1]} : vector<16x128xf32> to vector<16x32xf32>
    %82 = arith.negf %81 : vector<16x32xf32>
    %83 = math.exp %82 : vector<16x32xf32>
    %cst_29 = arith.constant 1.000000e+00 : f32
    %84 = vector.broadcast %cst_29 : f32 to vector<16x32xf32>
    %85 = arith.addf %84, %83 : vector<16x32xf32>
    %86 = arith.divf %84, %85 : vector<16x32xf32>
    %87 = vector.extract_strided_slice %74 {offsets = [0, 64], sizes = [16, 32], strides = [1, 1]} : vector<16x128xf32> to vector<16x32xf32>
    %88 = math.tanh %87 : vector<16x32xf32>
    %89 = vector.extract_strided_slice %74 {offsets = [0, 96], sizes = [16, 32], strides = [1, 1]} : vector<16x128xf32> to vector<16x32xf32>
    %90 = arith.negf %89 : vector<16x32xf32>
    %91 = math.exp %90 : vector<16x32xf32>
    %cst_30 = arith.constant 1.000000e+00 : f32
    %92 = vector.broadcast %cst_30 : f32 to vector<16x32xf32>
    %93 = arith.addf %92, %91 : vector<16x32xf32>
    %94 = arith.divf %92, %93 : vector<16x32xf32>
    %95 = arith.mulf %86, %64 : vector<16x32xf32>
    %96 = arith.mulf %80, %88 : vector<16x32xf32>
    %97 = arith.addf %95, %96 : vector<16x32xf32>
    %98 = math.tanh %97 : vector<16x32xf32>
    %99 = arith.mulf %94, %98 : vector<16x32xf32>
    %cst_31 = arith.constant dense<0.000000e+00> : vector<16x256xf32>
    %100 = tpu.matmul %99, %15, %cst_31 {dimension_numbers = #tpu.dot_dimension_numbers<[1], [0], [0], [1], [0, 0, 1, 1], [], []>} : vector<16x32xf32>, vector<32x256xf32>, vector<16x256xf32> -> vector<16x256xf32>
    %101 = vector.extract_strided_slice %31 {offsets = [16, 0], sizes = [8, 128], strides = [1, 1]} : vector<24x256xf32> to vector<8x128xf32>
    %102 = vector.extract_strided_slice %100 {offsets = [0, 0], sizes = [8, 128], strides = [1, 1]} : vector<16x256xf32> to vector<8x128xf32>
    %103 = arith.addf %101, %102 : vector<8x128xf32>
    %104 = vector.extract_strided_slice %31 {offsets = [0, 128], sizes = [8, 128], strides = [1, 1]} : vector<24x256xf32> to vector<8x128xf32>
    %105 = vector.extract_strided_slice %100 {offsets = [8, 128], sizes = [8, 128], strides = [1, 1]} : vector<16x256xf32> to vector<8x128xf32>
    %106 = arith.addf %104, %105 : vector<8x128xf32>
    %107 = tpu.concatenate %103, %106 in 0 : vector<8x128xf32>, vector<8x128xf32> -> vector<16x128xf32>
    %108 = vector.extract_strided_slice %107 {offsets = [0, 0], sizes = [16, 32], strides = [1, 1]} : vector<16x128xf32> to vector<16x32xf32>
    %109 = arith.negf %108 : vector<16x32xf32>
    %110 = math.exp %109 : vector<16x32xf32>
    %cst_32 = arith.constant 1.000000e+00 : f32
    %111 = vector.broadcast %cst_32 : f32 to vector<16x32xf32>
    %112 = arith.addf %111, %110 : vector<16x32xf32>
    %113 = arith.divf %111, %112 : vector<16x32xf32>
    %114 = vector.extract_strided_slice %107 {offsets = [0, 32], sizes = [16, 32], strides = [1, 1]} : vector<16x128xf32> to vector<16x32xf32>
    %115 = arith.negf %114 : vector<16x32xf32>
    %116 = math.exp %115 : vector<16x32xf32>
    %cst_33 = arith.constant 1.000000e+00 : f32
    %117 = vector.broadcast %cst_33 : f32 to vector<16x32xf32>
    %118 = arith.addf %117, %116 : vector<16x32xf32>
    %119 = arith.divf %117, %118 : vector<16x32xf32>
    %120 = vector.extract_strided_slice %107 {offsets = [0, 64], sizes = [16, 32], strides = [1, 1]} : vector<16x128xf32> to vector<16x32xf32>
    %121 = math.tanh %120 : vector<16x32xf32>
    %122 = vector.extract_strided_slice %107 {offsets = [0, 96], sizes = [16, 32], strides = [1, 1]} : vector<16x128xf32> to vector<16x32xf32>
    %123 = arith.negf %122 : vector<16x32xf32>
    %124 = math.exp %123 : vector<16x32xf32>
    %cst_34 = arith.constant 1.000000e+00 : f32
    %125 = vector.broadcast %cst_34 : f32 to vector<16x32xf32>
    %126 = arith.addf %125, %124 : vector<16x32xf32>
    %127 = arith.divf %125, %126 : vector<16x32xf32>
    %128 = arith.mulf %119, %97 : vector<16x32xf32>
    %129 = arith.mulf %113, %121 : vector<16x32xf32>
    %130 = arith.addf %128, %129 : vector<16x32xf32>
    %131 = math.tanh %130 : vector<16x32xf32>
    %132 = arith.mulf %127, %131 : vector<16x32xf32>
    %133 = vector.extract_strided_slice %132 {offsets = [0, 0], sizes = [8, 32], strides = [1, 1]} : vector<16x32xf32> to vector<8x32xf32>
    %134 = vector.extract_strided_slice %132 {offsets = [8, 0], sizes = [8, 32], strides = [1, 1]} : vector<16x32xf32> to vector<8x32xf32>
    %135 = tpu.concatenate %133, %134 in 1 : vector<8x32xf32>, vector<8x32xf32> -> vector<8x64xf32>
    %cst_35 = arith.constant dense<0.000000e+00> : vector<8x32xf32>
    %136 = tpu.matmul %135, %17, %cst_35 {dimension_numbers = #tpu.dot_dimension_numbers<[1], [0], [0], [1], [0, 0, 1, 1], [], []>} : vector<8x64xf32>, vector<64x32xf32>, vector<8x32xf32> -> vector<8x32xf32>
    %137 = vector.broadcast %27 : vector<1x32xf32> to vector<8x32xf32>
    %138 = arith.addf %136, %137 : vector<8x32xf32>
    %139 = tpu.concatenate %24, %138 in 1 : vector<8x32xf32>, vector<8x32xf32> -> vector<8x64xf32>
    %c32_36 = arith.constant 32 : index
    %c0_37 = arith.constant 0 : index
    %140 = vector.load %arg4[%c32_36, %c0_37] : memref<96x256xbf16, #tpu.memory_space<vmem>>, vector<64x256xbf16>
    %c3 = arith.constant 3 : index
    %c0_38 = arith.constant 0 : index
    %141 = vector.load %arg6[%c3, %c0_38] : memref<8x2048xf32, #tpu.memory_space<vmem>>, vector<1x256xf32>
    %c5 = arith.constant 5 : index
    %c0_39 = arith.constant 0 : index
    %142 = vector.load %arg6[%c5, %c0_39] : memref<8x2048xf32, #tpu.memory_space<vmem>>, vector<1x32xf32>
    %143 = arith.truncf %139 : vector<8x64xf32> to vector<8x64xbf16>
    %cst_40 = arith.constant dense<0.000000e+00> : vector<8x256xf32>
    %144 = tpu.matmul %143, %140, %cst_40 {dimension_numbers = #tpu.dot_dimension_numbers<[1], [0], [0], [1], [0, 0, 1, 1], [], []>} : vector<8x64xbf16>, vector<64x256xbf16>, vector<8x256xf32> -> vector<8x256xf32>
    %145 = vector.broadcast %141 : vector<1x256xf32> to vector<8x256xf32>
    %146 = arith.addf %144, %145 : vector<8x256xf32>
    %cst_41 = arith.constant 0.000000e+00 : f32
    %147 = vector.broadcast %cst_41 : f32 to vector<4x32xf32>
    %cst_42 = arith.constant 0.000000e+00 : f32
    %148 = vector.broadcast %cst_42 : f32 to vector<4x32xf32>
    %cst_43 = arith.constant dense<0.000000e+00> : vector<4x256xf32>
    %149 = tpu.matmul %147, %16, %cst_43 {dimension_numbers = #tpu.dot_dimension_numbers<[1], [0], [0], [1], [0, 0, 1, 1], [], []>} : vector<4x32xf32>, vector<32x256xf32>, vector<4x256xf32> -> vector<4x256xf32>
    %150 = vector.extract_strided_slice %146 {offsets = [0, 0], sizes = [2, 128], strides = [1, 1]} : vector<8x256xf32> to vector<2x128xf32>
    %151 = vector.extract_strided_slice %149 {offsets = [0, 0], sizes = [2, 128], strides = [1, 1]} : vector<4x256xf32> to vector<2x128xf32>
    %152 = arith.addf %150, %151 : vector<2x128xf32>
    %153 = vector.extract_strided_slice %146 {offsets = [6, 128], sizes = [2, 128], strides = [1, 1]} : vector<8x256xf32> to vector<2x128xf32>
    %154 = vector.extract_strided_slice %149 {offsets = [2, 128], sizes = [2, 128], strides = [1, 1]} : vector<4x256xf32> to vector<2x128xf32>
    %155 = arith.addf %153, %154 : vector<2x128xf32>
    %156 = tpu.concatenate %152, %155 in 0 : vector<2x128xf32>, vector<2x128xf32> -> vector<4x128xf32>
    %157 = vector.extract_strided_slice %156 {offsets = [0, 0], sizes = [4, 32], strides = [1, 1]} : vector<4x128xf32> to vector<4x32xf32>
    %158 = arith.negf %157 : vector<4x32xf32>
    %159 = math.exp %158 : vector<4x32xf32>
    %cst_44 = arith.constant 1.000000e+00 : f32
    %160 = vector.broadcast %cst_44 : f32 to vector<4x32xf32>
    %161 = arith.addf %160, %159 : vector<4x32xf32>
    %162 = arith.divf %160, %161 : vector<4x32xf32>
    %163 = vector.extract_strided_slice %156 {offsets = [0, 32], sizes = [4, 32], strides = [1, 1]} : vector<4x128xf32> to vector<4x32xf32>
    %164 = arith.negf %163 : vector<4x32xf32>
    %165 = math.exp %164 : vector<4x32xf32>
    %cst_45 = arith.constant 1.000000e+00 : f32
    %166 = vector.broadcast %cst_45 : f32 to vector<4x32xf32>
    %167 = arith.addf %166, %165 : vector<4x32xf32>
    %168 = arith.divf %166, %167 : vector<4x32xf32>
    %169 = vector.extract_strided_slice %156 {offsets = [0, 64], sizes = [4, 32], strides = [1, 1]} : vector<4x128xf32> to vector<4x32xf32>
    %170 = math.tanh %169 : vector<4x32xf32>
    %171 = vector.extract_strided_slice %156 {offsets = [0, 96], sizes = [4, 32], strides = [1, 1]} : vector<4x128xf32> to vector<4x32xf32>
    %172 = arith.negf %171 : vector<4x32xf32>
    %173 = math.exp %172 : vector<4x32xf32>
    %cst_46 = arith.constant 1.000000e+00 : f32
    %174 = vector.broadcast %cst_46 : f32 to vector<4x32xf32>
    %175 = arith.addf %174, %173 : vector<4x32xf32>
    %176 = arith.divf %174, %175 : vector<4x32xf32>
    %177 = arith.mulf %168, %148 : vector<4x32xf32>
    %178 = arith.mulf %162, %170 : vector<4x32xf32>
    %179 = arith.addf %177, %178 : vector<4x32xf32>
    %180 = math.tanh %179 : vector<4x32xf32>
    %181 = arith.mulf %176, %180 : vector<4x32xf32>
    %cst_47 = arith.constant dense<0.000000e+00> : vector<4x256xf32>
    %182 = tpu.matmul %181, %16, %cst_47 {dimension_numbers = #tpu.dot_dimension_numbers<[1], [0], [0], [1], [0, 0, 1, 1], [], []>} : vector<4x32xf32>, vector<32x256xf32>, vector<4x256xf32> -> vector<4x256xf32>
    %183 = vector.extract_strided_slice %146 {offsets = [2, 0], sizes = [2, 128], strides = [1, 1]} : vector<8x256xf32> to vector<2x128xf32>
    %184 = vector.extract_strided_slice %182 {offsets = [0, 0], sizes = [2, 128], strides = [1, 1]} : vector<4x256xf32> to vector<2x128xf32>
    %185 = arith.addf %183, %184 : vector<2x128xf32>
    %186 = vector.extract_strided_slice %146 {offsets = [4, 128], sizes = [2, 128], strides = [1, 1]} : vector<8x256xf32> to vector<2x128xf32>
    %187 = vector.extract_strided_slice %182 {offsets = [2, 128], sizes = [2, 128], strides = [1, 1]} : vector<4x256xf32> to vector<2x128xf32>
    %188 = arith.addf %186, %187 : vector<2x128xf32>
    %189 = tpu.concatenate %185, %188 in 0 : vector<2x128xf32>, vector<2x128xf32> -> vector<4x128xf32>
    %190 = vector.extract_strided_slice %189 {offsets = [0, 0], sizes = [4, 32], strides = [1, 1]} : vector<4x128xf32> to vector<4x32xf32>
    %191 = arith.negf %190 : vector<4x32xf32>
    %192 = math.exp %191 : vector<4x32xf32>
    %cst_48 = arith.constant 1.000000e+00 : f32
    %193 = vector.broadcast %cst_48 : f32 to vector<4x32xf32>
    %194 = arith.addf %193, %192 : vector<4x32xf32>
    %195 = arith.divf %193, %194 : vector<4x32xf32>
    %196 = vector.extract_strided_slice %189 {offsets = [0, 32], sizes = [4, 32], strides = [1, 1]} : vector<4x128xf32> to vector<4x32xf32>
    %197 = arith.negf %196 : vector<4x32xf32>
    %198 = math.exp %197 : vector<4x32xf32>
    %cst_49 = arith.constant 1.000000e+00 : f32
    %199 = vector.broadcast %cst_49 : f32 to vector<4x32xf32>
    %200 = arith.addf %199, %198 : vector<4x32xf32>
    %201 = arith.divf %199, %200 : vector<4x32xf32>
    %202 = vector.extract_strided_slice %189 {offsets = [0, 64], sizes = [4, 32], strides = [1, 1]} : vector<4x128xf32> to vector<4x32xf32>
    %203 = math.tanh %202 : vector<4x32xf32>
    %204 = vector.extract_strided_slice %189 {offsets = [0, 96], sizes = [4, 32], strides = [1, 1]} : vector<4x128xf32> to vector<4x32xf32>
    %205 = arith.negf %204 : vector<4x32xf32>
    %206 = math.exp %205 : vector<4x32xf32>
    %cst_50 = arith.constant 1.000000e+00 : f32
    %207 = vector.broadcast %cst_50 : f32 to vector<4x32xf32>
    %208 = arith.addf %207, %206 : vector<4x32xf32>
    %209 = arith.divf %207, %208 : vector<4x32xf32>
    %210 = arith.mulf %201, %179 : vector<4x32xf32>
    %211 = arith.mulf %195, %203 : vector<4x32xf32>
    %212 = arith.addf %210, %211 : vector<4x32xf32>
    %213 = math.tanh %212 : vector<4x32xf32>
    %214 = arith.mulf %209, %213 : vector<4x32xf32>
    %cst_51 = arith.constant dense<0.000000e+00> : vector<4x256xf32>
    %215 = tpu.matmul %214, %16, %cst_51 {dimension_numbers = #tpu.dot_dimension_numbers<[1], [0], [0], [1], [0, 0, 1, 1], [], []>} : vector<4x32xf32>, vector<32x256xf32>, vector<4x256xf32> -> vector<4x256xf32>
    %216 = vector.extract_strided_slice %146 {offsets = [4, 0], sizes = [2, 128], strides = [1, 1]} : vector<8x256xf32> to vector<2x128xf32>
    %217 = vector.extract_strided_slice %215 {offsets = [0, 0], sizes = [2, 128], strides = [1, 1]} : vector<4x256xf32> to vector<2x128xf32>
    %218 = arith.addf %216, %217 : vector<2x128xf32>
    %219 = vector.extract_strided_slice %146 {offsets = [2, 128], sizes = [2, 128], strides = [1, 1]} : vector<8x256xf32> to vector<2x128xf32>
    %220 = vector.extract_strided_slice %215 {offsets = [2, 128], sizes = [2, 128], strides = [1, 1]} : vector<4x256xf32> to vector<2x128xf32>
    %221 = arith.addf %219, %220 : vector<2x128xf32>
    %222 = tpu.concatenate %218, %221 in 0 : vector<2x128xf32>, vector<2x128xf32> -> vector<4x128xf32>
    %223 = vector.extract_strided_slice %222 {offsets = [0, 0], sizes = [4, 32], strides = [1, 1]} : vector<4x128xf32> to vector<4x32xf32>
    %224 = arith.negf %223 : vector<4x32xf32>
    %225 = math.exp %224 : vector<4x32xf32>
    %cst_52 = arith.constant 1.000000e+00 : f32
    %226 = vector.broadcast %cst_52 : f32 to vector<4x32xf32>
    %227 = arith.addf %226, %225 : vector<4x32xf32>
    %228 = arith.divf %226, %227 : vector<4x32xf32>
    %229 = vector.extract_strided_slice %222 {offsets = [0, 32], sizes = [4, 32], strides = [1, 1]} : vector<4x128xf32> to vector<4x32xf32>
    %230 = arith.negf %229 : vector<4x32xf32>
    %231 = math.exp %230 : vector<4x32xf32>
    %cst_53 = arith.constant 1.000000e+00 : f32
    %232 = vector.broadcast %cst_53 : f32 to vector<4x32xf32>
    %233 = arith.addf %232, %231 : vector<4x32xf32>
    %234 = arith.divf %232, %233 : vector<4x32xf32>
    %235 = vector.extract_strided_slice %222 {offsets = [0, 64], sizes = [4, 32], strides = [1, 1]} : vector<4x128xf32> to vector<4x32xf32>
    %236 = math.tanh %235 : vector<4x32xf32>
    %237 = vector.extract_strided_slice %222 {offsets = [0, 96], sizes = [4, 32], strides = [1, 1]} : vector<4x128xf32> to vector<4x32xf32>
    %238 = arith.negf %237 : vector<4x32xf32>
    %239 = math.exp %238 : vector<4x32xf32>
    %cst_54 = arith.constant 1.000000e+00 : f32
    %240 = vector.broadcast %cst_54 : f32 to vector<4x32xf32>
    %241 = arith.addf %240, %239 : vector<4x32xf32>
    %242 = arith.divf %240, %241 : vector<4x32xf32>
    %243 = arith.mulf %234, %212 : vector<4x32xf32>
    %244 = arith.mulf %228, %236 : vector<4x32xf32>
    %245 = arith.addf %243, %244 : vector<4x32xf32>
    %246 = math.tanh %245 : vector<4x32xf32>
    %247 = arith.mulf %242, %246 : vector<4x32xf32>
    %cst_55 = arith.constant dense<0.000000e+00> : vector<4x256xf32>
    %248 = tpu.matmul %247, %16, %cst_55 {dimension_numbers = #tpu.dot_dimension_numbers<[1], [0], [0], [1], [0, 0, 1, 1], [], []>} : vector<4x32xf32>, vector<32x256xf32>, vector<4x256xf32> -> vector<4x256xf32>
    %249 = vector.extract_strided_slice %146 {offsets = [6, 0], sizes = [2, 128], strides = [1, 1]} : vector<8x256xf32> to vector<2x128xf32>
    %250 = vector.extract_strided_slice %248 {offsets = [0, 0], sizes = [2, 128], strides = [1, 1]} : vector<4x256xf32> to vector<2x128xf32>
    %251 = arith.addf %249, %250 : vector<2x128xf32>
    %252 = vector.extract_strided_slice %146 {offsets = [0, 128], sizes = [2, 128], strides = [1, 1]} : vector<8x256xf32> to vector<2x128xf32>
    %253 = vector.extract_strided_slice %248 {offsets = [2, 128], sizes = [2, 128], strides = [1, 1]} : vector<4x256xf32> to vector<2x128xf32>
    %254 = arith.addf %252, %253 : vector<2x128xf32>
    %255 = tpu.concatenate %251, %254 in 0 : vector<2x128xf32>, vector<2x128xf32> -> vector<4x128xf32>
    %256 = vector.extract_strided_slice %255 {offsets = [0, 0], sizes = [4, 32], strides = [1, 1]} : vector<4x128xf32> to vector<4x32xf32>
    %257 = arith.negf %256 : vector<4x32xf32>
    %258 = math.exp %257 : vector<4x32xf32>
    %cst_56 = arith.constant 1.000000e+00 : f32
    %259 = vector.broadcast %cst_56 : f32 to vector<4x32xf32>
    %260 = arith.addf %259, %258 : vector<4x32xf32>
    %261 = arith.divf %259, %260 : vector<4x32xf32>
    %262 = vector.extract_strided_slice %255 {offsets = [0, 32], sizes = [4, 32], strides = [1, 1]} : vector<4x128xf32> to vector<4x32xf32>
    %263 = arith.negf %262 : vector<4x32xf32>
    %264 = math.exp %263 : vector<4x32xf32>
    %cst_57 = arith.constant 1.000000e+00 : f32
    %265 = vector.broadcast %cst_57 : f32 to vector<4x32xf32>
    %266 = arith.addf %265, %264 : vector<4x32xf32>
    %267 = arith.divf %265, %266 : vector<4x32xf32>
    %268 = vector.extract_strided_slice %255 {offsets = [0, 64], sizes = [4, 32], strides = [1, 1]} : vector<4x128xf32> to vector<4x32xf32>
    %269 = math.tanh %268 : vector<4x32xf32>
    %270 = vector.extract_strided_slice %255 {offsets = [0, 96], sizes = [4, 32], strides = [1, 1]} : vector<4x128xf32> to vector<4x32xf32>
    %271 = arith.negf %270 : vector<4x32xf32>
    %272 = math.exp %271 : vector<4x32xf32>
    %cst_58 = arith.constant 1.000000e+00 : f32
    %273 = vector.broadcast %cst_58 : f32 to vector<4x32xf32>
    %274 = arith.addf %273, %272 : vector<4x32xf32>
    %275 = arith.divf %273, %274 : vector<4x32xf32>
    %276 = arith.mulf %267, %245 : vector<4x32xf32>
    %277 = arith.mulf %261, %269 : vector<4x32xf32>
    %278 = arith.addf %276, %277 : vector<4x32xf32>
    %279 = math.tanh %278 : vector<4x32xf32>
    %280 = arith.mulf %275, %279 : vector<4x32xf32>
    %281 = vector.extract_strided_slice %280 {offsets = [0, 0], sizes = [2, 32], strides = [1, 1]} : vector<4x32xf32> to vector<2x32xf32>
    %282 = vector.extract_strided_slice %280 {offsets = [2, 0], sizes = [2, 32], strides = [1, 1]} : vector<4x32xf32> to vector<2x32xf32>
    %283 = tpu.concatenate %281, %282 in 1 : vector<2x32xf32>, vector<2x32xf32> -> vector<2x64xf32>
    %cst_59 = arith.constant dense<0.000000e+00> : vector<2x32xf32>
    %284 = tpu.matmul %283, %18, %cst_59 {dimension_numbers = #tpu.dot_dimension_numbers<[1], [0], [0], [1], [0, 0, 1, 1], [], []>} : vector<2x64xf32>, vector<64x32xf32>, vector<2x32xf32> -> vector<2x32xf32>
    %285 = vector.broadcast %142 : vector<1x32xf32> to vector<2x32xf32>
    %286 = arith.addf %284, %285 : vector<2x32xf32>
    %cst_60 = arith.constant dense<0.000000e+00> : vector<2x128xf32>
    %287 = tpu.matmul %286, %19, %cst_60 {dimension_numbers = #tpu.dot_dimension_numbers<[1], [0], [0], [1], [0, 0, 1, 1], [], []>} : vector<2x32xf32>, vector<32x128xf32>, vector<2x128xf32> -> vector<2x128xf32>
    %c6 = arith.constant 6 : index
    %c0_61 = arith.constant 0 : index
    %288 = vector.load %arg6[%c6, %c0_61] : memref<8x2048xf32, #tpu.memory_space<vmem>>, vector<1x128xf32>
    %289 = vector.broadcast %288 : vector<1x128xf32> to vector<2x128xf32>
    %290 = arith.addf %287, %289 : vector<2x128xf32>
    %c0_62 = arith.constant 0 : index
    %c0_63 = arith.constant 0 : index
    %291 = vector.load %arg7[%c0_62, %c0_63] : memref<2x128xf32, #tpu.memory_space<vmem>>, vector<2x128xf32>
    tpu.vector_store %arg7[%c0_62, %c0_63], %290 {strides = array<i32>} : memref<2x128xf32, #tpu.memory_space<vmem>>, vector<2x128xf32>,
    return
  }
  func.func @transform_0(%arg0: i32) -> (i32, i32) {
    %c0_i32 = arith.constant 0 : i32
    %c0_i32_0 = arith.constant 0 : i32
    %c0_i32_1 = arith.constant 0 : i32
    return %c0_i32, %c0_i32_0 : i32, i32
  }
  func.func @transform_1(%arg0: i32) -> (i32, i32) {
    %c0_i32 = arith.constant 0 : i32
    %c0_i32_0 = arith.constant 0 : i32
    %c0_i32_1 = arith.constant 0 : i32
    return %c0_i32, %c0_i32_0 : i32, i32
  }
  func.func @transform_2(%arg0: i32) -> (i32, i32) {
    %c0_i32 = arith.constant 0 : i32
    %c0_i32_0 = arith.constant 0 : i32
    %c0_i32_1 = arith.constant 0 : i32
    return %c0_i32, %c0_i32_0 : i32, i32
  }
  func.func @transform_3(%arg0: i32) -> (i32, i32) {
    %c0_i32 = arith.constant 0 : i32
    %c0_i32_0 = arith.constant 0 : i32
    %c0_i32_1 = arith.constant 0 : i32
    return %c0_i32, %c0_i32_0 : i32, i32
  }
  func.func @transform_4(%arg0: i32) -> (i32, i32) {
    %c0_i32 = arith.constant 0 : i32
    %c0_i32_0 = arith.constant 0 : i32
    %c0_i32_1 = arith.constant 0 : i32
    return %c0_i32, %c0_i32_0 : i32, i32
  }
  func.func @transform_5(%arg0: i32) -> (i32, i32) {
    %c0_i32 = arith.constant 0 : i32
    %c0_i32_0 = arith.constant 0 : i32
    %c0_i32_1 = arith.constant 0 : i32
    return %c0_i32, %c0_i32_0 : i32, i32
  }
  func.func @transform_6(%arg0: i32) -> (i32, i32) {
    %c0_i32 = arith.constant 0 : i32
    %c0_i32_0 = arith.constant 0 : i32
    %c0_i32_1 = arith.constant 0 : i32
    return %c0_i32, %c0_i32_0 : i32, i32
  }
}

</mosaic_0001>

<bundles_post_ra>
// kernel: group_activity_forward.1
= control target key start
LH: loop header
LB: loop body
LE: loop exit
PB: predicated region body
PF: predicated region fallthrough
CT: control target
= control target key end

     0   :  { %vm1276_vm0 = vcmask 523264   ;;  %s6980_s0 = inlined_call_operand.vmem [shape: f32[24,192], index: 0, kind: input, shape index: {}]   ;;  %s6981_s1 = inlined_call_operand.vmem [shape: bf16[192,2048], index: 1, kind: input, shape index: {}]   ;;  %s6982_s2 = inlined_call_operand.vmem [shape: bf16[2048,32], index: 2, kind: input, shape index: {}]   ;;  %s6983_s3 = inlined_call_operand.vmem [shape: bf16[96,256], index: 3, kind: input, shape index: {}]   ;;  %s6984_s4 = inlined_call_operand.vmem [shape: f32[224,256], index: 4, kind: input, shape index: {}]   ;;  %s6985_s5 = inlined_call_operand.vmem [shape: f32[8,2048], index: 5, kind: input, shape index: {}]   ;;  %s6986_s6 = inlined_call_operand.hbm [shape: f32[2,128], index: 6, kind: output, shape index: {}]  }
   0x1   :  { %v147_v0 = vld [vmem:[%s6981_s1 + $0x380] sm:$0xff]  ;;  %v148_v2 = vld [vmem:[%s6981_s1 + $0x388] sm:$0xff]  ;;  %v28_v44 = vld [vmem:[%s6980_s0 + $0x18] sm:$0xff] }
   0x2   :  { %v155_v1 = vld [vmem:[%s6981_s1 + $0x3c0] sm:$0xff]  ;;  %v156_v4 = vld [vmem:[%s6981_s1 + $0x3c8] sm:$0xff] }
   0x3   :  { %v4638_v3 = vcombine.high %v147_v0, %v155_v1  ;;  %v4637_v5 = vcombine.low %v147_v0, %v155_v1  ;;  %v131_v6 = vld [vmem:[%s6981_s1 + $0x300] sm:$0xff]  ;;  %v4640_v8 = vcombine.high %v148_v2, %v156_v4  ;;  %v4639_v9 = vcombine.low %v148_v2, %v156_v4  ;;  %v132_v11 = vld [vmem:[%s6981_s1 + $0x308] sm:$0xff] }
   0x4   :  { %v139_v7 = vld [vmem:[%s6981_s1 + $0x340] sm:$0xff]  ;;  %v140_v12 = vld [vmem:[%s6981_s1 + $0x348] sm:$0xff] }
   0x5   :  { %v4622_v10 = vcombine.high %v131_v6, %v139_v7  ;;  %v115_v13 = vld [vmem:[%s6981_s1 + $0x280] sm:$0xff]  ;;  %1283 = vmatprep.subr.bf16.mxu0 %v4638_v3  ;;  %v4624_v14 = vcombine.high %v132_v11, %v140_v12  ;;  %v116_v16 = vld [vmem:[%s6981_s1 + $0x288] sm:$0xff]  ;;  %1334 = vmatprep.subr.bf16.mxu1 %v4640_v8  ;;  %v4621_v18 = vcombine.low %v131_v6, %v139_v7 }
   0x6   :  { %v123_v15 = vld [vmem:[%s6981_s1 + $0x2c0] sm:$0xff]  ;;  %v124_v17 = vld [vmem:[%s6981_s1 + $0x2c8] sm:$0xff]  ;;  %1284 = vmatpush1.bf16.msra.mxu0 %v4637_v5  ;;  %1335 = vmatpush1.bf16.msra.mxu1 %v4639_v9  ;;  %v4623_v19 = vcombine.low %v132_v11, %v140_v12 }
   0x7   :  { %1285 = vmatprep.subr.bf16.mxu0 %v4622_v10  ;;  %v4606_v20 = vcombine.high %v115_v13, %v123_v15  ;;  %1336 = vmatprep.subr.bf16.mxu1 %v4624_v14  ;;  %v4608_v21 = vcombine.high %v116_v16, %v124_v17  ;;  %v99_v22 = vld [vmem:[%s6981_s1 + $0x200] sm:$0xff]  ;;  %v100_v24 = vld [vmem:[%s6981_s1 + $0x208] sm:$0xff]  ;;  %v4605_v26 = vcombine.low %v115_v13, %v123_v15 }
   0x8   :  { %v107_v23 = vld [vmem:[%s6981_s1 + $0x240] sm:$0xff]  ;;  %v108_v25 = vld [vmem:[%s6981_s1 + $0x248] sm:$0xff]  ;;  %v4607_v27 = vcombine.low %v116_v16, %v124_v17 }
   0x9   :  { %v4590_v28 = vcombine.high %v99_v22, %v107_v23  ;;  %v4592_v29 = vcombine.high %v100_v24, %v108_v25  ;;  %v83_v30 = vld [vmem:[%s6981_s1 + $0x180] sm:$0xff]  ;;  %v84_v32 = vld [vmem:[%s6981_s1 + $0x188] sm:$0xff]  ;;  %v4589_v34 = vcombine.low %v99_v22, %v107_v23  ;;  %v4591_v35 = vcombine.low %v100_v24, %v108_v25 }
   0xa   :  { %1286 = vmatpush1.bf16.msra.mxu0 %v4621_v18  ;;  %1337 = vmatpush1.bf16.msra.mxu1 %v4623_v19  ;;  %v91_v31 = vld [vmem:[%s6981_s1 + $0x1c0] sm:$0xff]  ;;  %v92_v33 = vld [vmem:[%s6981_s1 + $0x1c8] sm:$0xff] }
   0xb   :  { %1287 = vmatprep.subr.bf16.mxu0 %v4606_v20  ;;  %1338 = vmatprep.subr.bf16.mxu1 %v4608_v21  ;;  %v4574_v36 = vcombine.high %v83_v30, %v91_v31  ;;  %v4576_v37 = vcombine.high %v84_v32, %v92_v33  ;;  %v67_v38 = vld [vmem:[%s6981_s1 + $0x100] sm:$0xff]  ;;  %v68_v40 = vld [vmem:[%s6981_s1 + $0x108] sm:$0xff]  ;;  %v4573_v42 = vcombine.low %v83_v30, %v91_v31 }
   0xc   :  { %v75_v39 = vld [vmem:[%s6981_s1 + $0x140] sm:$0xff]  ;;  %v76_v41 = vld [vmem:[%s6981_s1 + $0x148] sm:$0xff]  ;;  %v4575_v45 = vcombine.low %v84_v32, %v92_v33  ;;  %v149_v33 = vld [vmem:[%s6981_s1 + $0x390] sm:$0xff] }
   0xd   :  { %v26_v43 = vld [vmem:[%s6980_s0 + $0x8] sm:$0xff]  ;;  %v4558_v46 = vcombine.high %v67_v38, %v75_v39  ;;  %v4560_v48 = vcombine.high %v68_v40, %v76_v41  ;;  %v51_v49 = vld [vmem:[%s6981_s1 + $0x80] sm:$0xff]  ;;  %v4557_v53 = vcombine.low %v67_v38, %v75_v39  ;;  %v4559_v54 = vcombine.low %v68_v40, %v76_v41  ;;  %v27_v39 = vld [vmem:[%s6980_s0 + $0x10] sm:$0xff] }
   0xe   :  { %1288 = vmatpush1.bf16.msra.mxu0 %v4605_v26  ;;  %1339 = vmatpush1.bf16.msra.mxu1 %v4607_v27  ;;  %v5567_v47 = vpack.c.bf16 %v28_v44, %v26_v43  ;;  %v59_v50 = vld [vmem:[%s6981_s1 + $0xc0] sm:$0xff]  ;;  %v52_v51 = vld [vmem:[%s6981_s1 + $0x88] sm:$0xff]  ;;  %v133_v43 = vld [vmem:[%s6981_s1 + $0x310] sm:$0xff] }
   0xf   :  { %1289 = vmatprep.subr.bf16.mxu0 %v4590_v28  ;;  %1340 = vmatprep.subr.bf16.mxu1 %v4592_v29  ;;  %v60_v52 = vld [vmem:[%s6981_s1 + $0xc8] sm:$0xff]  ;;  %v4542_v55 = vcombine.high %v51_v49, %v59_v50  ;;  %v35_v57 = vld [vmem:[%s6981_s1] sm:$0xff]  ;;  %v4541_v61 = vcombine.low %v51_v49, %v59_v50  ;;  %v141_v44 = vld [vmem:[%s6981_s1 + $0x350] sm:$0xff] }
  0x10   :  { %4717 = vmatprep.mubr.msk.bf16.mxu0 %vm1276_vm0, %v5567_v47  ;;  %4719 = vmatprep.mubr.msk.bf16.mxu1 %vm1276_vm0, %v5567_v47  ;;  %v4544_v56 = vcombine.high %v52_v51, %v60_v52  ;;  %v43_v58 = vld [vmem:[%s6981_s1 + $0x40] sm:$0xff]  ;;  %v36_v59 = vld [vmem:[%s6981_s1 + $0x8] sm:$0xff]  ;;  %v4543_v62 = vcombine.low %v52_v51, %v60_v52  ;;  %v4626_v52 = vcombine.high %v133_v43, %v141_v44 }
  0x11   :  { %v44_v60 = vld [vmem:[%s6981_s1 + $0x48] sm:$0xff]  ;;  %v4526_v63 = vcombine.high %v35_v57, %v43_v58  ;;  %v211_v1 = vld [vmem:[%s6981_s1 + $0x580] sm:$0xff]  ;;  %v4525_v5 = vcombine.low %v35_v57, %v43_v58  ;;  %v118_v57 = vld [vmem:[%s6981_s1 + $0x298] sm:$0xff] }
  0x12   :  { %1290 = vmatpush1.bf16.msra.mxu0 %v4589_v34  ;;  %1341 = vmatpush1.bf16.msra.mxu1 %v4591_v35  ;;  %v4528_v0 = vcombine.high %v36_v59, %v44_v60  ;;  %v219_v2 = vld [vmem:[%s6981_s1 + $0x5c0] sm:$0xff]  ;;  %v212_v3 = vld [vmem:[%s6981_s1 + $0x588] sm:$0xff]  ;;  %v4527_v6 = vcombine.low %v36_v59, %v44_v60  ;;  %v157_v34 = vld [vmem:[%s6981_s1 + $0x3d0] sm:$0xff]  ;;  %v4625_v59 = vcombine.low %v133_v43, %v141_v44 }
  0x13   :  { %1291 = vmatprep.subr.bf16.mxu0 %v4574_v36  ;;  %1342 = vmatprep.subr.bf16.mxu1 %v4576_v37  ;;  %v220_v4 = vld [vmem:[%s6981_s1 + $0x5c8] sm:$0xff]  ;;  %v4702_v7 = vcombine.high %v211_v1, %v219_v2  ;;  %v195_v9 = vld [vmem:[%s6981_s1 + $0x500] sm:$0xff]  ;;  %v4701_v13 = vcombine.low %v211_v1, %v219_v2  ;;  %v150_v35 = vld [vmem:[%s6981_s1 + $0x398] sm:$0xff]  ;;  %v4642_v41 = vcombine.high %v149_v33, %v157_v34 }
  0x14   :  { %v4704_v8 = vcombine.high %v212_v3, %v220_v4  ;;  %v203_v10 = vld [vmem:[%s6981_s1 + $0x540] sm:$0xff]  ;;  %v196_v11 = vld [vmem:[%s6981_s1 + $0x508] sm:$0xff]  ;;  %v4703_v14 = vcombine.low %v212_v3, %v220_v4  ;;  %v158_v36 = vld [vmem:[%s6981_s1 + $0x3d8] sm:$0xff]  ;;  %v4641_v50 = vcombine.low %v149_v33, %v157_v34 }
  0x15   :  { %v204_v12 = vld [vmem:[%s6981_s1 + $0x548] sm:$0xff]  ;;  %v4686_v15 = vcombine.high %v195_v9, %v203_v10  ;;  %v179_v17 = vld [vmem:[%s6981_s1 + $0x480] sm:$0xff]  ;;  %v4685_v21 = vcombine.low %v195_v9, %v203_v10  ;;  %v4643_v51 = vcombine.low %v150_v35, %v158_v36  ;;  %v126_v58 = vld [vmem:[%s6981_s1 + $0x2d8] sm:$0xff] }
  0x16   :  { %1292 = vmatpush1.bf16.msra.mxu0 %v4573_v42  ;;  %1343 = vmatpush1.bf16.msra.mxu1 %v4575_v45  ;;  %v4688_v16 = vcombine.high %v196_v11, %v204_v12  ;;  %v187_v18 = vld [vmem:[%s6981_s1 + $0x4c0] sm:$0xff]  ;;  %v180_v19 = vld [vmem:[%s6981_s1 + $0x488] sm:$0xff]  ;;  %v4687_v22 = vcombine.low %v196_v11, %v204_v12  ;;  %v4644_v42 = vcombine.high %v150_v35, %v158_v36  ;;  %v109_v1 = vld [vmem:[%s6981_s1 + $0x250] sm:$0xff] }
  0x17   :  { %1293 = vmatprep.subr.bf16.mxu0 %v4558_v46  ;;  %1344 = vmatprep.subr.bf16.mxu1 %v4560_v48  ;;  %v188_v20 = vld [vmem:[%s6981_s1 + $0x4c8] sm:$0xff]  ;;  %v4670_v23 = vcombine.high %v179_v17, %v187_v18  ;;  %v163_v25 = vld [vmem:[%s6981_s1 + $0x400] sm:$0xff]  ;;  %v4669_v29 = vcombine.low %v179_v17, %v187_v18  ;;  %v134_v46 = vld [vmem:[%s6981_s1 + $0x318] sm:$0xff] }
  0x18   :  { %v4672_v24 = vcombine.high %v180_v19, %v188_v20  ;;  %v171_v26 = vld [vmem:[%s6981_s1 + $0x440] sm:$0xff]  ;;  %v164_v27 = vld [vmem:[%s6981_s1 + $0x408] sm:$0xff]  ;;  %v4671_v30 = vcombine.low %v180_v19, %v188_v20  ;;  %v142_v48 = vld [vmem:[%s6981_s1 + $0x358] sm:$0xff] }
  0x19   :  { %v172_v28 = vld [vmem:[%s6981_s1 + $0x448] sm:$0xff]  ;;  %v4654_v31 = vcombine.high %v163_v25, %v171_v26  ;;  %v4653_v37 = vcombine.low %v163_v25, %v171_v26  ;;  %v25_v38 = vld [vmem:[%s6980_s0] sm:$0xff]  ;;  %v102_v2 = vld [vmem:[%s6981_s1 + $0x218] sm:$0xff] }
  0x1a   :  { %1294 = vmatpush1.bf16.msra.mxu0 %v4557_v53  ;;  %1345 = vmatpush1.bf16.msra.mxu1 %v4559_v54  ;;  %v4656_v32 = vcombine.high %v164_v27, %v172_v28  ;;  %v4655_v40 = vcombine.low %v164_v27, %v172_v28  ;;  %v5669_v45 = vpack.c.bf16 %v27_v39, %v25_v38  ;;  %v30_v49 = vld [vmem:[%s6980_s0 + $0x28] sm:$0xff]  ;;  %v117_v54 = vld [vmem:[%s6981_s1 + $0x290] sm:$0xff]  ;;  %v29_v60 = vld [vmem:[%s6980_s0 + $0x20] sm:$0xff] }
  0x1b   :  { %1295 = vmatprep.subr.bf16.mxu0 %v4542_v55  ;;  %1346 = vmatprep.subr.bf16.mxu1 %v4544_v56  ;;  %v4628_v53 = vcombine.high %v134_v46, %v142_v48  ;;  %v125_v55 = vld [vmem:[%s6981_s1 + $0x2d0] sm:$0xff]  ;;  %v5686_v56 = vpack.c.bf16 %v30_v49, %v30_v49  ;;  %v110_v3 = vld [vmem:[%s6981_s1 + $0x258] sm:$0xff]  ;;  %v5713_v4 = vpack.c.bf16 %v29_v60, %v29_v60 }
  0x1c   :  { %v85_v9 = vld [vmem:[%s6981_s1 + $0x190] sm:$0xff]  ;;  %v86_v11 = vld [vmem:[%s6981_s1 + $0x198] sm:$0xff] }
  0x1d   :  { %v93_v10 = vld [vmem:[%s6981_s1 + $0x1d0] sm:$0xff]  ;;  %v94_v12 = vld [vmem:[%s6981_s1 + $0x1d8] sm:$0xff] }
  0x1e   :  { %1296 = vmatpush1.bf16.msra.mxu0 %v4541_v61  ;;  %1347 = vmatpush1.bf16.msra.mxu1 %v4543_v62  ;;  %v4627_v61 = vcombine.low %v134_v46, %v142_v48  ;;  %v4610_v62 = vcombine.high %v117_v54, %v125_v55  ;;  %v69_v17 = vld [vmem:[%s6981_s1 + $0x110] sm:$0xff]  ;;  %v70_v19 = vld [vmem:[%s6981_s1 + $0x118] sm:$0xff] }
  0x1f   :  { %1297 = vmatprep.subr.bf16.mxu0 %v4526_v63  ;;  %1348 = vmatprep.subr.bf16.mxu1 %v4528_v0  ;;  %v4612_v63 = vcombine.high %v118_v57, %v126_v58  ;;  %v101_v0 = vld [vmem:[%s6981_s1 + $0x210] sm:$0xff]  ;;  %v78_v20 = vld [vmem:[%s6981_s1 + $0x158] sm:$0xff] }
  0x20   :  { %v77_v18 = vld [vmem:[%s6981_s1 + $0x150] sm:$0xff]  ;;  %v54_v26 = vld [vmem:[%s6981_s1 + $0x98] sm:$0xff]  ;;  %v4564_v28 = vcombine.high %v70_v19, %v78_v20 }
  0x21   :  { %v61_v25 = vld [vmem:[%s6981_s1 + $0xd0] sm:$0xff]  ;;  %v62_v27 = vld [vmem:[%s6981_s1 + $0xd8] sm:$0xff] }
  0x22   :  { %1298 = vmatpush1.bf16.msra.mxu0 %v4525_v5  ;;  %1349 = vmatpush1.bf16.msra.mxu1 %v4527_v6  ;;  %v4609_v5 = vcombine.low %v117_v54, %v125_v55  ;;  %v4611_v6 = vcombine.low %v118_v57, %v126_v58  ;;  %v38_v34 = vld [vmem:[%s6981_s1 + $0x18] sm:$0xff]  ;;  %v4548_v36 = vcombine.high %v54_v26, %v62_v27  ;;  %v213_v38 = vld [vmem:[%s6981_s1 + $0x590] sm:$0xff] }
  0x23   :  { %1307 = vmatprep.subr.bf16.mxu0 %v4702_v7  ;;  %1358 = vmatprep.subr.bf16.mxu1 %v4704_v8  ;;  %v4594_v7 = vcombine.high %v101_v0, %v109_v1  ;;  %v4596_v8 = vcombine.high %v102_v2, %v110_v3  ;;  %v46_v35 = vld [vmem:[%s6981_s1 + $0x58] sm:$0xff]  ;;  %v221_v39 = vld [vmem:[%s6981_s1 + $0x5d0] sm:$0xff] }
  0x24   :  { %v222_v43 = vld [vmem:[%s6981_s1 + $0x5d8] sm:$0xff]  ;;  %v4532_v44 = vcombine.high %v38_v34, %v46_v35  ;;  %v4531_v48 = vcombine.low %v38_v34, %v46_v35  ;;  %v4706_v49 = vcombine.high %v213_v38, %v221_v39  ;;  %v4705_v55 = vcombine.low %v213_v38, %v221_v39  ;;  %v181_v57 = vld [vmem:[%s6981_s1 + $0x490] sm:$0xff]  ;;  %v103_v34 = vld [vmem:[%s6981_s1 + $0x220] sm:$0xff] }
  0x25   :  { %v206_v54 = vld [vmem:[%s6981_s1 + $0x558] sm:$0xff]  ;;  %v189_v60 = vld [vmem:[%s6981_s1 + $0x4d0] sm:$0xff]  ;;  %v111_v35 = vld [vmem:[%s6981_s1 + $0x260] sm:$0xff] }
  0x26   :  { %1308 = vmatpush2.bf16.msra.mxu0 %v4701_v13  ;;  %1359 = vmatpush2.bf16.msra.mxu1 %v4703_v14  ;;  %v4593_v13 = vcombine.low %v101_v0, %v109_v1  ;;  %v4595_v14 = vcombine.low %v102_v2, %v110_v3  ;;  %v4674_v2 = vcombine.high %v181_v57, %v189_v60  ;;  %v165_v3 = vld [vmem:[%s6981_s1 + $0x410] sm:$0xff]  ;;  %v104_v38 = vld [vmem:[%s6981_s1 + $0x228] sm:$0xff] }
  0x27   :  { %1309 = vmatprep.subr.bf16.mxu0 %v4686_v15  ;;  %1360 = vmatprep.subr.bf16.mxu1 %v4688_v16  ;;  %v4578_v15 = vcombine.high %v85_v9, %v93_v10  ;;  %v4580_v16 = vcombine.high %v86_v11, %v94_v12  ;;  %v112_v39 = vld [vmem:[%s6981_s1 + $0x268] sm:$0xff] }
  0x2a   :  { %1310 = vmatpush2.bf16.msra.mxu0 %v4685_v21  ;;  %1361 = vmatpush2.bf16.msra.mxu1 %v4687_v22  ;;  %v4577_v21 = vcombine.low %v85_v9, %v93_v10  ;;  %v53_v22 = vld [vmem:[%s6981_s1 + $0x90] sm:$0xff]  ;;  %v4673_v9 = vcombine.low %v181_v57, %v189_v60  ;;  %v151_v10 = vld [vmem:[%s6981_s1 + $0x3a0] sm:$0xff]  ;;  %v72_v57 = vld [vmem:[%s6981_s1 + $0x128] sm:$0xff] }
  0x2b   :  { %1311 = vmatprep.subr.bf16.mxu0 %v4670_v23  ;;  %1362 = vmatprep.subr.bf16.mxu1 %v4672_v24  ;;  %v4579_v23 = vcombine.low %v86_v11, %v94_v12  ;;  %v4562_v24 = vcombine.high %v69_v17, %v77_v18  ;;  %v4546_v33 = vcombine.high %v53_v22, %v61_v25  ;;  %v159_v11 = vld [vmem:[%s6981_s1 + $0x3e0] sm:$0xff] }
  0x2e   :  { %1312 = vmatpush2.bf16.msra.mxu0 %v4669_v29  ;;  %1363 = vmatpush2.bf16.msra.mxu1 %v4671_v30  ;;  %v4561_v29 = vcombine.low %v69_v17, %v77_v18  ;;  %v37_v30 = vld [vmem:[%s6981_s1 + $0x10] sm:$0xff]  ;;  %v135_v18 = vld [vmem:[%s6981_s1 + $0x320] sm:$0xff] }
  0x2f   :  { %1313 = vmatprep.subr.bf16.mxu0 %v4654_v31  ;;  %1364 = vmatprep.subr.bf16.mxu1 %v4656_v32  ;;  %v45_v31 = vld [vmem:[%s6981_s1 + $0x50] sm:$0xff]  ;;  %v4563_v32 = vcombine.low %v70_v19, %v78_v20  ;;  %v143_v19 = vld [vmem:[%s6981_s1 + $0x360] sm:$0xff] }
  0x30   :  { %v4529_v46 = vcombine.low %v37_v30, %v45_v31 }
  0x32   :  { %1314 = vmatpush2.bf16.msra.mxu0 %v4653_v37  ;;  %1365 = vmatpush2.bf16.msra.mxu1 %v4655_v40  ;;  %v4545_v37 = vcombine.low %v53_v22, %v61_v25  ;;  %v4547_v40 = vcombine.low %v54_v26, %v62_v27  ;;  %v136_v22 = vld [vmem:[%s6981_s1 + $0x328] sm:$0xff]  ;;  %v4645_v25 = vcombine.low %v151_v10, %v159_v11  ;;  %v119_v26 = vld [vmem:[%s6981_s1 + $0x2a0] sm:$0xff] }
  0x33   :  { %1385 = vmatprep.subr.bf16.mxu0 %v4642_v41  ;;  %1436 = vmatprep.subr.bf16.mxu1 %v4644_v42  ;;  %v4530_v41 = vcombine.high %v37_v30, %v45_v31  ;;  %v214_v42 = vld [vmem:[%s6981_s1 + $0x598] sm:$0xff]  ;;  %v127_v27 = vld [vmem:[%s6981_s1 + $0x2e0] sm:$0xff]  ;;  %v120_v30 = vld [vmem:[%s6981_s1 + $0x2a8] sm:$0xff] }
  0x34   :  { %v4707_v58 = vcombine.low %v214_v42, %v222_v43  ;;  %v128_v31 = vld [vmem:[%s6981_s1 + $0x2e8] sm:$0xff] }
  0x35   :  { %1316 = vmatmul.mubr.bf16.vlgmr.msra.gmra.mxu0 %v5669_v45  ;;  %1367 = vmatmul.mubr.bf16.vlgmr.msra.gmra.mxu1 %v5669_v45 }
  0x36   :  { %1386 = vmatpush1.bf16.msra.mxu0 %v4641_v50  ;;  %1437 = vmatpush1.bf16.msra.mxu1 %v4643_v51  ;;  %v4708_v50 = vcombine.high %v214_v42, %v222_v43  ;;  %v197_v51 = vld [vmem:[%s6981_s1 + $0x510] sm:$0xff]  ;;  %v87_v42 = vld [vmem:[%s6981_s1 + $0x1a0] sm:$0xff] }
  0x37   :  { %1387 = vmatprep.subr.bf16.mxu0 %v4626_v52  ;;  %1438 = vmatprep.subr.bf16.mxu1 %v4628_v53  ;;  %v205_v52 = vld [vmem:[%s6981_s1 + $0x550] sm:$0xff]  ;;  %v198_v53 = vld [vmem:[%s6981_s1 + $0x518] sm:$0xff]  ;;  %v95_v43 = vld [vmem:[%s6981_s1 + $0x1e0] sm:$0xff] }
  0x38   :  { %4718 = vmatprep.mubr.msk.bf16.mxu0 %vm1276_vm0, %v5686_v56  ;;  %4720 = vmatprep.mubr.msk.bf16.mxu1 %vm1276_vm0, %v5686_v56  ;;  %v4689_v0 = vcombine.low %v197_v51, %v205_v52  ;;  %v4691_v1 = vcombine.low %v198_v53, %v206_v54  ;;  %v4581_v60 = vcombine.low %v87_v42, %v95_v43 }
  0x3a   :  { %1388 = vmatpush1.bf16.msra.mxu0 %v4625_v59  ;;  %1439 = vmatpush1.bf16.msra.mxu1 %v4627_v61  ;;  %v4690_v59 = vcombine.high %v197_v51, %v205_v52  ;;  %v4692_v61 = vcombine.high %v198_v53, %v206_v54  ;;  %v4597_v51 = vcombine.low %v103_v34, %v111_v35  ;;  %v71_v52 = vld [vmem:[%s6981_s1 + $0x120] sm:$0xff] }
  0x3b   :  { %1389 = vmatprep.subr.bf16.mxu0 %v4610_v62  ;;  %1440 = vmatprep.subr.bf16.mxu1 %v4612_v63  ;;  %v182_v62 = vld [vmem:[%s6981_s1 + $0x498] sm:$0xff]  ;;  %v79_v53 = vld [vmem:[%s6981_s1 + $0x160] sm:$0xff]  ;;  %v4599_v54 = vcombine.low %v104_v38, %v112_v39 }
  0x3c   :  { %v190_v63 = vld [vmem:[%s6981_s1 + $0x4d8] sm:$0xff] }
  0x3d   :  { %1326 = vmatmul.mubr.bf16.gmra.mxu0 %v5713_v4  ;;  %1377 = vmatmul.mubr.bf16.gmra.mxu1 %v5713_v4  ;;  %v4675_v12 = vcombine.low %v182_v62, %v190_v63 }
  0x3e   :  { %1390 = vmatpush1.bf16.msra.mxu0 %v4609_v5  ;;  %1441 = vmatpush1.bf16.msra.mxu1 %v4611_v6  ;;  %v4676_v5 = vcombine.high %v182_v62, %v190_v63  ;;  %v173_v6 = vld [vmem:[%s6981_s1 + $0x450] sm:$0xff]  ;;  %v63_v62 = vld [vmem:[%s6981_s1 + $0xe0] sm:$0xff] }
  0x3f   :  { %1391 = vmatprep.subr.bf16.mxu0 %v4594_v7  ;;  %1442 = vmatprep.subr.bf16.mxu1 %v4596_v8  ;;  %v166_v7 = vld [vmem:[%s6981_s1 + $0x418] sm:$0xff]  ;;  %v4657_v17 = vcombine.low %v165_v3, %v173_v6 }
  0x40   :  { %4721 = vmatprep.mubr.msk.bf16.mxu0 %vm1276_vm0, %v5567_v47  ;;  %4723 = vmatprep.mubr.msk.bf16.mxu1 %vm1276_vm0, %v5567_v47  ;;  %v174_v8 = vld [vmem:[%s6981_s1 + $0x458] sm:$0xff] }
  0x41   :  { %v4659_v20 = vcombine.low %v166_v7, %v174_v8 }
  0x42   :  { %1392 = vmatpush1.bf16.msra.mxu0 %v4593_v13  ;;  %1443 = vmatpush1.bf16.msra.mxu1 %v4595_v14  ;;  %v4658_v13 = vcombine.high %v165_v3, %v173_v6  ;;  %v152_v14 = vld [vmem:[%s6981_s1 + $0x3a8] sm:$0xff]  ;;  %v39_v6 = vld [vmem:[%s6981_s1 + $0x20] sm:$0xff] }
  0x43   :  { %1393 = vmatprep.subr.bf16.mxu0 %v4578_v15  ;;  %1444 = vmatprep.subr.bf16.mxu1 %v4580_v16  ;;  %v160_v15 = vld [vmem:[%s6981_s1 + $0x3e8] sm:$0xff]  ;;  %v4660_v16 = vcombine.high %v166_v7, %v174_v8  ;;  %v47_v7 = vld [vmem:[%s6981_s1 + $0x60] sm:$0xff] }
  0x46   :  { %1394 = vmatpush1.bf16.msra.mxu0 %v4577_v21  ;;  %1445 = vmatpush1.bf16.msra.mxu1 %v4579_v23  ;;  %v4646_v21 = vcombine.high %v151_v10, %v159_v11  ;;  %v144_v23 = vld [vmem:[%s6981_s1 + $0x368] sm:$0xff] }
  0x47   :  { %1395 = vmatprep.subr.bf16.mxu0 %v4562_v24  ;;  %1446 = vmatprep.subr.bf16.mxu1 %v4564_v28  ;;  %v4648_v24 = vcombine.high %v152_v14, %v160_v15  ;;  %v4647_v28 = vcombine.low %v152_v14, %v160_v15  ;;  %v40_v10 = vld [vmem:[%s6981_s1 + $0x28] sm:$0xff]  ;;  %v215_v14 = vld [vmem:[%s6981_s1 + $0x5a0] sm:$0xff] }
  0x48   :  { %v48_v11 = vld [vmem:[%s6981_s1 + $0x68] sm:$0xff]  ;;  %v223_v15 = vld [vmem:[%s6981_s1 + $0x5e0] sm:$0xff] }
  0x4a   :  { %1396 = vmatpush1.bf16.msra.mxu0 %v4561_v29  ;;  %1447 = vmatpush1.bf16.msra.mxu1 %v4563_v32  ;;  %v4630_v29 = vcombine.high %v135_v18, %v143_v19  ;;  %v4632_v32 = vcombine.high %v136_v22, %v144_v23 }
  0x4b   :  { %1397 = vmatprep.subr.bf16.mxu0 %v4546_v33  ;;  %1448 = vmatprep.subr.bf16.mxu1 %v4548_v36  ;;  %v4629_v33 = vcombine.low %v135_v18, %v143_v19  ;;  %v4631_v36 = vcombine.low %v136_v22, %v144_v23  ;;  %v216_v18 = vld [vmem:[%s6981_s1 + $0x5a8] sm:$0xff]  ;;  %v199_v22 = vld [vmem:[%s6981_s1 + $0x520] sm:$0xff] }
  0x4c   :  { %v224_v19 = vld [vmem:[%s6981_s1 + $0x5e8] sm:$0xff]  ;;  %v207_v23 = vld [vmem:[%s6981_s1 + $0x560] sm:$0xff] }
  0x4e   :  { %1398 = vmatpush1.bf16.msra.mxu0 %v4545_v37  ;;  %1449 = vmatpush1.bf16.msra.mxu1 %v4547_v40  ;;  %v4614_v37 = vcombine.high %v119_v26, %v127_v27  ;;  %v4616_v40 = vcombine.high %v120_v30, %v128_v31 }
  0x4f   :  { %1399 = vmatprep.subr.bf16.mxu0 %v4530_v41  ;;  %1450 = vmatprep.subr.bf16.mxu1 %v4532_v44  ;;  %v4613_v41 = vcombine.low %v119_v26, %v127_v27  ;;  %v4615_v44 = vcombine.low %v120_v30, %v128_v31  ;;  %v200_v26 = vld [vmem:[%s6981_s1 + $0x528] sm:$0xff]  ;;  %v4711_v30 = vcombine.low %v216_v18, %v224_v19 }
  0x50   :  { %v208_v27 = vld [vmem:[%s6981_s1 + $0x568] sm:$0xff]  ;;  %v4694_v31 = vcombine.high %v199_v22, %v207_v23 }
  0x52   :  { %1400 = vmatpush1.bf16.msra.mxu0 %v4529_v46  ;;  %1451 = vmatpush1.bf16.msra.mxu1 %v4531_v48  ;;  %v4598_v46 = vcombine.high %v103_v34, %v111_v35  ;;  %v88_v48 = vld [vmem:[%s6981_s1 + $0x1a8] sm:$0xff]  ;;  %v191_v34 = vld [vmem:[%s6981_s1 + $0x4e0] sm:$0xff] }
  0x53   :  { %1409 = vmatprep.subr.bf16.mxu0 %v4706_v49  ;;  %1460 = vmatprep.subr.bf16.mxu1 %v4708_v50  ;;  %v96_v49 = vld [vmem:[%s6981_s1 + $0x1e8] sm:$0xff]  ;;  %v4600_v50 = vcombine.high %v104_v38, %v112_v39  ;;  %v167_v38 = vld [vmem:[%s6981_s1 + $0x420] sm:$0xff]  ;;  %v4695_v39 = vcombine.low %v200_v26, %v208_v27 }
  0x54   :  { %v4583_v63 = vcombine.low %v88_v48, %v96_v49  ;;  %v184_v35 = vld [vmem:[%s6981_s1 + $0x4a8] sm:$0xff] }
  0x56   :  { %1410 = vmatpush2.bf16.msra.mxu0 %v4705_v55  ;;  %1461 = vmatpush2.bf16.msra.mxu1 %v4707_v58  ;;  %v4582_v55 = vcombine.high %v87_v42, %v95_v43  ;;  %v80_v58 = vld [vmem:[%s6981_s1 + $0x168] sm:$0xff]  ;;  %v175_v42 = vld [vmem:[%s6981_s1 + $0x460] sm:$0xff] }
  0x57   :  { %1411 = vmatprep.subr.bf16.mxu0 %v4690_v59  ;;  %1462 = vmatprep.subr.bf16.mxu1 %v4692_v61  ;;  %v4584_v59 = vcombine.high %v88_v48, %v96_v49  ;;  %v55_v61 = vld [vmem:[%s6981_s1 + $0xa0] sm:$0xff]  ;;  %v4568_v3 = vcombine.high %v72_v57, %v80_v58  ;;  %v4567_v8 = vcombine.low %v72_v57, %v80_v58  ;;  %v168_v43 = vld [vmem:[%s6981_s1 + $0x428] sm:$0xff]  ;;  %v153_v48 = vld [vmem:[%s6981_s1 + $0x3b0] sm:$0xff] }
  0x58   :  { %v137_v57 = vld [vmem:[%s6981_s1 + $0x330] sm:$0xff] }
  0x5a   :  { %1412 = vmatpush2.bf16.msra.mxu0 %v4689_v0  ;;  %1463 = vmatpush2.bf16.msra.mxu1 %v4691_v1  ;;  %v4566_v0 = vcombine.high %v71_v52, %v79_v53  ;;  %v56_v1 = vld [vmem:[%s6981_s1 + $0xa8] sm:$0xff] }
  0x5b   :  { %1413 = vmatprep.subr.bf16.mxu0 %v4674_v2  ;;  %1464 = vmatprep.subr.bf16.mxu1 %v4676_v5  ;;  %v64_v2 = vld [vmem:[%s6981_s1 + $0xe8] sm:$0xff]  ;;  %v4565_v5 = vcombine.low %v71_v52, %v79_v53  ;;  %v161_v52 = vld [vmem:[%s6981_s1 + $0x3f0] sm:$0xff]  ;;  %v154_v53 = vld [vmem:[%s6981_s1 + $0x3b8] sm:$0xff] }
  0x5e   :  { %1414 = vmatpush2.bf16.msra.mxu0 %v4673_v9  ;;  %1465 = vmatpush2.bf16.msra.mxu1 %v4675_v12  ;;  %v4550_v9 = vcombine.high %v55_v61, %v63_v62  ;;  %v4552_v12 = vcombine.high %v56_v1, %v64_v2 }
  0x5f   :  { %1415 = vmatprep.subr.bf16.mxu0 %v4658_v13  ;;  %1466 = vmatprep.subr.bf16.mxu1 %v4660_v16  ;;  %v4549_v13 = vcombine.low %v55_v61, %v63_v62  ;;  %v4551_v16 = vcombine.low %v56_v1, %v64_v2  ;;  %v145_v61 = vld [vmem:[%s6981_s1 + $0x370] sm:$0xff]  ;;  %v138_v62 = vld [vmem:[%s6981_s1 + $0x338] sm:$0xff] }
  0x60   :  { %v121_v1 = vld [vmem:[%s6981_s1 + $0x2b0] sm:$0xff] }
  0x61   :  { %v129_v2 = vld [vmem:[%s6981_s1 + $0x2f0] sm:$0xff] }
  0x62   :  { %1416 = vmatpush2.bf16.msra.mxu0 %v4657_v17  ;;  %1467 = vmatpush2.bf16.msra.mxu1 %v4659_v20  ;;  %v4534_v17 = vcombine.high %v39_v6, %v47_v7  ;;  %v4536_v20 = vcombine.high %v40_v10, %v48_v11 }
  0x63   :  { %1487 = vmatprep.subr.bf16.mxu0 %v4646_v21  ;;  %1538 = vmatprep.subr.bf16.mxu1 %v4648_v24  ;;  %v4533_v21 = vcombine.low %v39_v6, %v47_v7  ;;  %v4535_v24 = vcombine.low %v40_v10, %v48_v11  ;;  %v122_v6 = vld [vmem:[%s6981_s1 + $0x2b8] sm:$0xff]  ;;  %v105_v10 = vld [vmem:[%s6981_s1 + $0x230] sm:$0xff] }
  0x64   :  { %v113_v11 = vld [vmem:[%s6981_s1 + $0x270] sm:$0xff] }
  0x65   :  { %1418 = vmatmul.mubr.bf16.vlgmr.msra.gmra.mxu0 %v5669_v45  ;;  %1469 = vmatmul.mubr.bf16.vlgmr.msra.gmra.mxu1 %v5669_v45 }
  0x66   :  { %1488 = vmatpush1.bf16.msra.mxu0 %v4645_v25  ;;  %1539 = vmatpush1.bf16.msra.mxu1 %v4647_v28  ;;  %v4710_v25 = vcombine.high %v215_v14, %v223_v15  ;;  %v4712_v28 = vcombine.high %v216_v18, %v224_v19  ;;  %v89_v18 = vld [vmem:[%s6981_s1 + $0x1b0] sm:$0xff] }
  0x67   :  { %1489 = vmatprep.subr.bf16.mxu0 %v4630_v29  ;;  %1540 = vmatprep.subr.bf16.mxu1 %v4632_v32  ;;  %v4709_v29 = vcombine.low %v215_v14, %v223_v15  ;;  %v4696_v32 = vcombine.high %v200_v26, %v208_v27  ;;  %v106_v14 = vld [vmem:[%s6981_s1 + $0x238] sm:$0xff]  ;;  %v97_v19 = vld [vmem:[%s6981_s1 + $0x1f0] sm:$0xff] }
  0x68   :  { %4722 = vmatprep.mubr.msk.bf16.mxu0 %vm1276_vm0, %v5686_v56  ;;  %4724 = vmatprep.mubr.msk.bf16.mxu1 %vm1276_vm0, %v5686_v56  ;;  %v114_v15 = vld [vmem:[%s6981_s1 + $0x278] sm:$0xff]  ;;  %v73_v26 = vld [vmem:[%s6981_s1 + $0x130] sm:$0xff] }
  0x69   :  { %v81_v27 = vld [vmem:[%s6981_s1 + $0x170] sm:$0xff] }
  0x6a   :  { %1490 = vmatpush1.bf16.msra.mxu0 %v4629_v33  ;;  %1541 = vmatpush1.bf16.msra.mxu1 %v4631_v36  ;;  %v183_v33 = vld [vmem:[%s6981_s1 + $0x4a0] sm:$0xff]  ;;  %v192_v36 = vld [vmem:[%s6981_s1 + $0x4e8] sm:$0xff] }
  0x6b   :  { %1491 = vmatprep.subr.bf16.mxu0 %v4614_v37  ;;  %1542 = vmatprep.subr.bf16.mxu1 %v4616_v40  ;;  %v4693_v37 = vcombine.low %v199_v22, %v207_v23  ;;  %v4678_v40 = vcombine.high %v183_v33, %v191_v34  ;;  %v4679_v49 = vcombine.low %v184_v35, %v192_v36  ;;  %v90_v22 = vld [vmem:[%s6981_s1 + $0x1b8] sm:$0xff] }
  0x6c   :  { %v98_v23 = vld [vmem:[%s6981_s1 + $0x1f8] sm:$0xff] }
  0x6d   :  { %1428 = vmatmul.mubr.bf16.gmra.mxu0 %v5713_v4  ;;  %1479 = vmatmul.mubr.bf16.gmra.mxu1 %v5713_v4 }
  0x6e   :  { %1492 = vmatpush1.bf16.msra.mxu0 %v4613_v41  ;;  %1543 = vmatpush1.bf16.msra.mxu1 %v4615_v44  ;;  %v4680_v41 = vcombine.high %v184_v35, %v192_v36  ;;  %v176_v44 = vld [vmem:[%s6981_s1 + $0x468] sm:$0xff]  ;;  %v65_v35 = vld [vmem:[%s6981_s1 + $0xf0] sm:$0xff]  ;;  %v4587_v36 = vcombine.low %v90_v22, %v98_v23 }
  0x6f   :  { %1493 = vmatprep.subr.bf16.mxu0 %v4598_v46  ;;  %1544 = vmatprep.subr.bf16.mxu1 %v4600_v50  ;;  %v4677_v46 = vcombine.low %v183_v33, %v191_v34  ;;  %v4662_v50 = vcombine.high %v167_v38, %v175_v42  ;;  %v4663_v58 = vcombine.low %v168_v43, %v176_v44  ;;  %v57_v34 = vld [vmem:[%s6981_s1 + $0xb0] sm:$0xff] }
  0x70   :  { %4725 = vmatprep.mubr.msk.bf16.mxu0 %vm1276_vm0, %v5567_v47  ;;  %4727 = vmatprep.mubr.msk.bf16.mxu1 %vm1276_vm0, %v5567_v47  ;;  %v4585_v33 = vcombine.low %v89_v18, %v97_v19 }
  0x72   :  { %1494 = vmatpush1.bf16.msra.mxu0 %v4597_v51  ;;  %1545 = vmatpush1.bf16.msra.mxu1 %v4599_v54  ;;  %v4664_v51 = vcombine.high %v168_v43, %v176_v44  ;;  %v162_v54 = vld [vmem:[%s6981_s1 + $0x3f8] sm:$0xff]  ;;  %v4554_v44 = vcombine.high %v57_v34, %v65_v35 }
  0x73   :  { %1495 = vmatprep.subr.bf16.mxu0 %v4582_v55  ;;  %1546 = vmatprep.subr.bf16.mxu1 %v4584_v59  ;;  %v4661_v55 = vcombine.low %v167_v38, %v175_v42  ;;  %v4650_v59 = vcombine.high %v153_v48, %v161_v52  ;;  %v58_v38 = vld [vmem:[%s6981_s1 + $0xb8] sm:$0xff]  ;;  %v49_v42 = vld [vmem:[%s6981_s1 + $0x70] sm:$0xff] }
  0x76   :  { %1496 = vmatpush1.bf16.msra.mxu0 %v4581_v60  ;;  %1547 = vmatpush1.bf16.msra.mxu1 %v4583_v63  ;;  %v4652_v60 = vcombine.high %v154_v53, %v162_v54  ;;  %v146_v63 = vld [vmem:[%s6981_s1 + $0x378] sm:$0xff] }
  0x77   :  { %1497 = vmatprep.subr.bf16.mxu0 %v4566_v0  ;;  %1548 = vmatprep.subr.bf16.mxu1 %v4568_v3  ;;  %v4649_v0 = vcombine.low %v153_v48, %v161_v52  ;;  %v4651_v3 = vcombine.low %v154_v53, %v162_v54  ;;  %v4636_v7 = vcombine.high %v138_v62, %v146_v63  ;;  %v50_v48 = vld [vmem:[%s6981_s1 + $0x78] sm:$0xff]  ;;  %v225_v52 = vld [vmem:[%s6981_s1 + $0x5f0] sm:$0xff] }
  0x7a   :  { %1498 = vmatpush1.bf16.msra.mxu0 %v4565_v5  ;;  %1549 = vmatpush1.bf16.msra.mxu1 %v4567_v8  ;;  %v4634_v5 = vcombine.high %v137_v57, %v145_v61  ;;  %v130_v8 = vld [vmem:[%s6981_s1 + $0x2f8] sm:$0xff] }
  0x7b   :  { %1499 = vmatprep.subr.bf16.mxu0 %v4550_v9  ;;  %1550 = vmatprep.subr.bf16.mxu1 %v4552_v12  ;;  %v4633_v9 = vcombine.low %v137_v57, %v145_v61  ;;  %v4635_v12 = vcombine.low %v138_v62, %v146_v63  ;;  %v226_v57 = vld [vmem:[%s6981_s1 + $0x5f8] sm:$0xff]  ;;  %v209_v61 = vld [vmem:[%s6981_s1 + $0x570] sm:$0xff] }
  0x7e   :  { %1500 = vmatpush1.bf16.msra.mxu0 %v4549_v13  ;;  %1551 = vmatpush1.bf16.msra.mxu1 %v4551_v16  ;;  %v4618_v13 = vcombine.high %v121_v1, %v129_v2  ;;  %v4620_v16 = vcombine.high %v122_v6, %v130_v8 }
  0x7f   :  { %1501 = vmatprep.subr.bf16.mxu0 %v4534_v17  ;;  %1552 = vmatprep.subr.bf16.mxu1 %v4536_v20  ;;  %v4617_v17 = vcombine.low %v121_v1, %v129_v2  ;;  %v4619_v20 = vcombine.low %v122_v6, %v130_v8  ;;  %v210_v1 = vld [vmem:[%s6981_s1 + $0x578] sm:$0xff] }
  0x82   :  { %1502 = vmatpush1.bf16.msra.mxu0 %v4533_v21  ;;  %1553 = vmatpush1.bf16.msra.mxu1 %v4535_v24  ;;  %v4602_v21 = vcombine.high %v105_v10, %v113_v11  ;;  %v4604_v24 = vcombine.high %v106_v14, %v114_v15 }
  0x83   :  { %1511 = vmatprep.subr.bf16.mxu0 %v4710_v25  ;;  %1562 = vmatprep.subr.bf16.mxu1 %v4712_v28  ;;  %v4601_v25 = vcombine.low %v105_v10, %v113_v11  ;;  %v4603_v28 = vcombine.low %v106_v14, %v114_v15 }
  0x86   :  { %1512 = vmatpush2.bf16.msra.mxu0 %v4709_v29  ;;  %1563 = vmatpush2.bf16.msra.mxu1 %v4711_v30  ;;  %v4586_v29 = vcombine.high %v89_v18, %v97_v19  ;;  %v74_v30 = vld [vmem:[%s6981_s1 + $0x138] sm:$0xff] }
  0x87   :  { %1513 = vmatprep.subr.bf16.mxu0 %v4694_v31  ;;  %1564 = vmatprep.subr.bf16.mxu1 %v4696_v32  ;;  %v82_v31 = vld [vmem:[%s6981_s1 + $0x178] sm:$0xff]  ;;  %v4588_v32 = vcombine.high %v90_v22, %v98_v23 }
  0x88   :  { %v4571_v43 = vcombine.low %v74_v30, %v82_v31 }
  0x8a   :  { %1514 = vmatpush2.bf16.msra.mxu0 %v4693_v37  ;;  %1565 = vmatpush2.bf16.msra.mxu1 %v4695_v39  ;;  %v4570_v37 = vcombine.high %v73_v26, %v81_v27  ;;  %v4572_v39 = vcombine.high %v74_v30, %v82_v31 }
  0x8b   :  { %1515 = vmatprep.subr.bf16.mxu0 %v4678_v40  ;;  %1566 = vmatprep.subr.bf16.mxu1 %v4680_v41  ;;  %v4569_v40 = vcombine.low %v73_v26, %v81_v27  ;;  %v41_v41 = vld [vmem:[%s6981_s1 + $0x30] sm:$0xff] }
  0x8c   :  { %v4538_v54 = vcombine.high %v41_v41, %v49_v42 }
  0x8e   :  { %1516 = vmatpush2.bf16.msra.mxu0 %v4677_v46  ;;  %1567 = vmatpush2.bf16.msra.mxu1 %v4679_v49  ;;  %v42_v46 = vld [vmem:[%s6981_s1 + $0x38] sm:$0xff] }
  0x8f   :  { %1517 = vmatprep.subr.bf16.mxu0 %v4662_v50  ;;  %1568 = vmatprep.subr.bf16.mxu1 %v4664_v51  ;;  %v4553_v50 = vcombine.low %v57_v34, %v65_v35  ;;  %v217_v51 = vld [vmem:[%s6981_s1 + $0x5b0] sm:$0xff]  ;;  %v4539_v62 = vcombine.low %v42_v46, %v50_v48 }
  0x90   :  { %v4714_v63 = vcombine.high %v217_v51, %v225_v52 }
  0x92   :  { %1518 = vmatpush2.bf16.msra.mxu0 %v4661_v55  ;;  %1569 = vmatpush2.bf16.msra.mxu1 %v4663_v58  ;;  %v218_v55 = vld [vmem:[%s6981_s1 + $0x5b8] sm:$0xff]  ;;  %v4540_v58 = vcombine.high %v42_v46, %v50_v48 }
  0x93   :  { %1589 = vmatprep.subr.bf16.mxu0 %v4650_v59  ;;  %1640 = vmatprep.subr.bf16.mxu1 %v4652_v60  ;;  %v4537_v59 = vcombine.low %v41_v41, %v49_v42  ;;  %v201_v60 = vld [vmem:[%s6981_s1 + $0x530] sm:$0xff]  ;;  %v4716_v2 = vcombine.high %v218_v55, %v226_v57 }
  0x94   :  { %v4698_v6 = vcombine.high %v201_v60, %v209_v61 }
  0x95   :  { %1520 = vmatmul.mubr.bf16.vlgmr.msra.gmra.mxu0 %v5669_v45  ;;  %1571 = vmatmul.mubr.bf16.vlgmr.msra.gmra.mxu1 %v5669_v45 }
  0x96   :  { %1590 = vmatpush1.bf16.msra.mxu0 %v4649_v0  ;;  %1641 = vmatpush1.bf16.msra.mxu1 %v4651_v3  ;;  %v202_v0 = vld [vmem:[%s6981_s1 + $0x538] sm:$0xff]  ;;  %v4713_v3 = vcombine.low %v217_v51, %v225_v52 }
  0x97   :  { %1591 = vmatprep.subr.bf16.mxu0 %v4634_v5  ;;  %1642 = vmatprep.subr.bf16.mxu1 %v4636_v7  ;;  %v4715_v5 = vcombine.low %v218_v55, %v226_v57 }
  0x98   :  { %4726 = vmatprep.mubr.msk.bf16.mxu0 %vm1276_vm0, %v5686_v56  ;;  %4728 = vmatprep.mubr.msk.bf16.mxu1 %vm1276_vm0, %v5686_v56 }
  0x9a   :  { %1592 = vmatpush1.bf16.msra.mxu0 %v4633_v9  ;;  %1643 = vmatpush1.bf16.msra.mxu1 %v4635_v12 }
  0x9b   :  { %1593 = vmatprep.subr.bf16.mxu0 %v4618_v13  ;;  %1644 = vmatprep.subr.bf16.mxu1 %v4620_v16 }
  0x9d   :  { %1530 = vmatmul.mubr.bf16.gmra.mxu0 %v5713_v4  ;;  %1581 = vmatmul.mubr.bf16.gmra.mxu1 %v5713_v4 }
  0x9e   :  { %1594 = vmatpush1.bf16.msra.mxu0 %v4617_v17  ;;  %1645 = vmatpush1.bf16.msra.mxu1 %v4619_v20 }
  0x9f   :  { %1595 = vmatprep.subr.bf16.mxu0 %v4602_v21  ;;  %1646 = vmatprep.subr.bf16.mxu1 %v4604_v24 }
  0xa0   :  { %4729 = vmatprep.mubr.msk.bf16.mxu0 %vm1276_vm0, %v5567_v47  ;;  %4731 = vmatprep.mubr.msk.bf16.mxu1 %vm1276_vm0, %v5567_v47  ;;  %v66_v47 = vld [vmem:[%s6981_s1 + $0xf8] sm:$0xff] }
  0xa1   :  { %v4556_v49 = vcombine.high %v58_v38, %v66_v47  ;;  %v4555_v53 = vcombine.low %v58_v38, %v66_v47 }
  0xa2   :  { %1596 = vmatpush1.bf16.msra.mxu0 %v4601_v25  ;;  %1647 = vmatpush1.bf16.msra.mxu1 %v4603_v28 }
  0xa3   :  { %1597 = vmatprep.subr.bf16.mxu0 %v4586_v29  ;;  %1648 = vmatprep.subr.bf16.mxu1 %v4588_v32 }
  0xa6   :  { %1598 = vmatpush1.bf16.msra.mxu0 %v4585_v33  ;;  %1649 = vmatpush1.bf16.msra.mxu1 %v4587_v36 }
  0xa7   :  { %1599 = vmatprep.subr.bf16.mxu0 %v4570_v37  ;;  %1650 = vmatprep.subr.bf16.mxu1 %v4572_v39 }
  0xaa   :  { %1600 = vmatpush1.bf16.msra.mxu0 %v4569_v40  ;;  %1651 = vmatpush1.bf16.msra.mxu1 %v4571_v43 }
  0xab   :  { %1601 = vmatprep.subr.bf16.mxu0 %v4554_v44  ;;  %1652 = vmatprep.subr.bf16.mxu1 %v4556_v49 }
  0xae   :  { %1602 = vmatpush1.bf16.msra.mxu0 %v4553_v50  ;;  %1653 = vmatpush1.bf16.msra.mxu1 %v4555_v53 }
  0xaf   :  { %1603 = vmatprep.subr.bf16.mxu0 %v4538_v54  ;;  %1654 = vmatprep.subr.bf16.mxu1 %v4540_v58 }
  0xb2   :  { %1604 = vmatpush1.bf16.msra.mxu0 %v4537_v59  ;;  %1655 = vmatpush1.bf16.msra.mxu1 %v4539_v62 }
  0xb3   :  { %1613 = vmatprep.subr.bf16.mxu0 %v4714_v63 }
  0xb4   :  { %11 = vsyncpa [#allocation3], 0  ;;  %1664 = vmatprep.subr.bf16.mxu1 %v4716_v2  ;;  %v4700_v7 = vcombine.high %v202_v0, %v210_v1  ;;  %v185_v8 = vld [vmem:[%s6981_s1 + $0x4b0] sm:$0xff]  ;;  %v186_v10 = vld [vmem:[%s6981_s1 + $0x4b8] sm:$0xff]  ;;  %v4697_v12 = vcombine.low %v201_v60, %v209_v61  ;;  %v4699_v13 = vcombine.low %v202_v0, %v210_v1  ;;  %v236_v59 = vlaneseq  ;;  %s5450_s25 = smov 64   ;;  %s5451_s26 = smov 32  }
  0xb5   :  { %v193_v9 = vld [vmem:[%s6981_s1 + $0x4f0] sm:$0xff]  ;;  %v194_v11 = vld [vmem:[%s6981_s1 + $0x4f8] sm:$0xff]  ;;  %v5210_v34 = vld [vmem:[%s6982_s2 + $0x28] sm:$0xff]   ;;  %vm3258_vm1 = vcmask 261120   ;;  %vm5452_vm2 = vmmov 0   ;;  %vm3987_vm3 = vcmask 1041408  }
  0xb6   :  { %1614 = vmatpush2.bf16.msra.mxu0 %v4713_v3  ;;  %1665 = vmatpush2.bf16.msra.mxu1 %v4715_v5  ;;  %v4682_v14 = vcombine.high %v185_v8, %v193_v9  ;;  %v4684_v15 = vcombine.high %v186_v10, %v194_v11  ;;  %v169_v16 = vld [vmem:[%s6981_s1 + $0x430] sm:$0xff]  ;;  %v170_v18 = vld [vmem:[%s6981_s1 + $0x438] sm:$0xff]  ;;  %v4681_v20 = vcombine.low %v185_v8, %v193_v9  ;;  %v5211_v35 = vld [vmem:[%s6982_s2 + $0xa8] sm:$0xff]   ;;  %v6241_v60 = vshrl.u32 %v236_v59, 7  ;;  %s5453_s28 = smov [#allocation2]  }
  0xb7   :  { %1615 = vmatprep.subr.bf16.mxu0 %v4698_v6  ;;  %1666 = vmatprep.subr.bf16.mxu1 %v4700_v7  ;;  %v177_v17 = vld [vmem:[%s6981_s1 + $0x470] sm:$0xff]  ;;  %v178_v19 = vld [vmem:[%s6981_s1 + $0x478] sm:$0xff]  ;;  %v4683_v21 = vcombine.low %v186_v10, %v194_v11  ;;  %v5212_v36 = vld [vmem:[%s6982_s2 + $0x60] sm:$0xff]   ;;  %s4515_s29 = sshll.u32 %s5453_s28, 4  ;;  %s4516_s29 = int_to_ptr.vmem [resolvable:$true] %s4515_s29 }
  0xb8   :  { %v4666_v22 = vcombine.high %v169_v16, %v177_v17  ;;  %v4668_v23 = vcombine.high %v170_v18, %v178_v19  ;;  %v4665_v24 = vcombine.low %v169_v16, %v177_v17  ;;  %v4667_v25 = vcombine.low %v170_v18, %v178_v19  ;;  %v5200_v26 = vld [vmem:[%s6982_s2 + $0x78] sm:$0xff]   ;;  %v5204_v30 = vld [vmem:[%s6982_s2 + $0x70] sm:$0xff]   ;;  %v5213_v37 = vld [vmem:[%s6982_s2 + $0xe0] sm:$0xff]   ;;  %p5431_p1 = scmp.lt.s32.totalorder %s4516_s29, %s4516_s29 }
  0xb9   :  { %v5201_v27 = vld [vmem:[%s6982_s2 + $0xf8] sm:$0xff]   ;;  %v5205_v31 = vld [vmem:[%s6982_s2 + $0xf0] sm:$0xff]   ;;  %v5214_v38 = vld [vmem:[%s6982_s2 + $0x20] sm:$0xff]   ;;  %v246_v0 = vsub.s32 2, %v6241_v60  ;;  %v6253_v1 = vsub.s32 1, %v6241_v60  ;;  %v6256_v2 = vsub.s32 0, %v6241_v60 }
  0xba   :  { %1616 = vmatpush2.bf16.msra.mxu0 %v4697_v12  ;;  %1667 = vmatpush2.bf16.msra.mxu1 %v4699_v13  ;;  %v5202_v28 = vld [vmem:[%s6982_s2 + $0x38] sm:$0xff]   ;;  %v5206_v32 = vld [vmem:[%s6982_s2 + $0x30] sm:$0xff]   ;;  %v5215_v47 = vld [vmem:[%s6982_s2 + $0xa0] sm:$0xff]   ;;  %v250_v3 = vsub.s32 3, %v6241_v60 }
  0xbb   :  { %1617 = vmatprep.subr.bf16.mxu0 %v4682_v14  ;;  %1668 = vmatprep.subr.bf16.mxu1 %v4684_v15  ;;  %v5203_v29 = vld [vmem:[%s6982_s2 + $0xb8] sm:$0xff]   ;;  %v5207_v33 = vld [vmem:[%s6982_s2 + $0xb0] sm:$0xff]   ;;  %v5224_v48 = vld [vmem:[%s6982_s2 + $0x48] sm:$0xff]  }
  0xbc   :  { %v5216_v39 = vld [vmem:[%s6982_s2 + $0x58] sm:$0xff]   ;;  %v5220_v42 = vld [vmem:[%s6982_s2 + $0x50] sm:$0xff]   ;;  %v5225_v49 = vld [vmem:[%s6982_s2 + $0xc8] sm:$0xff]  }
  0xbd   :  { %v5218_v40 = vld [vmem:[%s6982_s2 + $0x18] sm:$0xff]   ;;  %v5221_v43 = vld [vmem:[%s6982_s2 + $0xd0] sm:$0xff]   ;;  %v5226_v50 = vld [vmem:[%s6982_s2 + $0x8] sm:$0xff]  }
  0xbe   :  { %1618 = vmatpush2.bf16.msra.mxu0 %v4681_v20  ;;  %1669 = vmatpush2.bf16.msra.mxu1 %v4683_v21  ;;  %v5219_v41 = vld [vmem:[%s6982_s2 + $0x98] sm:$0xff]   ;;  %v5222_v44 = vld [vmem:[%s6982_s2 + $0x10] sm:$0xff]   ;;  %v5227_v51 = vld [vmem:[%s6982_s2 + $0x88] sm:$0xff]  }
  0xbf   :  { %1619 = vmatprep.subr.bf16.mxu0 %v4666_v22  ;;  %1670 = vmatprep.subr.bf16.mxu1 %v4668_v23  ;;  %v5223_v46 = vld [vmem:[%s6982_s2 + $0x90] sm:$0xff]   ;;  %v5228_v52 = vld [vmem:[%s6982_s2 + $0x40] sm:$0xff]   ;;  %v5232_v57 = vld [vmem:[%s6982_s2 + $0x178] sm:$0xff]  }
  0xc0   :  { %v5229_v53 = vld [vmem:[%s6982_s2 + $0xc0] sm:$0xff]   ;;  %v5233_v58 = vld [vmem:[%s6982_s2 + $0x1f8] sm:$0xff]  }
  0xc1   :  { %v5230_v54 = vld [vmem:[%s6982_s2] sm:$0xff]  }
  0xc2   :  { %1620 = vmatpush2.bf16.msra.mxu0 %v4665_v24  ;;  %1671 = vmatpush2.bf16.msra.mxu1 %v4667_v25  ;;  %v5231_v55 = vld [vmem:[%s6982_s2 + $0x80] sm:$0xff]  }
  0xc3   :  { %4898 = vmatprep.subr.bf16.mxu0 %v5200_v26  ;;  %4926 = vmatprep.subr.bf16.mxu1 %v5201_v27  ;;  %v227_v61 = vld [vmem:[%s6985_s5] ss:$8 sm:$0xf] }
  0xc4   :  { %v228_v62 = vld [vmem:[%s6985_s5] ss:$8 sm:$0xf0] }
  0xc5   :  { %1622 = vmatmul.mubr.bf16.vlgmr.msra.gmra.mxu0 %v5669_v45  ;;  %1673 = vmatmul.mubr.bf16.vlgmr.msra.gmra.mxu1 %v5669_v45  ;;  %v5208_v45 = vld [vmem:[%s6982_s2 + $0x68] sm:$0xff]   ;;  %v6249_v63 = vor.u32 %v228_v62, %v227_v61 }
  0xc6   :  { %4730 = vmatprep.mubr.msk.bf16.mxu0 %vm1276_vm0, %v5686_v56  ;;  %4732 = vmatprep.mubr.msk.bf16.mxu1 %vm1276_vm0, %v5686_v56  ;;  %v5209_v56 = vld [vmem:[%s6982_s2 + $0xe8] sm:$0xff]  }
  0xc7   :  { %4899 = vmatpush3.bf16.msra.mxu0 %v5202_v28  ;;  %4927 = vmatpush3.bf16.msra.mxu1 %v5203_v29  ;;  %v247_v6 = vrot.slane %v6249_v63, %v246_v0  ;;  %v243_v8 = vrot.slane %v6249_v63, %v6253_v1  ;;  %v239_v9 = vrot.slane %v6249_v63, %v6256_v2  ;;  %v5240_v61 = vld [vmem:[%s6982_s2 + $0x168] sm:$0xff]  }
  0xc8   :  { %4900 = vmatprep.subr.bf16.mxu0 %v5204_v30  ;;  %4928 = vmatprep.subr.bf16.mxu1 %v5205_v31  ;;  %v251_v11 = vrot.slane %v6249_v63, %v250_v3  ;;  %v5241_v62 = vld [vmem:[%s6982_s2 + $0x1e8] sm:$0xff]  }
  0xcb   :  { %4901 = vmatpush3.bf16.msra.mxu0 %v5206_v32  ;;  %4929 = vmatpush3.bf16.msra.mxu1 %v5207_v33 }
  0xcc   :  { %4902 = vmatprep.subr.bf16.mxu0 %v5208_v45  ;;  %4930 = vmatprep.subr.bf16.mxu1 %v5209_v56 }
  0xcd   :  { %1632 = vmatmul.mubr.bf16.gmra.mxu0 %v5713_v4  ;;  %1683 = vmatmul.mubr.bf16.gmra.mxu1 %v5713_v4  ;;  %v5217_v4 = vld [vmem:[%s6982_s2 + $0xd8] sm:$0xff]  }
  0xcf   :  { %4903 = vmatpush3.bf16.msra.mxu0 %v5210_v34  ;;  %4931 = vmatpush3.bf16.msra.mxu1 %v5211_v35 }
  0xd0   :  { %4904 = vmatprep.subr.bf16.mxu0 %v5212_v36  ;;  %4932 = vmatprep.subr.bf16.mxu1 %v5213_v37  ;;  %v5234_v36 = vld [vmem:[%s6982_s2 + $0x138] sm:$0xff]  }
  0xd3   :  { %4905 = vmatpush3.bf16.msra.mxu0 %v5214_v38  ;;  %4933 = vmatpush3.bf16.msra.mxu1 %v5215_v47 }
  0xd4   :  { %4906 = vmatprep.subr.bf16.mxu0 %v5216_v39  ;;  %4934 = vmatprep.subr.bf16.mxu1 %v5217_v4 }
  0xd7   :  { %4907 = vmatpush3.bf16.msra.mxu0 %v5218_v40  ;;  %4935 = vmatpush3.bf16.msra.mxu1 %v5219_v41  ;;  %v5235_v40 = vld [vmem:[%s6982_s2 + $0x1b8] sm:$0xff]   ;;  %v5236_v41 = vld [vmem:[%s6982_s2 + $0x170] sm:$0xff]  }
  0xd8   :  { %4908 = vmatprep.subr.bf16.mxu0 %v5220_v42  ;;  %4936 = vmatprep.subr.bf16.mxu1 %v5221_v43 }
  0xdb   :  { %4909 = vmatpush3.bf16.msra.mxu0 %v5222_v44  ;;  %4937 = vmatpush3.bf16.msra.mxu1 %v5223_v46 }
  0xdc   :  { %4910 = vmatprep.subr.bf16.mxu0 %v5224_v48  ;;  %4938 = vmatprep.subr.bf16.mxu1 %v5225_v49  ;;  %v5237_v48 = vld [vmem:[%s6982_s2 + $0x1f0] sm:$0xff]  }
  0xdf   :  { %4911 = vmatpush3.bf16.msra.mxu0 %v5226_v50  ;;  %4939 = vmatpush3.bf16.msra.mxu1 %v5227_v51 }
  0xe0   :  { %4912 = vmatprep.subr.bf16.mxu0 %v5228_v52  ;;  %4940 = vmatprep.subr.bf16.mxu1 %v5229_v53 }
  0xe3   :  { %4913 = vmatpush3.bf16.msra.mxu0 %v5230_v54  ;;  %4941 = vmatpush3.bf16.msra.mxu1 %v5231_v55  ;;  %v5238_v55 = vld [vmem:[%s6982_s2 + $0x130] sm:$0xff]  }
  0xe4   :  { %4954 = vmatprep.subr.bf16.mxu0 %v5232_v57  ;;  %4982 = vmatprep.subr.bf16.mxu1 %v5233_v58  ;;  %v5239_v58 = vld [vmem:[%s6982_s2 + $0x1b0] sm:$0xff]  }
  0xf5   :  { %v1317_v5 = vpop.f32.mrf.mxu0  ;;  %v1368_v7 = vpop.f32.mrf.mxu1 }
  0xf6   :  { %v1369_v14 = vadd.f32 %v1368_v7, %v247_v6  ;;  %v1318_v18 = vadd.f32 %v1317_v5, %v239_v9  ;;  %v5242_v7 = vld [vmem:[%s6982_s2 + $0x128] sm:$0xff]  }
  0xf7   :  { %v1319_v10 = vpop.f32.mrf.mxu0  ;;  %v1370_v12 = vpop.f32.mrf.mxu1 }
  0xf8   :  { %v1320_v15 = vadd.f32 %v1319_v10, %v243_v8  ;;  %v1371_v19 = vadd.f32 %v1370_v12, %v251_v11  ;;  %v1693_v27 = vmax.f32 %v1369_v14, 0.0  ;;  %v1691_v32 = vmax.f32 %v1318_v18, 0.0  ;;  %v5245_v10 = vld [vmem:[%s6982_s2 + $0x1e0] sm:$0xff]   ;;  %v5249_v14 = vld [vmem:[%s6982_s2 + $0x1d8] sm:$0xff]   ;;  %v5253_v18 = vld [vmem:[%s6982_s2 + $0x1d0] sm:$0xff]  }
  0xf9   :  { %v1321_v13 = vpop.f32.mrf.mxu0  ;;  %v1372_v17 = vpop.f32.mrf.mxu1  ;;  %v5247_v12 = vld [vmem:[%s6982_s2 + $0x1a0] sm:$0xff]  }
  0xfa   :  { %v1322_v16 = vadd.f32 %v1321_v13, %v239_v9  ;;  %v1373_v20 = vadd.f32 %v1372_v17, %v247_v6  ;;  %v1692_v28 = vmax.f32 %v1320_v15, 0.0  ;;  %v1694_v33 = vmax.f32 %v1371_v19, 0.0  ;;  %v5248_v13 = vld [vmem:[%s6982_s2 + $0x158] sm:$0xff]   ;;  %v5252_v17 = vld [vmem:[%s6982_s2 + $0x150] sm:$0xff]  }
  0xfb   :  { %v1323_v21 = vpop.f32.mrf.mxu0  ;;  %v1374_v23 = vpop.f32.mrf.mxu1  ;;  %v5250_v15 = vld [vmem:[%s6982_s2 + $0x118] sm:$0xff]   ;;  %v5254_v19 = vld [vmem:[%s6982_s2 + $0x110] sm:$0xff]  }
  0xfc   :  { %v1324_v22 = vadd.f32 %v1323_v21, %v243_v8  ;;  %v1707_v24 = vmax.f32 %v1322_v16, 0.0  ;;  %v1375_v25 = vadd.f32 %v1374_v23, %v251_v11  ;;  %v1709_v29 = vmax.f32 %v1373_v20, 0.0  ;;  %v5251_v16 = vld [vmem:[%s6982_s2 + $0x198] sm:$0xff]   ;;  %v5255_v20 = vld [vmem:[%s6982_s2 + $0x190] sm:$0xff]   ;;  %v5256_v21 = vld [vmem:[%s6982_s2 + $0x148] sm:$0xff]  }
  0xfd   :  { %v1327_v26 = vpop.f32.mrf.mxu0  ;;  %v1378_v31 = vpop.f32.mrf.mxu1  ;;  %v5258_v23 = vld [vmem:[%s6982_s2 + $0x108] sm:$0xff]  }
  0xfe   :  { %v1708_v30 = vmax.f32 %v1324_v22, 0.0  ;;  %v1710_v45 = vmax.f32 %v1375_v25, 0.0  ;;  %v1328_v56 = vadd.f32 %v1327_v26, %v239_v9  ;;  %v1379_v38 = vadd.f32 %v1378_v31, %v247_v6  ;;  %v5244_v9 = vld [vmem:[%s6982_s2 + $0x160] sm:$0xff]   ;;  %v5257_v22 = vld [vmem:[%s6982_s2 + $0x1c8] sm:$0xff]  }
  0xff   :  { %v1329_v34 = vpop.f32.mrf.mxu0  ;;  %v1380_v47 = vpop.f32.mrf.mxu1  ;;  %v1739_v39 = vpack.c.bf16 %v1707_v24, %v1691_v32  ;;  %v1741_v44 = vpack.c.bf16 %v1709_v29, %v1693_v27  ;;  %v5259_v24 = vld [vmem:[%s6982_s2 + $0x188] sm:$0xff]   ;;  %v5260_v25 = vld [vmem:[%s6982_s2 + $0x140] sm:$0xff]   ;;  %v5264_v29 = vld [vmem:[%s6982_s2 + $0x278] sm:$0xff]   ;;  %v262_v31 = vsub.s32 6, %v6241_v60  ;;  %v258_v32 = vsub.s32 5, %v6241_v60 }
 0x100   :  { %v1740_v35 = vpack.c.bf16 %v1708_v30, %v1692_v28  ;;  %v1330_v37 = vadd.f32 %v1329_v34, %v243_v8  ;;  %v1742_v4 = vpack.c.bf16 %v1710_v45, %v1694_v33  ;;  %v1381_v42 = vadd.f32 %v1380_v47, %v251_v11  ;;  %v5243_v8 = vld [vmem:[%s6982_s2 + $0x1a8] sm:$0xff]   ;;  %v5246_v11 = vld [vmem:[%s6982_s2 + $0x120] sm:$0xff]   ;;  %v5265_v30 = vld [vmem:[%s6982_s2 + $0x2f8] sm:$0xff]  }
 0x101   :  { %v1331_v43 = vpop.f32.mrf.mxu0  ;;  %v1382_v49 = vpop.f32.mrf.mxu1  ;;  %v1723_v50 = vmax.f32 %v1328_v56, 0.0  ;;  %v1725_v54 = vmax.f32 %v1379_v38, 0.0  ;;  %v5261_v26 = vld [vmem:[%s6982_s2 + $0x1c0] sm:$0xff]   ;;  %v254_v33 = vsub.s32 4, %v6241_v60  ;;  %v266_v45 = vsub.s32 7, %v6241_v60 }
 0x102   :  { %2828 = vmatprep.mubr.bf16.mxu0 %v1740_v35  ;;  %v1724_v46 = vmax.f32 %v1330_v37, 0.0  ;;  %2876 = vmatprep.mubr.bf16.mxu1 %v1742_v4  ;;  %v1726_v51 = vmax.f32 %v1381_v42, 0.0  ;;  %v5262_v27 = vld [vmem:[%s6982_s2 + $0x100] sm:$0xff]   ;;  %v263_v34 = vrot.slane %v6249_v63, %v262_v31 }
 0x103   :  { %2829 = vmatmul.mubr.bf16.vlgmr.msra.gmra.mxu0 %v1739_v39  ;;  %v1332_v52 = vpop.f32.mrf.mxu0  ;;  %2877 = vmatmul.mubr.bf16.vlgmr.msra.gmra.mxu1 %v1741_v44  ;;  %v1383_v57 = vpop.f32.mrf.mxu1  ;;  %v1755_v5 = vpack.c.bf16 %v1723_v50, %v1723_v50  ;;  %v1757_v6 = vpack.c.bf16 %v1725_v54, %v1725_v54  ;;  %v5263_v28 = vld [vmem:[%s6982_s2 + $0x180] sm:$0xff]   ;;  %v255_v37 = vrot.slane %v6249_v63, %v254_v33 }
 0x104   :  { %4955 = vmatpush3.bf16.msra.mxu0 %v5234_v36  ;;  %v1756_v53 = vpack.c.bf16 %v1724_v46, %v1724_v46  ;;  %4983 = vmatpush3.bf16.msra.mxu1 %v5235_v40  ;;  %v1758_v59 = vpack.c.bf16 %v1726_v51, %v1726_v51  ;;  %v259_v36 = vrot.slane %v6249_v63, %v258_v32 }
 0x105   :  { %4956 = vmatprep.subr.bf16.mxu0 %v5236_v41  ;;  %4984 = vmatprep.subr.bf16.mxu1 %v5237_v48  ;;  %v267_v47 = vrot.slane %v6249_v63, %v266_v45 }
 0x106   :  { %2836 = vmatprep.mubr.bf16.mxu0 %v1756_v53  ;;  %2884 = vmatprep.mubr.bf16.mxu1 %v1758_v59 }
 0x108   :  { %4957 = vmatpush3.bf16.msra.mxu0 %v5238_v55  ;;  %4985 = vmatpush3.bf16.msra.mxu1 %v5239_v58 }
 0x109   :  { %4958 = vmatprep.subr.bf16.mxu0 %v5240_v61  ;;  %4986 = vmatprep.subr.bf16.mxu1 %v5241_v62 }
 0x10b   :  { %2837 = vmatmul.mubr.bf16.gmra.mxu0 %v1755_v5  ;;  %2885 = vmatmul.mubr.bf16.gmra.mxu1 %v1757_v6 }
 0x10c   :  { %4959 = vmatpush3.bf16.msra.mxu0 %v5242_v7  ;;  %4987 = vmatpush3.bf16.msra.mxu1 %v5243_v8 }
 0x10d   :  { %4960 = vmatprep.subr.bf16.mxu0 %v5244_v9  ;;  %4988 = vmatprep.subr.bf16.mxu1 %v5245_v10 }
 0x110   :  { %4961 = vmatpush3.bf16.msra.mxu0 %v5246_v11  ;;  %4989 = vmatpush3.bf16.msra.mxu1 %v5247_v12  ;;  %v5266_v12 = vld [vmem:[%s6982_s2 + $0x238] sm:$0xff]  }
 0x111   :  { %4962 = vmatprep.subr.bf16.mxu0 %v5248_v13  ;;  %4990 = vmatprep.subr.bf16.mxu1 %v5249_v14 }
 0x114   :  { %4963 = vmatpush3.bf16.msra.mxu0 %v5250_v15  ;;  %4991 = vmatpush3.bf16.msra.mxu1 %v5251_v16  ;;  %v5267_v16 = vld [vmem:[%s6982_s2 + $0x2b8] sm:$0xff]  }
 0x115   :  { %4964 = vmatprep.subr.bf16.mxu0 %v5252_v17  ;;  %4992 = vmatprep.subr.bf16.mxu1 %v5253_v18  ;;  %v5268_v17 = vld [vmem:[%s6982_s2 + $0x270] sm:$0xff]  }
 0x118   :  { %4965 = vmatpush3.bf16.msra.mxu0 %v5254_v19  ;;  %4993 = vmatpush3.bf16.msra.mxu1 %v5255_v20 }
 0x119   :  { %4966 = vmatprep.subr.bf16.mxu0 %v5256_v21  ;;  %4994 = vmatprep.subr.bf16.mxu1 %v5257_v22  ;;  %v5269_v21 = vld [vmem:[%s6982_s2 + $0x2f0] sm:$0xff]  }
 0x11c   :  { %4967 = vmatpush3.bf16.msra.mxu0 %v5258_v23  ;;  %4995 = vmatpush3.bf16.msra.mxu1 %v5259_v24 }
 0x11d   :  { %4968 = vmatprep.subr.bf16.mxu0 %v5260_v25  ;;  %4996 = vmatprep.subr.bf16.mxu1 %v5261_v26 }
 0x120   :  { %4969 = vmatpush3.bf16.msra.mxu0 %v5262_v27  ;;  %4997 = vmatpush3.bf16.msra.mxu1 %v5263_v28  ;;  %v5270_v28 = vld [vmem:[%s6982_s2 + $0x230] sm:$0xff]  }
 0x121   :  { %5010 = vmatprep.subr.bf16.mxu0 %v5264_v29  ;;  %5038 = vmatprep.subr.bf16.mxu1 %v5265_v30 }
 0x125   :  { %v1419_v56 = vpop.f32.mrf.mxu0  ;;  %v1470_v35 = vpop.f32.mrf.mxu1 }
 0x126   :  { %v1471_v40 = vadd.f32 %v1470_v35, %v263_v34  ;;  %v1420_v44 = vadd.f32 %v1419_v56, %v255_v37  ;;  %v5271_v56 = vld [vmem:[%s6982_s2 + $0x2b0] sm:$0xff]   ;;  %v5273_v35 = vld [vmem:[%s6982_s2 + $0x2e8] sm:$0xff]  }
 0x127   :  { %v1421_v38 = vpop.f32.mrf.mxu0  ;;  %v1472_v39 = vpop.f32.mrf.mxu1 }
 0x128   :  { %v1422_v41 = vadd.f32 %v1421_v38, %v259_v36  ;;  %v1473_v46 = vadd.f32 %v1472_v39, %v267_v47  ;;  %v1697_v55 = vmax.f32 %v1471_v40, 0.0  ;;  %v1695_v61 = vmax.f32 %v1420_v44, 0.0  ;;  %v5274_v38 = vld [vmem:[%s6982_s2 + $0x228] sm:$0xff]   ;;  %v5276_v39 = vld [vmem:[%s6982_s2 + $0x260] sm:$0xff]   ;;  %v5282_v44 = vld [vmem:[%s6982_s2 + $0x218] sm:$0xff]  }
 0x129   :  { %v1423_v4 = vpop.f32.mrf.mxu0  ;;  %v1474_v43 = vpop.f32.mrf.mxu1  ;;  %v5278_v40 = vld [vmem:[%s6982_s2 + $0x220] sm:$0xff]  }
 0x12a   :  { %v1424_v42 = vadd.f32 %v1423_v4, %v255_v37  ;;  %v1475_v48 = vadd.f32 %v1474_v43, %v263_v34  ;;  %v1696_v57 = vmax.f32 %v1422_v41, 0.0  ;;  %v1698_v62 = vmax.f32 %v1473_v46, 0.0  ;;  %v5277_v4 = vld [vmem:[%s6982_s2 + $0x2e0] sm:$0xff]   ;;  %v5281_v43 = vld [vmem:[%s6982_s2 + $0x2d8] sm:$0xff]  }
 0x12b   :  { %v1425_v49 = vpop.f32.mrf.mxu0  ;;  %v1476_v51 = vpop.f32.mrf.mxu1  ;;  %v5279_v41 = vld [vmem:[%s6982_s2 + $0x2a0] sm:$0xff]   ;;  %v5283_v46 = vld [vmem:[%s6982_s2 + $0x298] sm:$0xff]  }
 0x12c   :  { %v1426_v50 = vadd.f32 %v1425_v49, %v259_v36  ;;  %v1711_v52 = vmax.f32 %v1424_v42, 0.0  ;;  %v1477_v53 = vadd.f32 %v1476_v51, %v267_v47  ;;  %v1713_v58 = vmax.f32 %v1475_v48, 0.0  ;;  %v5280_v42 = vld [vmem:[%s6982_s2 + $0x258] sm:$0xff]   ;;  %v5284_v48 = vld [vmem:[%s6982_s2 + $0x250] sm:$0xff]  }
 0x12d   :  { %v1429_v54 = vpop.f32.mrf.mxu0  ;;  %v1480_v63 = vpop.f32.mrf.mxu1  ;;  %v5285_v49 = vld [vmem:[%s6982_s2 + $0x2d0] sm:$0xff]  }
 0x12e   :  { %v1712_v59 = vmax.f32 %v1426_v50, 0.0  ;;  %v1714_v5 = vmax.f32 %v1477_v53, 0.0  ;;  %v1430_v6 = vadd.f32 %v1429_v54, %v255_v37  ;;  %v1481_v10 = vadd.f32 %v1480_v63, %v263_v34  ;;  %v5272_v34 = vld [vmem:[%s6982_s2 + $0x268] sm:$0xff]   ;;  %v5286_v50 = vld [vmem:[%s6982_s2 + $0x210] sm:$0xff]   ;;  %v5295_v63 = vld [vmem:[%s6982_s2 + $0x280] sm:$0xff]  }
 0x12f   :  { %v1431_v7 = vpop.f32.mrf.mxu0  ;;  %v1482_v11 = vpop.f32.mrf.mxu1  ;;  %v1743_v13 = vpack.c.bf16 %v1711_v52, %v1695_v61  ;;  %v1745_v19 = vpack.c.bf16 %v1713_v58, %v1697_v55  ;;  %v5287_v51 = vld [vmem:[%s6982_s2 + $0x290] sm:$0xff]   ;;  %v5288_v52 = vld [vmem:[%s6982_s2 + $0x248] sm:$0xff]   ;;  %v5293_v58 = vld [vmem:[%s6982_s2 + $0x2c0] sm:$0xff]  }
 0x130   :  { %v1744_v8 = vpack.c.bf16 %v1712_v59, %v1696_v57  ;;  %v1432_v9 = vadd.f32 %v1431_v7, %v259_v36  ;;  %v1746_v14 = vpack.c.bf16 %v1714_v5, %v1698_v62  ;;  %v1483_v15 = vadd.f32 %v1482_v11, %v267_v47  ;;  %v5275_v47 = vld [vmem:[%s6982_s2 + $0x2a8] sm:$0xff]   ;;  %v5292_v57 = vld [vmem:[%s6982_s2 + $0x240] sm:$0xff]   ;;  %v5296_v61 = vld [vmem:[%s6982_s2 + $0x378] sm:$0xff]  }
 0x131   :  { %v1433_v18 = vpop.f32.mrf.mxu0  ;;  %v1484_v22 = vpop.f32.mrf.mxu1  ;;  %v1727_v23 = vmax.f32 %v1430_v6, 0.0  ;;  %v1729_v27 = vmax.f32 %v1481_v10, 0.0  ;;  %v5289_v53 = vld [vmem:[%s6982_s2 + $0x2c8] sm:$0xff]   ;;  %v5294_v59 = vld [vmem:[%s6982_s2 + $0x200] sm:$0xff]   ;;  %v5297_v62 = vld [vmem:[%s6982_s2 + $0x3f8] sm:$0xff]  }
 0x132   :  { %2924 = vmatprep.mubr.bf16.mxu0 %v1744_v8  ;;  %v1728_v20 = vmax.f32 %v1432_v9, 0.0  ;;  %2972 = vmatprep.mubr.bf16.mxu1 %v1746_v14  ;;  %v1730_v24 = vmax.f32 %v1483_v15, 0.0  ;;  %v5290_v54 = vld [vmem:[%s6982_s2 + $0x208] sm:$0xff]  }
 0x133   :  { %2925 = vmatmul.mubr.bf16.vlgmr.msra.gmra.mxu0 %v1743_v13  ;;  %v1434_v25 = vpop.f32.mrf.mxu0  ;;  %2973 = vmatmul.mubr.bf16.vlgmr.msra.gmra.mxu1 %v1745_v19  ;;  %v1485_v29 = vpop.f32.mrf.mxu1  ;;  %v1759_v36 = vpack.c.bf16 %v1727_v23, %v1727_v23  ;;  %v1761_v37 = vpack.c.bf16 %v1729_v27, %v1729_v27  ;;  %v5291_v55 = vld [vmem:[%s6982_s2 + $0x288] sm:$0xff]  }
 0x134   :  { %v1760_v26 = vpack.c.bf16 %v1728_v20, %v1728_v20  ;;  %5011 = vmatpush3.bf16.msra.mxu0 %v5266_v12  ;;  %v1762_v30 = vpack.c.bf16 %v1730_v24, %v1730_v24  ;;  %5039 = vmatpush3.bf16.msra.mxu1 %v5267_v16  ;;  %v4523_v5 = vld [vmem:[%s6985_s5 + $0x40] ss:$8 sm:$0xf] }
 0x135   :  { %5012 = vmatprep.subr.bf16.mxu0 %v5268_v17  ;;  %5040 = vmatprep.subr.bf16.mxu1 %v5269_v21  ;;  %v4524_v6 = vld [vmem:[%s6985_s5 + $0x40] ss:$8 sm:$0xf0] }
 0x136   :  { %2932 = vmatprep.mubr.bf16.mxu0 %v1760_v26  ;;  %2980 = vmatprep.mubr.bf16.mxu1 %v1762_v30  ;;  %v6483_v7 = vor.u32 %v4524_v6, %v4523_v5  ;;  %v5303_v6 = vld [vmem:[%s6982_s2 + $0x3b0] sm:$0xff]  }
 0x138   :  { %5013 = vmatpush3.bf16.msra.mxu0 %v5270_v28  ;;  %5041 = vmatpush3.bf16.msra.mxu1 %v5271_v56  ;;  %v279_v9 = vrot.slane %v6483_v7, %v246_v0  ;;  %v275_v11 = vrot.slane %v6483_v7, %v6253_v1  ;;  %v271_v12 = vrot.slane %v6483_v7, %v6256_v2 }
 0x139   :  { %5014 = vmatprep.subr.bf16.mxu0 %v5272_v34  ;;  %5042 = vmatprep.subr.bf16.mxu1 %v5273_v35  ;;  %v283_v14 = vrot.slane %v6483_v7, %v250_v3 }
 0x13b   :  { %2933 = vmatmul.mubr.bf16.gmra.mxu0 %v1759_v36  ;;  %2981 = vmatmul.mubr.bf16.gmra.mxu1 %v1761_v37 }
 0x13c   :  { %5015 = vmatpush3.bf16.msra.mxu0 %v5274_v38  ;;  %5043 = vmatpush3.bf16.msra.mxu1 %v5275_v47 }
 0x13d   :  { %5016 = vmatprep.subr.bf16.mxu0 %v5276_v39  ;;  %5044 = vmatprep.subr.bf16.mxu1 %v5277_v4 }
 0x140   :  { %5017 = vmatpush3.bf16.msra.mxu0 %v5278_v40  ;;  %5045 = vmatpush3.bf16.msra.mxu1 %v5279_v41 }
 0x141   :  { %5018 = vmatprep.subr.bf16.mxu0 %v5280_v42  ;;  %5046 = vmatprep.subr.bf16.mxu1 %v5281_v43  ;;  %v5298_v42 = vld [vmem:[%s6982_s2 + $0x338] sm:$0xff]  }
 0x144   :  { %5019 = vmatpush3.bf16.msra.mxu0 %v5282_v44  ;;  %5047 = vmatpush3.bf16.msra.mxu1 %v5283_v46 }
 0x145   :  { %5020 = vmatprep.subr.bf16.mxu0 %v5284_v48  ;;  %5048 = vmatprep.subr.bf16.mxu1 %v5285_v49  ;;  %v5299_v48 = vld [vmem:[%s6982_s2 + $0x3b8] sm:$0xff]   ;;  %v5300_v49 = vld [vmem:[%s6982_s2 + $0x370] sm:$0xff]  }
 0x148   :  { %5021 = vmatpush3.bf16.msra.mxu0 %v5286_v50  ;;  %5049 = vmatpush3.bf16.msra.mxu1 %v5287_v51 }
 0x149   :  { %5022 = vmatprep.subr.bf16.mxu0 %v5288_v52  ;;  %5050 = vmatprep.subr.bf16.mxu1 %v5289_v53  ;;  %v5301_v53 = vld [vmem:[%s6982_s2 + $0x3f0] sm:$0xff]  }
 0x14c   :  { %5023 = vmatpush3.bf16.msra.mxu0 %v5290_v54  ;;  %5051 = vmatpush3.bf16.msra.mxu1 %v5291_v55 }
 0x14d   :  { %5024 = vmatprep.subr.bf16.mxu0 %v5292_v57  ;;  %5052 = vmatprep.subr.bf16.mxu1 %v5293_v58 }
 0x150   :  { %5025 = vmatpush3.bf16.msra.mxu0 %v5294_v59  ;;  %5053 = vmatpush3.bf16.msra.mxu1 %v5295_v63 }
 0x151   :  { %5066 = vmatprep.subr.bf16.mxu0 %v5296_v61  ;;  %5094 = vmatprep.subr.bf16.mxu1 %v5297_v62  ;;  %v5302_v61 = vld [vmem:[%s6982_s2 + $0x330] sm:$0xff]  }
 0x155   :  { %v1521_v8 = vpop.f32.mrf.mxu0  ;;  %v1572_v10 = vpop.f32.mrf.mxu1 }
 0x156   :  { %v1573_v17 = vadd.f32 %v1572_v10, %v279_v9  ;;  %v1522_v21 = vadd.f32 %v1521_v8, %v271_v12  ;;  %v5304_v8 = vld [vmem:[%s6982_s2 + $0x368] sm:$0xff]  }
 0x157   :  { %v1523_v13 = vpop.f32.mrf.mxu0  ;;  %v1574_v15 = vpop.f32.mrf.mxu1 }
 0x158   :  { %v1524_v18 = vadd.f32 %v1523_v13, %v275_v11  ;;  %v1575_v0 = vadd.f32 %v1574_v15, %v283_v14  ;;  %v1701_v29 = vmax.f32 %v1573_v17, 0.0  ;;  %v1699_v35 = vmax.f32 %v1522_v21, 0.0  ;;  %v5307_v13 = vld [vmem:[%s6982_s2 + $0x3a8] sm:$0xff]   ;;  %v5309_v15 = vld [vmem:[%s6982_s2 + $0x3e0] sm:$0xff]   ;;  %v5315_v21 = vld [vmem:[%s6982_s2 + $0x398] sm:$0xff]  }
 0x159   :  { %v1525_v16 = vpop.f32.mrf.mxu0  ;;  %v1576_v20 = vpop.f32.mrf.mxu1  ;;  %v5311_v17 = vld [vmem:[%s6982_s2 + $0x3a0] sm:$0xff]  }
 0x15a   :  { %v1526_v19 = vadd.f32 %v1525_v16, %v271_v12  ;;  %v1577_v22 = vadd.f32 %v1576_v20, %v279_v9  ;;  %v1700_v30 = vmax.f32 %v1524_v18, 0.0  ;;  %v1702_v36 = vmax.f32 %v1575_v0, 0.0  ;;  %v5310_v16 = vld [vmem:[%s6982_s2 + $0x320] sm:$0xff]   ;;  %v5312_v18 = vld [vmem:[%s6982_s2 + $0x358] sm:$0xff]   ;;  %v5316_v0 = vld [vmem:[%s6982_s2 + $0x350] sm:$0xff]  }
 0x15b   :  { %v1527_v23 = vpop.f32.mrf.mxu0  ;;  %v1578_v25 = vpop.f32.mrf.mxu1  ;;  %v5314_v20 = vld [vmem:[%s6982_s2 + $0x318] sm:$0xff]  }
 0x15c   :  { %v1528_v24 = vadd.f32 %v1527_v23, %v275_v11  ;;  %v1715_v26 = vmax.f32 %v1526_v19, 0.0  ;;  %v1579_v27 = vadd.f32 %v1578_v25, %v283_v14  ;;  %v1717_v56 = vmax.f32 %v1577_v22, 0.0  ;;  %v5313_v19 = vld [vmem:[%s6982_s2 + $0x3d8] sm:$0xff]   ;;  %v5317_v22 = vld [vmem:[%s6982_s2 + $0x3d0] sm:$0xff]   ;;  %v5320_v25 = vld [vmem:[%s6982_s2 + $0x348] sm:$0xff]  }
 0x15d   :  { %v1531_v28 = vpop.f32.mrf.mxu0  ;;  %v1582_v3 = vpop.f32.mrf.mxu1  ;;  %v5318_v23 = vld [vmem:[%s6982_s2 + $0x310] sm:$0xff]  }
 0x15e   :  { %v1716_v34 = vmax.f32 %v1528_v24, 0.0  ;;  %v1718_v37 = vmax.f32 %v1579_v27, 0.0  ;;  %v1532_v38 = vadd.f32 %v1531_v28, %v271_v12  ;;  %v1583_v40 = vadd.f32 %v1582_v3, %v279_v9  ;;  %v5305_v9 = vld [vmem:[%s6982_s2 + $0x3e8] sm:$0xff]   ;;  %v5319_v24 = vld [vmem:[%s6982_s2 + $0x390] sm:$0xff]  }
 0x15f   :  { %v1533_v47 = vpop.f32.mrf.mxu0  ;;  %v1584_v41 = vpop.f32.mrf.mxu1  ;;  %v1747_v43 = vpack.c.bf16 %v1715_v26, %v1699_v35  ;;  %v1749_v51 = vpack.c.bf16 %v1717_v56, %v1701_v29  ;;  %v5306_v12 = vld [vmem:[%s6982_s2 + $0x328] sm:$0xff]   ;;  %v5324_v29 = vld [vmem:[%s6982_s2 + $0x340] sm:$0xff]  }
 0x160   :  { %v1748_v39 = vpack.c.bf16 %v1716_v34, %v1700_v30  ;;  %v1534_v4 = vadd.f32 %v1533_v47, %v275_v11  ;;  %v1750_v44 = vpack.c.bf16 %v1718_v37, %v1702_v36  ;;  %v1585_v46 = vadd.f32 %v1584_v41, %v283_v14  ;;  %v5308_v14 = vld [vmem:[%s6982_s2 + $0x360] sm:$0xff]   ;;  %v5321_v26 = vld [vmem:[%s6982_s2 + $0x3c8] sm:$0xff]  }
 0x161   :  { %v1535_v50 = vpop.f32.mrf.mxu0  ;;  %v1586_v54 = vpop.f32.mrf.mxu1  ;;  %v1731_v55 = vmax.f32 %v1532_v38, 0.0  ;;  %v1733_v63 = vmax.f32 %v1583_v40, 0.0  ;;  %v5322_v27 = vld [vmem:[%s6982_s2 + $0x308] sm:$0xff]   ;;  %v5325_v30 = vld [vmem:[%s6982_s2 + $0x3c0] sm:$0xff]   ;;  %v291_v36 = vrot.slane %v6483_v7, %v258_v32  ;;  %v287_v37 = vrot.slane %v6483_v7, %v254_v33 }
 0x162   :  { %3020 = vmatprep.mubr.bf16.mxu0 %v1748_v39  ;;  %v1732_v52 = vmax.f32 %v1534_v4, 0.0  ;;  %3068 = vmatprep.mubr.bf16.mxu1 %v1750_v44  ;;  %v1734_v57 = vmax.f32 %v1585_v46, 0.0  ;;  %v5323_v28 = vld [vmem:[%s6982_s2 + $0x388] sm:$0xff]   ;;  %v5326_v56 = vld [vmem:[%s6982_s2 + $0x300] sm:$0xff]   ;;  %v299_v47 = vrot.slane %v6483_v7, %v266_v45  ;;  %v295_v39 = vrot.slane %v6483_v7, %v262_v31 }
 0x163   :  { %3021 = vmatmul.mubr.bf16.vlgmr.msra.gmra.mxu0 %v1747_v43  ;;  %v1536_v58 = vpop.f32.mrf.mxu0  ;;  %3069 = vmatmul.mubr.bf16.vlgmr.msra.gmra.mxu1 %v1749_v51  ;;  %v1587_v62 = vpop.f32.mrf.mxu1  ;;  %v1763_v10 = vpack.c.bf16 %v1731_v55, %v1731_v55  ;;  %v1765_v11 = vpack.c.bf16 %v1733_v63, %v1733_v63  ;;  %v5327_v34 = vld [vmem:[%s6982_s2 + $0x380] sm:$0xff]  }
 0x164   :  { %v1764_v59 = vpack.c.bf16 %v1732_v52, %v1732_v52  ;;  %5067 = vmatpush3.bf16.msra.mxu0 %v5298_v42  ;;  %v1766_v5 = vpack.c.bf16 %v1734_v57, %v1734_v57  ;;  %5095 = vmatpush3.bf16.msra.mxu1 %v5299_v48 }
 0x165   :  { %5068 = vmatprep.subr.bf16.mxu0 %v5300_v49  ;;  %5096 = vmatprep.subr.bf16.mxu1 %v5301_v53 }
 0x166   :  { %3028 = vmatprep.mubr.bf16.mxu0 %v1764_v59  ;;  %3076 = vmatprep.mubr.bf16.mxu1 %v1766_v5 }
 0x168   :  { %5069 = vmatpush3.bf16.msra.mxu0 %v5302_v61  ;;  %5097 = vmatpush3.bf16.msra.mxu1 %v5303_v6 }
 0x169   :  { %5070 = vmatprep.subr.bf16.mxu0 %v5304_v8  ;;  %5098 = vmatprep.subr.bf16.mxu1 %v5305_v9 }
 0x16b   :  { %3029 = vmatmul.mubr.bf16.gmra.mxu0 %v1763_v10  ;;  %3077 = vmatmul.mubr.bf16.gmra.mxu1 %v1765_v11 }
 0x16c   :  { %5071 = vmatpush3.bf16.msra.mxu0 %v5306_v12  ;;  %5099 = vmatpush3.bf16.msra.mxu1 %v5307_v13 }
 0x16d   :  { %5072 = vmatprep.subr.bf16.mxu0 %v5308_v14  ;;  %5100 = vmatprep.subr.bf16.mxu1 %v5309_v15 }
 0x170   :  { %5073 = vmatpush3.bf16.msra.mxu0 %v5310_v16  ;;  %5101 = vmatpush3.bf16.msra.mxu1 %v5311_v17 }
 0x171   :  { %5074 = vmatprep.subr.bf16.mxu0 %v5312_v18  ;;  %5102 = vmatprep.subr.bf16.mxu1 %v5313_v19 }
 0x174   :  { %5075 = vmatpush3.bf16.msra.mxu0 %v5314_v20  ;;  %5103 = vmatpush3.bf16.msra.mxu1 %v5315_v21 }
 0x175   :  { %5076 = vmatprep.subr.bf16.mxu0 %v5316_v0  ;;  %5104 = vmatprep.subr.bf16.mxu1 %v5317_v22 }
 0x178   :  { %5077 = vmatpush3.bf16.msra.mxu0 %v5318_v23  ;;  %5105 = vmatpush3.bf16.msra.mxu1 %v5319_v24  ;;  %v5328_v23 = vld [vmem:[%s6983_s3 + $0x10] ss:$8 sps:$4 sm:$0xff]   ;;  %v5330_v24 = vld [vmem:[%s6983_s3 + $0x14] ss:$8 sps:$4 sm:$0xff]  }
 0x179   :  { %5078 = vmatprep.subr.bf16.mxu0 %v5320_v25  ;;  %5106 = vmatprep.subr.bf16.mxu1 %v5321_v26 }
 0x17c   :  { %5079 = vmatpush3.bf16.msra.mxu0 %v5322_v27  ;;  %5107 = vmatpush3.bf16.msra.mxu1 %v5323_v28  ;;  %v2027_v27 = vld [vmem:[%s6985_s5 + $0x1] ss:$0 sm:$0xff] }
 0x17d   :  { %5080 = vmatprep.subr.bf16.mxu0 %v5324_v29  ;;  %5108 = vmatprep.subr.bf16.mxu1 %v5325_v30 }
 0x180   :  { %5081 = vmatpush3.bf16.msra.mxu0 %v5326_v56  ;;  %5109 = vmatpush3.bf16.msra.mxu1 %v5327_v34 }
 0x181   :  { %3277 = vmatprep.subr.bf16.mxu0 %v5330_v24 }
 0x185   :  { %v1623_v3 = vpop.f32.mrf.mxu0  ;;  %v1674_v35 = vpop.f32.mrf.mxu1 }
 0x186   :  { %v1624_v44 = vadd.f32 %v1623_v3, %v287_v37  ;;  %v1675_v49 = vadd.f32 %v1674_v35, %v295_v39 }
 0x187   :  { %v1625_v38 = vpop.f32.mrf.mxu0  ;;  %v1676_v4 = vpop.f32.mrf.mxu1 }
 0x188   :  { %v1626_v41 = vadd.f32 %v1625_v38, %v291_v36  ;;  %v1677_v32 = vadd.f32 %v1676_v4, %v299_v47  ;;  %v1703_v31 = vmax.f32 %v1624_v44, 0.0  ;;  %v1705_v63 = vmax.f32 %v1675_v49, 0.0 }
 0x189   :  { %v1627_v40 = vpop.f32.mrf.mxu0  ;;  %v1678_v43 = vpop.f32.mrf.mxu1 }
 0x18a   :  { %v1628_v42 = vadd.f32 %v1627_v40, %v287_v37  ;;  %v1679_v46 = vadd.f32 %v1678_v43, %v295_v39  ;;  %v1704_v45 = vmax.f32 %v1626_v41, 0.0  ;;  %v1706_v7 = vmax.f32 %v1677_v32, 0.0 }
 0x18b   :  { %v1629_v48 = vpop.f32.mrf.mxu0  ;;  %v1680_v50 = vpop.f32.mrf.mxu1 }
 0x18c   :  { %v1630_v33 = vadd.f32 %v1629_v48, %v291_v36  ;;  %v1719_v51 = vmax.f32 %v1628_v42, 0.0  ;;  %v1681_v52 = vadd.f32 %v1680_v50, %v299_v47  ;;  %v1721_v54 = vmax.f32 %v1679_v46, 0.0 }
 0x18d   :  { %v1633_v53 = vpop.f32.mrf.mxu0  ;;  %v1684_v55 = vpop.f32.mrf.mxu1 }
 0x18e   :  { %v1720_v60 = vmax.f32 %v1630_v33, 0.0  ;;  %v1722_v57 = vmax.f32 %v1681_v52, 0.0  ;;  %v1634_v58 = vadd.f32 %v1633_v53, %v287_v37  ;;  %v1685_v5 = vadd.f32 %v1684_v55, %v295_v39  ;;  %v3187_v53 = vld [vmem:[%s6984_s4 + $0x38] sm:$0xff]  ;;  %v6630_v55 = vld [vmem:[%s6984_s4 + $0x28] sm:$0xff] }
 0x18f   :  { %v1635_v59 = vpop.f32.mrf.mxu0  ;;  %v1686_v6 = vpop.f32.mrf.mxu1  ;;  %v1751_v8 = vpack.c.bf16 %v1719_v51, %v1703_v31  ;;  %v1753_v12 = vpack.c.bf16 %v1721_v54, %v1705_v63  ;;  %3343 = vmatprep.subr.mxu1 %v3187_v53  ;;  %v5333_v54 = vld [vmem:[%s6983_s3 + $0x4] ss:$8 sps:$4 sm:$0xff]  }
 0x190   :  { %v1752_v61 = vpack.c.bf16 %v1720_v60, %v1704_v45  ;;  %v1636_v62 = vadd.f32 %v1635_v59, %v291_v36  ;;  %v1754_v9 = vpack.c.bf16 %v1722_v57, %v1706_v7  ;;  %v1687_v11 = vadd.f32 %v1686_v6, %v299_v47  ;;  %v6618_v45 = vld [vmem:[%s6984_s4 + $0x30] sm:$0xff]  ;;  %v5331_v60 = vld [vmem:[%s6983_s3] ss:$8 sps:$4 sm:$0xff]   ;;  %v6642_v7 = vld [vmem:[%s6984_s4 + $0x18] sm:$0xff] }
 0x191   :  { %v1637_v10 = vpop.f32.mrf.mxu0  ;;  %v1688_v14 = vpop.f32.mrf.mxu1  ;;  %v1735_v15 = vmax.f32 %v1634_v58, 0.0  ;;  %v1737_v19 = vmax.f32 %v1685_v5, 0.0  ;;  %v6636_v31 = vld [vmem:[%s6984_s4 + $0x20] sm:$0xff]  ;;  %v6648_v57 = vld [vmem:[%s6984_s4 + $0x10] sm:$0xff]  ;;  %v5448_v58 = vmov 0   ;;  %v6655_v59 = vld [vmem:[%s6984_s4 + $0x8] sm:$0xff] }
 0x192   :  { %v1736_v13 = vmax.f32 %v1636_v62, 0.0  ;;  %3116 = vmatprep.mubr.bf16.mxu0 %v1752_v61  ;;  %3164 = vmatprep.mubr.bf16.mxu1 %v1754_v9  ;;  %v1738_v16 = vmax.f32 %v1687_v11, 0.0  ;;  %v6661_v63 = vld [vmem:[%s6984_s4] sm:$0xff]  ;;  %v5449_v61 = vmov 0.0  }
 0x193   :  { %3117 = vmatmul.mubr.bf16.vlgmr.msra.gmra.mxu0 %v1751_v8  ;;  %v1638_v17 = vpop.f32.mrf.mxu0  ;;  %3165 = vmatmul.mubr.bf16.vlgmr.msra.gmra.mxu1 %v1753_v12  ;;  %v1689_v20 = vpop.f32.mrf.mxu1  ;;  %v1767_v0 = vpack.c.bf16 %v1735_v15, %v1735_v15  ;;  %v1769_v22 = vpack.c.bf16 %v1737_v19, %v1737_v19 }
 0x194   :  { %v1768_v18 = vpack.c.bf16 %v1736_v13, %v1736_v13  ;;  %v1770_v21 = vpack.c.bf16 %v1738_v16, %v1738_v16  ;;  %3278 = vmatpush1.bf16.msra.mxu0 %v5328_v23  ;;  %3344 = vmatpush1.msra.mxu1 %v6618_v45 }
 0x195   :  { %3279 = vmatprep.subr.bf16.mxu0 %v5333_v54  ;;  %3345 = vmatprep.subr.mxu1 %v6630_v55 }
 0x196   :  { %3124 = vmatprep.mubr.bf16.mxu0 %v1768_v18  ;;  %3172 = vmatprep.mubr.bf16.mxu1 %v1770_v21 }
 0x197   :  { %3346 = vmatpush1.msra.mxu1 %v6636_v31 }
 0x198   :  { %3280 = vmatpush1.bf16.msra.mxu0 %v5331_v60  ;;  %3347 = vmatprep.subr.mxu1 %v6642_v7 }
 0x199   :  { %3613 = vmatprep.subr.mxu0 %v3187_v53  ;;  %3348 = vmatpush1.msra.mxu1 %v6648_v57 }
 0x19a   :  { %3349 = vmatprep.subr.mxu1 %v6655_v59 }
 0x19b   :  { %3125 = vmatmul.mubr.bf16.gmra.mxu0 %v1767_v0  ;;  %3173 = vmatmul.mubr.bf16.gmra.mxu1 %v1769_v22 }
 0x19c   :  { %3297 = vmatprep.mubr.bf16.mxu0 %v5448_v58  ;;  %3350 = vmatpush1.msra.mxu1 %v6661_v63 }
 0x19d   :  { %3383 = vmatprep.mubr.f32.mxu1 %v5449_v61  ;;  %3478 = vmatprep.subr.mxu1 %v3187_v53 }
 0x1a3   :  { %3384 = vmatmul.mubr.f32.vlgmr.msra.gmra.mxu1 %v5449_v61 }
 0x1a4   :  { %3388 = vmatprep.mubr.f32.mxu1 %v5449_v61  ;;  %3479 = vmatpush1.msra.mxu1 %v6618_v45 }
 0x1a5   :  { %3480 = vmatprep.subr.mxu1 %v6630_v55 }
 0x1a6   :  { %3481 = vmatpush1.msra.mxu1 %v6636_v31 }
 0x1a7   :  { %3389 = vmatmul.mubr.f32.gmra.mxu1 %v5449_v61  ;;  %3482 = vmatprep.subr.mxu1 %v6642_v7 }
 0x1a8   :  { %3483 = vmatpush1.msra.mxu1 %v6648_v57  ;;  %3518 = vmatprep.mubr.f32.mxu1 %v5449_v61 }
 0x1a9   :  { %3484 = vmatprep.subr.mxu1 %v6655_v59 }
 0x1aa   :  { %3485 = vmatpush1.msra.mxu1 %v6661_v63 }
 0x1ab   :  { %5145 = vmatprep.subr.mxu1 %v5449_v61 }
 0x1c3   :  { %v4914_v25 = vpop.f32.mrf.mxu0  ;;  %v4942_v26 = vpop.f32.mrf.mxu1 }
 0x1c5   :  { %v4915_v28 = vpop.f32.mrf.mxu0  ;;  %v4943_v30 = vpop.f32.mrf.mxu1 }
 0x1c6   :  { %v4916_v29 = vadd.f32 %v4915_v28, %v4914_v25  ;;  %v4944_v56 = vadd.f32 %v4943_v30, %v4942_v26 }
 0x1c7   :  { %v4917_v34 = vpop.f32.mrf.mxu0  ;;  %v4945_v35 = vpop.f32.mrf.mxu1 }
 0x1c8   :  { %v2831_v3 = vadd.f32 %v4916_v29, %v2027_v27 }
 0x1c9   :  { %v4918_v36 = vpop.f32.mrf.mxu0  ;;  %v4946_v47 = vpop.f32.mrf.mxu1 }
 0x1ca   :  { %v6606_v37 = vadd.f32 %v4944_v56, %v2831_v3  ;;  %v4919_v38 = vadd.f32 %v4918_v36, %v4917_v34  ;;  %v4947_v39 = vadd.f32 %v4946_v47, %v4945_v35 }
 0x1cb   :  { %v4920_v4 = vpop.f32.mrf.mxu0  ;;  %v4948_v41 = vpop.f32.mrf.mxu1 }
 0x1cc   :  { %v2834_v40 = vadd.f32 %v4919_v38, %v2027_v27 }
 0x1cd   :  { %v4921_v42 = vpop.f32.mrf.mxu0  ;;  %v4949_v32 = vpop.f32.mrf.mxu1 }
 0x1ce   :  { %v6608_v43 = vadd.f32 %v4947_v39, %v2834_v40  ;;  %v4922_v44 = vadd.f32 %v4921_v42, %v4920_v4  ;;  %v4950_v48 = vadd.f32 %v4949_v32, %v4948_v41 }
 0x1cf   :  { %v4923_v46 = vpop.f32.mrf.mxu0  ;;  %v4951_v33 = vpop.f32.mrf.mxu1 }
 0x1d0   :  { %v2839_v49 = vadd.f32 %v4922_v44, %v2027_v27 }
 0x1d1   :  { %v4924_v50 = vpop.f32.mrf.mxu0  ;;  %v4952_v52 = vpop.f32.mrf.mxu1 }
 0x1d2   :  { %v6610_v51 = vadd.f32 %v4950_v48, %v2839_v49 }
 0x1f3   :  { %v4970_v62 = vpop.f32.mrf.mxu0  ;;  %v4998_v5 = vpop.f32.mrf.mxu1 }
 0x1f5   :  { %v4971_v6 = vpop.f32.mrf.mxu0  ;;  %v4999_v9 = vpop.f32.mrf.mxu1 }
 0x1f6   :  { %v4972_v8 = vadd.f32 %v4971_v6, %v4970_v62  ;;  %v5000_v10 = vadd.f32 %v4999_v9, %v4998_v5 }
 0x1f7   :  { %v4973_v11 = vpop.f32.mrf.mxu0  ;;  %v5001_v13 = vpop.f32.mrf.mxu1 }
 0x1f8   :  { %v2927_v12 = vadd.f32 %v4972_v8, %v6606_v37 }
 0x1f9   :  { %v4974_v14 = vpop.f32.mrf.mxu0  ;;  %v5002_v17 = vpop.f32.mrf.mxu1 }
 0x1fa   :  { %v2975_v15 = vadd.f32 %v5000_v10, %v2927_v12  ;;  %v4975_v16 = vadd.f32 %v4974_v14, %v4973_v11  ;;  %v5003_v18 = vadd.f32 %v5002_v17, %v5001_v13 }
 0x1fb   :  { %v4976_v19 = vpop.f32.mrf.mxu0  ;;  %v5004_v21 = vpop.f32.mrf.mxu1 }
 0x1fc   :  { %v2930_v20 = vadd.f32 %v4975_v16, %v6608_v43 }
 0x1fd   :  { %v4977_v0 = vpop.f32.mrf.mxu0  ;;  %v5005_v24 = vpop.f32.mrf.mxu1 }
 0x1fe   :  { %v2978_v22 = vadd.f32 %v5003_v18, %v2930_v20  ;;  %v4978_v23 = vadd.f32 %v4977_v0, %v4976_v19  ;;  %v5006_v25 = vadd.f32 %v5005_v24, %v5004_v21 }
 0x1ff   :  { %v4979_v26 = vpop.f32.mrf.mxu0  ;;  %v5007_v28 = vpop.f32.mrf.mxu1 }
 0x200   :  { %v2935_v27 = vadd.f32 %v4978_v23, %v6610_v51 }
 0x201   :  { %v4980_v29 = vpop.f32.mrf.mxu0  ;;  %v5008_v56 = vpop.f32.mrf.mxu1 }
 0x202   :  { %v2983_v30 = vadd.f32 %v5006_v25, %v2935_v27 }
 0x223   :  { %v5026_v34 = vpop.f32.mrf.mxu0  ;;  %v5054_v3 = vpop.f32.mrf.mxu1 }
 0x225   :  { %v5027_v35 = vpop.f32.mrf.mxu0  ;;  %v5055_v36 = vpop.f32.mrf.mxu1 }
 0x226   :  { %v5028_v48 = vadd.f32 %v5027_v35, %v5026_v34  ;;  %v5056_v54 = vadd.f32 %v5055_v36, %v5054_v3 }
 0x227   :  { %v5029_v37 = vpop.f32.mrf.mxu0  ;;  %v5057_v38 = vpop.f32.mrf.mxu1 }
 0x228   :  { %v3023_v50 = vadd.f32 %v5028_v48, %v2975_v15 }
 0x229   :  { %v5030_v47 = vpop.f32.mrf.mxu0  ;;  %v5058_v39 = vpop.f32.mrf.mxu1 }
 0x22a   :  { %v5031_v49 = vadd.f32 %v5030_v47, %v5029_v37  ;;  %v5059_v6 = vadd.f32 %v5058_v39, %v5057_v38  ;;  %v3071_v9 = vadd.f32 %v5056_v54, %v3023_v50 }
 0x22b   :  { %v5032_v4 = vpop.f32.mrf.mxu0  ;;  %v5060_v40 = vpop.f32.mrf.mxu1 }
 0x22c   :  { %v3026_v52 = vadd.f32 %v5031_v49, %v2978_v22 }
 0x22d   :  { %v5033_v41 = vpop.f32.mrf.mxu0  ;;  %v5061_v42 = vpop.f32.mrf.mxu1 }
 0x22e   :  { %v5034_v60 = vadd.f32 %v5033_v41, %v5032_v4  ;;  %v3074_v11 = vadd.f32 %v5059_v6, %v3026_v52  ;;  %v5062_v14 = vadd.f32 %v5061_v42, %v5060_v40 }
 0x22f   :  { %v5035_v43 = vpop.f32.mrf.mxu0  ;;  %v5063_v44 = vpop.f32.mrf.mxu1 }
 0x230   :  { %v3031_v13 = vadd.f32 %v5034_v60, %v2983_v30 }
 0x231   :  { %v5036_v32 = vpop.f32.mrf.mxu0  ;;  %v5064_v46 = vpop.f32.mrf.mxu1 }
 0x232   :  { %v3079_v23 = vadd.f32 %v5062_v14, %v3031_v13 }
 0x253   :  { %v5082_v33 = vpop.f32.mrf.mxu0  ;;  %v5110_v51 = vpop.f32.mrf.mxu1 }
 0x255   :  { %v5083_v53 = vpop.f32.mrf.mxu0  ;;  %v5111_v5 = vpop.f32.mrf.mxu1 }
 0x256   :  { %v5084_v62 = vadd.f32 %v5083_v53, %v5082_v33  ;;  %v5112_v15 = vadd.f32 %v5111_v5, %v5110_v51 }
 0x257   :  { %v5085_v8 = vpop.f32.mrf.mxu0  ;;  %v5113_v10 = vpop.f32.mrf.mxu1 }
 0x258   :  { %v3119_v16 = vadd.f32 %v5084_v62, %v3071_v9 }
 0x259   :  { %v5086_v12 = vpop.f32.mrf.mxu0  ;;  %v5114_v18 = vpop.f32.mrf.mxu1 }
 0x25a   :  { %v5087_v17 = vadd.f32 %v5086_v12, %v5085_v8  ;;  %v5115_v21 = vadd.f32 %v5114_v18, %v5113_v10  ;;  %v3167_v24 = vadd.f32 %v5112_v15, %v3119_v16 }
 0x25b   :  { %v5088_v19 = vpop.f32.mrf.mxu0  ;;  %v5116_v0 = vpop.f32.mrf.mxu1 }
 0x25c   :  { %v3122_v20 = vadd.f32 %v5087_v17, %v3074_v11 }
 0x25d   :  { %v5089_v22 = vpop.f32.mrf.mxu0  ;;  %v5117_v27 = vpop.f32.mrf.mxu1 }
 0x25e   :  { %v3170_v25 = vadd.f32 %v5115_v21, %v3122_v20  ;;  %v5090_v26 = vadd.f32 %v5089_v22, %v5088_v19  ;;  %v5118_v28 = vadd.f32 %v5117_v27, %v5116_v0 }
 0x25f   :  { %v5091_v29 = vpop.f32.mrf.mxu0  ;;  %v5119_v3 = vpop.f32.mrf.mxu1 }
 0x260   :  { %v3216_v56 = vmax.f32 %v3167_v24, %v3170_v25  ;;  %v3225_v30 = vpack.c.bf16 %v3170_v25, %v3167_v24  ;;  %v3127_v34 = vadd.f32 %v5090_v26, %v3079_v23 }
 0x261   :  { %v5092_v35 = vpop.f32.mrf.mxu0  ;;  %v5120_v37 = vpop.f32.mrf.mxu1 }
 0x262   :  { %v3175_v36 = vadd.f32 %v5118_v28, %v3127_v34  ;;  %4866 = vmatmul.mubr.msk.bf16.vlgmr.msra.gmra.mxu0 %vm3258_vm1, %v3225_v30 }
 0x263   :  { %3307 = vmatprep.mubr.bf16.mxu0 %v5448_v58  ;;  %3614 = vmatpush1.msra.mxu0 %v6618_v45  ;;  %v3385_v45 = vpop.f32.mrf.mxu1 }
 0x264   :  { %v6683_v38 = vmax.f32 %v3216_v56, %v3175_v36  ;;  %3615 = vmatprep.subr.mxu0 %v6630_v55  ;;  %v3226_v47 = vpack.c.bf16 %v3175_v36, %v3175_v36  ;;  %v4861_v55 = vld [vmem:[%s6985_s5 + $0x2] ss:$8 sm:$0x3] }
 0x265   :  { %3616 = vmatpush1.msra.mxu0 %v6636_v31  ;;  %v3387_v39 = vpop.f32.mrf.mxu1  ;;  %v3231_v31 = vrot.slane %v4861_v55, %v6256_v2 }
 0x266   :  { %3617 = vmatprep.subr.mxu0 %v6642_v7  ;;  %v3235_v7 = vrot.slane %v4861_v55, %v6253_v1 }
 0x267   :  { %3618 = vmatpush1.msra.mxu0 %v6648_v57  ;;  %v3390_v4 = vpop.f32.mrf.mxu1 }
 0x268   :  { %3619 = vmatprep.subr.mxu0 %v6655_v59 }
 0x269   :  { %3620 = vmatpush1.msra.mxu0 %v6661_v63  ;;  %v3391_v50 = vpop.f32.mrf.mxu1 }
 0x26a   :  { %4867 = vmatmul.mubr.msk.bf16.gmra.mxu0 %vm3258_vm1, %v3226_v47 }
 0x26b   :  { %3653 = vmatprep.mubr.f32.mxu0 %v5449_v61 }
 0x322   :  { %v3299_v57 = vpop.f32.mrf.mxu0 }
 0x323   :  { %v3300_v40 = vadd.f32 %v3299_v57, %v3231_v31 }
 0x324   :  { %v3301_v59 = vpop.f32.mrf.mxu0 }
 0x325   :  { %v6698_v41 = vadd.f32 %v3301_v59, %v3235_v7  ;;  %v3394_v63 = vadd.f32 %v3385_v45, %v3300_v40 }
 0x326   :  { %v3303_v42 = vpop.f32.mrf.mxu0 }
 0x327   :  { %5346 = vtanh.f32 %v3394_v63  ;;  %v3304_v43 = vadd.f32 %v3303_v42, %v3231_v31  ;;  %v4868_v62 = vmul.f32 -1.442695, %v3394_v63 }
 0x328   :  { %v3305_v44 = vpop.f32.mrf.mxu0 }
 0x329   :  { %v6700_v32 = vadd.f32 %v3305_v44, %v3235_v7 }
 0x32a   :  { %v3309_v46 = vpop.f32.mrf.mxu0 }
 0x32b   :  { %v6702_v48 = vadd.f32 %v3309_v46, %v3231_v31 }
 0x32c   :  { %v3311_v49 = vpop.f32.mrf.mxu0 }
 0x32d   :  { %v3312_v33 = vadd.f32 %v3311_v49, %v3235_v7 }
 0x32e   :  { %v3313_v51 = vpop.f32.mrf.mxu0 }
 0x32f   :  { %v3395_v52 = vadd.f32 %v3391_v50, %v3312_v33 }
 0x330   :  { %v3314_v53 = vpop.f32.mrf.mxu0 }
 0x331   :  { %5348 = vtanh.f32 %v3395_v52  ;;  %v4869_v5 = vmul.f32 -1.442695, %v3395_v52 }
 0x332   :  { %5350 = vpow2.f32 %v4868_v62 }
 0x333   :  { %5352 = vpow2.f32 %v4869_v5 }
 0x334   :  { %v5347_v54 = vpop.eup %5346 }
 0x335   :  { %3414 = vrot.lane.b32.xlu0 %v5347_v54, %s5450_s25 }
 0x33e   :  { %v5349_v60 = vpop.eup %5348 }
 0x33f   :  { %3416 = vrot.lane.b32.xlu0 %v5349_v60, %s5450_s25  ;;  %v5351_v6 = vpop.eup %5350 }
 0x340   :  { %v3402_v8 = vadd.f32 1.0, %v5351_v6  ;;  %v5353_v9 = vpop.eup %5352 }
 0x341   :  { %v3403_v10 = vadd.f32 1.0, %v5353_v9 }
 0x342   :  { %5354 = vrcp.f32 %v3402_v8 }
 0x343   :  { %5356 = vrcp.f32 %v3403_v10 }
 0x34f   :  { %v5355_v11 = vpop.eup %5354 }
 0x350   :  { %v5357_v14 = vpop.eup %5356  ;;  %v3410_v18 = vmul.f32 0.0, %v5355_v11 }
 0x351   :  { %v3411_v20 = vmul.f32 0.0, %v5357_v14 }
 0x3a7   :  { %v3415_v12 = vpop.permute.xlu0 %3414 }
 0x3a8   :  { %v3420_v13 = vmul.f32 %v5355_v11, %v3415_v12 }
 0x3aa   :  { %3424 = vrot.lane.b32.xlu1 %v3420_v13, %s5451_s26 }
 0x3b1   :  { %v3417_v16 = vpop.permute.xlu0 %3416 }
 0x3b2   :  { %v3421_v17 = vmul.f32 %v5357_v14, %v3417_v16 }
 0x3b4   :  { %3426 = vrot.lane.b32.xlu1 %v3421_v17, %s5451_s26 }
 0x41c   :  { %v3425_v19 = vpop.permute.xlu1 %3424 }
 0x41d   :  { %v3430_v15 = vadd.f32 %v3425_v19, %v3410_v18 }
 0x41f   :  { %5358 = vtanh.f32 %v3430_v15 }
 0x426   :  { %v3427_v21 = vpop.permute.xlu1 %3426 }
 0x427   :  { %v3431_v0 = vadd.f32 %v3427_v21, %v3411_v20 }
 0x429   :  { %5360 = vtanh.f32 %v3431_v0 }
 0x42c   :  { %v5359_v22 = vpop.eup %5358 }
 0x42d   :  { %3436 = vrot.lane.b32.xlu0 %v5359_v22, %s5450_s25 }
 0x436   :  { %v5361_v23 = vpop.eup %5360 }
 0x437   :  { %3438 = vrot.lane.b32.xlu1 %v5361_v23, %s5450_s25 }
 0x49f   :  { %v3437_v24 = vpop.permute.xlu0 %3436 }
 0x4a0   :  { %v3442_v25 = vmul.f32 %v5355_v11, %v3437_v24 }
 0x4a2   :  { %3446 = vrot.lane.b32.xlu0 %v3442_v25, %s5451_s26 }
 0x4a9   :  { %v3439_v26 = vpop.permute.xlu1 %3438 }
 0x4aa   :  { %v3443_v27 = vmul.f32 %v5357_v14, %v3439_v26 }
 0x4ac   :  { %3448 = vrot.lane.b32.xlu1 %v3443_v27, %s5451_s26 }
 0x514   :  { %v3447_v28 = vpop.permute.xlu0 %3446 }
 0x515   :  { %4870 = vmatmul.mubr.msk.f32.vlgmr.msra.gmra.mxu1 %vm3258_vm1, %v3447_v28 }
 0x516   :  { %3523 = vmatprep.mubr.f32.mxu1 %v5449_v61 }
 0x51e   :  { %v3449_v29 = vpop.permute.xlu1 %3448 }
 0x51f   :  { %4871 = vmatmul.mubr.msk.f32.gmra.mxu1 %vm3258_vm1, %v3449_v29 }
 0x520   :  { %5161 = vmatprep.mubr.msk.f32.mxu1 %vm5452_vm2, %v5449_v61 }
 0x5d5   :  { %v3520_v56 = vpop.f32.mrf.mxu1 }
 0x5d6   :  { %v3529_v30 = vadd.f32 %v3520_v56, %v3304_v43 }
 0x5d7   :  { %v3522_v34 = vpop.f32.mrf.mxu1 }
 0x5d8   :  { %5362 = vtanh.f32 %v3529_v30  ;;  %v4872_v45 = vmul.f32 -1.442695, %v3529_v30  ;;  %v3203_v34 = vld [vmem:[%s6984_s4 + $0xf0] sm:$0xff] }
 0x5d9   :  { %5146 = vmatpush3.msra.mxu1 %v3203_v34 }
 0x5da   :  { %5147 = vmatprep.subr.mxu1 %v5449_v61 }
 0x5df   :  { %v3525_v3 = vpop.f32.mrf.mxu1 }
 0x5e0   :  { %v3202_v3 = vld [vmem:[%s6984_s4 + $0xe0] sm:$0xff] }
 0x5e1   :  { %v3526_v35 = vpop.f32.mrf.mxu1  ;;  %5148 = vmatpush3.msra.mxu1 %v3202_v3 }
 0x5e2   :  { %v3530_v36 = vadd.f32 %v3526_v35, %v6700_v32  ;;  %v3201_v35 = vld [vmem:[%s6984_s4 + $0xd0] sm:$0xff]  ;;  %5149 = vmatprep.subr.mxu1 %v5449_v61 }
 0x5e3   :  { %5150 = vmatpush3.msra.mxu1 %v3201_v35 }
 0x5e4   :  { %5364 = vtanh.f32 %v3530_v36  ;;  %v4873_v39 = vmul.f32 -1.442695, %v3530_v36  ;;  %v3200_v36 = vld [vmem:[%s6984_s4 + $0xc0] sm:$0xff]  ;;  %5151 = vmatprep.subr.mxu1 %v5449_v61 }
 0x5e5   :  { %v5363_v37 = vpop.eup %5362  ;;  %5366 = vpow2.f32 %v4872_v45  ;;  %5152 = vmatpush3.msra.mxu1 %v3200_v36  ;;  %v3197_v45 = vld [vmem:[%s6984_s4 + $0x90] sm:$0xff] }
 0x5e6   :  { %3549 = vrot.lane.b32.xlu0 %v5363_v37, %s5450_s25  ;;  %5368 = vpow2.f32 %v4873_v39  ;;  %v3199_v37 = vld [vmem:[%s6984_s4 + $0xb0] sm:$0xff]  ;;  %5153 = vmatprep.subr.mxu1 %v5449_v61 }
 0x5e7   :  { %5154 = vmatpush3.msra.mxu1 %v3199_v37 }
 0x5e8   :  { %5155 = vmatprep.subr.mxu1 %v5449_v61 }
 0x5f1   :  { %v5365_v47 = vpop.eup %5364 }
 0x5f2   :  { %3551 = vrot.lane.b32.xlu1 %v5365_v47, %s5450_s25  ;;  %v5367_v4 = vpop.eup %5366  ;;  %v3198_v47 = vld [vmem:[%s6984_s4 + $0xa0] sm:$0xff] }
 0x5f3   :  { %v3537_v55 = vadd.f32 1.0, %v5367_v4  ;;  %v5369_v31 = vpop.eup %5368  ;;  %5156 = vmatpush3.msra.mxu1 %v3198_v47 }
 0x5f4   :  { %v3538_v7 = vadd.f32 1.0, %v5369_v31  ;;  %5157 = vmatprep.subr.mxu1 %v5449_v61 }
 0x5f5   :  { %5370 = vrcp.f32 %v3537_v55  ;;  %5158 = vmatpush3.msra.mxu1 %v3197_v45  ;;  %v3196_v55 = vld [vmem:[%s6984_s4 + $0x80] sm:$0xff] }
 0x5f6   :  { %5372 = vrcp.f32 %v3538_v7  ;;  %5159 = vmatprep.subr.mxu1 %v5449_v61 }
 0x5f7   :  { %5160 = vmatpush3.msra.mxu1 %v3196_v55 }
 0x602   :  { %v5371_v57 = vpop.eup %5370 }
 0x603   :  { %v5373_v63 = vpop.eup %5372  ;;  %v3545_v44 = vmul.f32 %v5371_v57, %v3430_v15 }
 0x604   :  { %v3546_v49 = vmul.f32 %v5373_v63, %v3431_v0 }
 0x658   :  { %v3550_v40 = vpop.permute.xlu0 %3549 }
 0x659   :  { %v3555_v59 = vmul.f32 %v5371_v57, %v3550_v40 }
 0x65b   :  { %3559 = vrot.lane.b32.xlu0 %v3555_v59, %s5451_s26 }
 0x664   :  { %v3552_v42 = vpop.permute.xlu1 %3551 }
 0x665   :  { %v3556_v43 = vmul.f32 %v5373_v63, %v3552_v42  ;;  %v5336_v42 = vld [vmem:[%s6983_s3 + $0x54] ss:$8 sps:$4 sm:$0xff]  }
 0x666   :  { %3875 = vmatprep.subr.bf16.mxu0 %v5336_v42 }
 0x667   :  { %3561 = vrot.lane.b32.xlu1 %v3556_v43, %s5451_s26  ;;  %v5339_v43 = vld [vmem:[%s6983_s3 + $0x44] ss:$8 sps:$4 sm:$0xff]  }
 0x6cd   :  { %v3560_v32 = vpop.permute.xlu0 %3559 }
 0x6ce   :  { %v3565_v46 = vadd.f32 %v3560_v32, %v3545_v44  ;;  %v3195_v44 = vld [vmem:[%s6984_s4 + $0x78] sm:$0xff]  ;;  %v6789_v32 = vld [vmem:[%s6984_s4 + $0x70] sm:$0xff] }
 0x6cf   :  { %3932 = vmatprep.subr.mxu1 %v3195_v44 }
 0x6d0   :  { %5374 = vtanh.f32 %v3565_v46 }
 0x6d9   :  { %v3562_v33 = vpop.permute.xlu1 %3561 }
 0x6da   :  { %v3566_v50 = vadd.f32 %v3562_v33, %v3546_v49  ;;  %v5337_v49 = vld [vmem:[%s6983_s3 + $0x40] ss:$8 sps:$4 sm:$0xff]  }
 0x6db   :  { %v6803_v33 = vld [vmem:[%s6984_s4 + $0x60] sm:$0xff] }
 0x6dc   :  { %5376 = vtanh.f32 %v3566_v50 }
 0x6dd   :  { %v5375_v51 = vpop.eup %5374 }
 0x6de   :  { %3571 = vrot.lane.b32.xlu0 %v5375_v51, %s5450_s25  ;;  %v5342_v51 = vld [vmem:[%s6983_s3 + $0x34] ss:$8 sps:$4 sm:$0xff]  }
 0x6e9   :  { %v5377_v52 = vpop.eup %5376 }
 0x6ea   :  { %3573 = vrot.lane.b32.xlu1 %v5377_v52, %s5450_s25  ;;  %v6817_v52 = vld [vmem:[%s6984_s4 + $0x50] sm:$0xff] }
 0x750   :  { %v3572_v53 = vpop.permute.xlu0 %3571 }
 0x751   :  { %v3577_v54 = vmul.f32 %v5371_v57, %v3572_v53  ;;  %v6823_v53 = vld [vmem:[%s6984_s4 + $0x48] sm:$0xff] }
 0x753   :  { %3581 = vrot.lane.b32.xlu0 %v3577_v54, %s5451_s26  ;;  %v5340_v54 = vld [vmem:[%s6983_s3 + $0x30] ss:$8 sps:$4 sm:$0xff]  }
 0x75c   :  { %v3574_v60 = vpop.permute.xlu1 %3573 }
 0x75d   :  { %v3578_v62 = vmul.f32 %v5373_v63, %v3574_v60  ;;  %v5334_v63 = vld [vmem:[%s6983_s3 + $0x50] ss:$8 sps:$4 sm:$0xff]   ;;  %v5345_v60 = vld [vmem:[%s6983_s3 + $0x24] ss:$8 sps:$4 sm:$0xff]  }
 0x75f   :  { %3583 = vrot.lane.b32.xlu1 %v3578_v62, %s5451_s26  ;;  %v5343_v62 = vld [vmem:[%s6983_s3 + $0x20] ss:$8 sps:$4 sm:$0xff]  }
 0x7c5   :  { %v3582_v5 = vpop.permute.xlu0 %3581 }
 0x7c6   :  { %4874 = vmatmul.mubr.msk.f32.vlgmr.msra.gmra.mxu0 %vm3258_vm1, %v3582_v5  ;;  %v6840_v5 = vld [vmem:[%s6984_s4 + $0x40] sm:$0xff] }
 0x7c7   :  { %3658 = vmatprep.mubr.f32.mxu0 %v5449_v61  ;;  %3876 = vmatpush1.bf16.msra.mxu0 %v5334_v63 }
 0x7c8   :  { %3877 = vmatprep.subr.bf16.mxu0 %v5339_v43 }
 0x7cb   :  { %3878 = vmatpush1.bf16.msra.mxu0 %v5337_v49 }
 0x7cc   :  { %3879 = vmatprep.subr.bf16.mxu0 %v5342_v51 }
 0x7cf   :  { %3880 = vmatpush1.bf16.msra.mxu0 %v5340_v54 }
 0x7d0   :  { %3881 = vmatprep.subr.bf16.mxu0 %v5345_v60 }
 0x7d1   :  { %v3584_v6 = vpop.permute.xlu1 %3583 }
 0x7d2   :  { %4875 = vmatmul.mubr.msk.f32.gmra.mxu0 %vm3258_vm1, %v3584_v6  ;;  %v3224_v6 = vld [vmem:[%s6985_s5 + $0x4] ss:$0 sm:$0xff] }
 0x7d3   :  { %3899 = vmatprep.mubr.bf16.mxu0 %v5448_v58  ;;  %3882 = vmatpush1.bf16.msra.mxu0 %v5343_v62 }
 0x7d4   :  { %4042 = vmatprep.subr.mxu0 %v3195_v44 }
 0x886   :  { %v3655_v8 = vpop.f32.mrf.mxu0 }
 0x887   :  { %v3664_v9 = vadd.f32 %v3655_v8, %v6702_v48 }
 0x888   :  { %v3657_v10 = vpop.f32.mrf.mxu0 }
 0x889   :  { %5378 = vtanh.f32 %v3664_v9  ;;  %v4876_v17 = vmul.f32 -1.442695, %v3664_v9 }
 0x892   :  { %v3660_v11 = vpop.f32.mrf.mxu0 }
 0x894   :  { %v3661_v12 = vpop.f32.mrf.mxu0 }
 0x895   :  { %v3665_v13 = vadd.f32 %v3661_v12, %v6698_v41 }
 0x896   :  { %v5379_v14 = vpop.eup %5378 }
 0x897   :  { %5380 = vtanh.f32 %v3665_v13  ;;  %3684 = vrot.lane.b32.xlu0 %v5379_v14, %s5450_s25  ;;  %v4877_v18 = vmul.f32 -1.442695, %v3665_v13  ;;  %v4879_v14 = vld [vmem:[%s6985_s5 + $0x3] ss:$8 sm:$0x3] }
 0x898   :  { %5382 = vpow2.f32 %v4876_v17  ;;  %v3821_v17 = vrot.slane %v4879_v14, %v6253_v1 }
 0x899   :  { %5384 = vpow2.f32 %v4877_v18 }
 0x8a4   :  { %v5381_v16 = vpop.eup %5380 }
 0x8a5   :  { %3686 = vrot.lane.b32.xlu1 %v5381_v16, %s5450_s25  ;;  %v5383_v58 = vpop.eup %5382  ;;  %v3817_v16 = vrot.slane %v4879_v14, %v6256_v2 }
 0x8a6   :  { %v3672_v19 = vadd.f32 1.0, %v5383_v58  ;;  %v5385_v48 = vpop.eup %5384 }
 0x8a7   :  { %v3673_v15 = vadd.f32 1.0, %v5385_v48 }
 0x8a8   :  { %5386 = vrcp.f32 %v3672_v19 }
 0x8a9   :  { %5388 = vrcp.f32 %v3673_v15 }
 0x8b5   :  { %v5387_v20 = vpop.eup %5386 }
 0x8b6   :  { %v5389_v0 = vpop.eup %5388  ;;  %v3680_v24 = vmul.f32 %v5387_v20, %v3565_v46  ;;  %v6794_v46 = vld [vmem:[%s6984_s4 + $0x68] sm:$0xff] }
 0x8b7   :  { %v3681_v27 = vmul.f32 %v5389_v0, %v3566_v50  ;;  %v6808_v50 = vld [vmem:[%s6984_s4 + $0x58] sm:$0xff] }
 0x909   :  { %v3685_v21 = vpop.permute.xlu0 %3684 }
 0x90a   :  { %v3690_v41 = vmul.f32 %v5387_v20, %v3685_v21 }
 0x90c   :  { %3694 = vrot.lane.b32.xlu0 %v3690_v41, %s5451_s26 }
 0x917   :  { %v3687_v22 = vpop.permute.xlu1 %3686 }
 0x918   :  { %v3691_v23 = vmul.f32 %v5389_v0, %v3687_v22 }
 0x91a   :  { %3696 = vrot.lane.b32.xlu1 %v3691_v23, %s5451_s26 }
 0x97e   :  { %v3695_v25 = vpop.permute.xlu0 %3694 }
 0x97f   :  { %v3700_v26 = vadd.f32 %v3695_v25, %v3680_v24 }
 0x981   :  { %5390 = vtanh.f32 %v3700_v26 }
 0x98c   :  { %v3697_v28 = vpop.permute.xlu1 %3696 }
 0x98d   :  { %v3701_v29 = vadd.f32 %v3697_v28, %v3681_v27 }
 0x98e   :  { %v5391_v56 = vpop.eup %5390 }
 0x98f   :  { %5392 = vtanh.f32 %v3701_v29  ;;  %3706 = vrot.lane.b32.xlu0 %v5391_v56, %s5450_s25 }
 0x99c   :  { %v5393_v30 = vpop.eup %5392 }
 0x99d   :  { %3708 = vrot.lane.b32.xlu1 %v5393_v30, %s5450_s25 }
 0xa01   :  { %v3707_v39 = vpop.permute.xlu0 %3706 }
 0xa02   :  { %v3712_v4 = vmul.f32 %v5387_v20, %v3707_v39 }
 0xa04   :  { %3715 = vrot.lane.b32.xlu0 %v3712_v4, %s5451_s26 }
 0xa0f   :  { %v3709_v31 = vpop.permute.xlu1 %3708 }
 0xa10   :  { %v3713_v7 = vmul.f32 %v5389_v0, %v3709_v31 }
 0xa12   :  { %3719 = vrot.lane.b32.xlu1 %v3713_v7, %s5450_s25 }
 0xa76   :  { %v3716_v57 = vpop.permute.xlu0 %3715 }
 0xa84   :  { %v3720_v40 = vpop.permute.xlu1 %3719 }
 0xa85   :  { %v3722_v59 = vsel %vm3258_vm1, %v3716_v57, %v3720_v40 }
 0xa86   :  { %5162 = vmatmul.mubr.msk.f32.vlgmr.msra.gmra.mxu1 %vm1276_vm0, %v3722_v59 }
 0xa87   :  { %3972 = vmatprep.mubr.f32.mxu1 %v5449_v61  ;;  %3933 = vmatpush1.msra.mxu1 %v6789_v32 }
 0xa88   :  { %3934 = vmatprep.subr.mxu1 %v6794_v46 }
 0xa89   :  { %3935 = vmatpush1.msra.mxu1 %v6803_v33 }
 0xa8a   :  { %3936 = vmatprep.subr.mxu1 %v6808_v50 }
 0xa8b   :  { %3937 = vmatpush1.msra.mxu1 %v6817_v52 }
 0xa8c   :  { %3938 = vmatprep.subr.mxu1 %v6823_v53 }
 0xa8d   :  { %3939 = vmatpush1.msra.mxu1 %v6840_v5 }
 0xa8e   :  { %3973 = vmatmul.mubr.f32.vlgmr.msra.gmra.mxu1 %v5449_v61  ;;  %4157 = vmatprep.subr.mxu1 %v3195_v44 }
 0xa8f   :  { %4158 = vmatpush1.msra.mxu1 %v6789_v32  ;;  %4197 = vmatprep.mubr.f32.mxu1 %v5449_v61 }
 0xa90   :  { %4159 = vmatprep.subr.mxu1 %v6794_v46 }
 0xa91   :  { %4160 = vmatpush1.msra.mxu1 %v6803_v33 }
 0xa92   :  { %4161 = vmatprep.subr.mxu1 %v6808_v50 }
 0xa93   :  { %4162 = vmatpush1.msra.mxu1 %v6817_v52 }
 0xa94   :  { %4163 = vmatprep.subr.mxu1 %v6823_v53 }
 0xa95   :  { %4164 = vmatpush1.msra.mxu1 %v6840_v5 }
 0xa96   :  { %5164 = vmatprep.subr.mxu1 %v5449_v61 }
 0xb46   :  { %v3792_v8 = vpop.f32.mrf.mxu1 }
 0xb47   :  { %v3793_v9 = vadd.f32 %v3792_v8, %v3224_v6 }
 0xb48   :  { %v5163_v10 = vpop.f32.mrf.mxu1 }
 0xb49   :  { %3797 = vrot.lane.b32.xlu0 %v3793_v9, %s5451_s26 }
 0xbbb   :  { %v3798_v11 = vpop.permute.xlu0 %3797 }
 0xbbc   :  { %v3800_v12 = vsel %vm3258_vm1, %v6683_v38, %v3798_v11  ;;  %v3974_v38 = vpop.f32.mrf.mxu1 }
 0xbbd   :  { %v3812_v13 = vpack.c.bf16 %v3800_v12, %v3800_v12 }
 0xbbe   :  { %v3976_v58 = vpop.f32.mrf.mxu1 }
 0xbbf   :  { %4888 = vmatmul.mubr.msk.bf16.vlgmr.msra.gmra.mxu0 %vm1276_vm0, %v3812_v13  ;;  %v3981_v15 = vrot.slane %v3976_v58, 4 }
 0xbc0   :  { %4043 = vmatpush1.msra.mxu0 %v6789_v32  ;;  %4082 = vmatprep.mubr.f32.mxu0 %v5449_v61 }
 0xbc1   :  { %4044 = vmatprep.subr.mxu0 %v6794_v46 }
 0xbc2   :  { %4045 = vmatpush1.msra.mxu0 %v6803_v33 }
 0xbc3   :  { %4046 = vmatprep.subr.mxu0 %v6808_v50 }
 0xbc4   :  { %4047 = vmatpush1.msra.mxu0 %v6817_v52 }
 0xbc5   :  { %4048 = vmatprep.subr.mxu0 %v6823_v53 }
 0xbc6   :  { %4049 = vmatpush1.msra.mxu0 %v6840_v5 }
 0xbc7   :  { %4266 = vmatprep.subr.mxu0 %v3195_v44 }
 0xc7f   :  { %v3901_v18 = vpop.f32.mrf.mxu0 }
 0xc80   :  { %v6873_v48 = vadd.f32 %v3901_v18, %v3817_v16 }
 0xc81   :  { %v3903_v19 = vpop.f32.mrf.mxu0 }
 0xc82   :  { %v6875_v20 = vadd.f32 %v3903_v19, %v3821_v17  ;;  %v3979_v22 = vadd.f32 %v3974_v38, %v6873_v48 }
 0xc83   :  { %v3905_v21 = vpop.f32.mrf.mxu0 }
 0xc84   :  { %v3983_v41 = vadd.f32 %v3981_v15, %v6875_v20 }
 0xc85   :  { %v3906_v0 = vpop.f32.mrf.mxu0 }
 0xc86   :  { %v3985_v23 = vrot.slane %v3983_v41, 4 }
 0xc88   :  { %v3988_v2 = vsel %vm3987_vm3, %v3979_v22, %v3985_v23 }
 0xc89   :  { %5394 = vtanh.f32 %v3988_v2  ;;  %v4889_v24 = vmul.f32 -1.442695, %v3988_v2 }
 0xc8b   :  { %5396 = vpow2.f32 %v4889_v24 }
 0xc96   :  { %v5395_v1 = vpop.eup %5394 }
 0xc97   :  { %3998 = vrot.lane.b32.xlu1 %v5395_v1, %s5450_s25 }
 0xc98   :  { %v5397_v25 = vpop.eup %5396 }
 0xc99   :  { %v3992_v26 = vadd.f32 1.0, %v5397_v25 }
 0xc9b   :  { %5398 = vrcp.f32 %v3992_v26 }
 0xca8   :  { %v5399_v27 = vpop.eup %5398 }
 0xca9   :  { %v3996_v56 = vmul.f32 0.0, %v5399_v27 }
 0xd09   :  { %v3999_v28 = vpop.permute.xlu1 %3998 }
 0xd0a   :  { %v4001_v29 = vmul.f32 %v5399_v27, %v3999_v28 }
 0xd0c   :  { %4003 = vrot.lane.b32.xlu0 %v4001_v29, %s5451_s26 }
 0xd7e   :  { %v4004_v30 = vpop.permute.xlu0 %4003 }
 0xd7f   :  { %v4006_v34 = vadd.f32 %v4004_v30, %v3996_v56 }
 0xd81   :  { %5400 = vtanh.f32 %v4006_v34 }
 0xd8e   :  { %v5401_v3 = vpop.eup %5400 }
 0xd8f   :  { %4009 = vrot.lane.b32.xlu1 %v5401_v3, %s5450_s25 }
 0xe01   :  { %v4010_v35 = vpop.permute.xlu1 %4009 }
 0xe02   :  { %v4012_v36 = vmul.f32 %v5399_v27, %v4010_v35 }
 0xe04   :  { %4014 = vrot.lane.b32.xlu0 %v4012_v36, %s5451_s26 }
 0xe76   :  { %v4015_v37 = vpop.permute.xlu0 %4014 }
 0xe77   :  { %4890 = vmatmul.mubr.msk.f32.vlgmr.msra.gmra.mxu0 %vm3258_vm1, %v4015_v37 }
 0xe78   :  { %4267 = vmatpush1.msra.mxu0 %v6789_v32  ;;  %4306 = vmatprep.mubr.f32.mxu0 %v5449_v61 }
 0xe79   :  { %4268 = vmatprep.subr.mxu0 %v6794_v46 }
 0xe7a   :  { %4269 = vmatpush1.msra.mxu0 %v6803_v33 }
 0xe7b   :  { %4270 = vmatprep.subr.mxu0 %v6808_v50 }
 0xe7c   :  { %4271 = vmatpush1.msra.mxu0 %v6817_v52 }
 0xe7d   :  { %4272 = vmatprep.subr.mxu0 %v6823_v53 }
 0xe7e   :  { %4273 = vmatpush1.msra.mxu0 %v6840_v5 }
 0xe7f   :  { %5183 = vmatprep.subr.mxu0 %v5449_v61 }
 0xf37   :  { %v4084_v47 = vpop.f32.mrf.mxu0 }
 0xf38   :  { %v4090_v45 = vrot.slane %v4084_v47, 6  ;;  %v3211_v47 = vld [vmem:[%s6984_s4 + $0x170] sm:$0xff] }
 0xf39   :  { %v4086_v39 = vpop.f32.mrf.mxu0 }
 0xf3a   :  { %v4092_v4 = vadd.f32 %v4090_v45, %v6873_v48  ;;  %v4094_v55 = vrot.slane %v4086_v39, 6  ;;  %v3210_v45 = vld [vmem:[%s6984_s4 + $0x160] sm:$0xff]  ;;  %v3209_v39 = vld [vmem:[%s6984_s4 + $0x150] sm:$0xff] }
 0xf3c   :  { %v4096_v31 = vadd.f32 %v4094_v55, %v6875_v20  ;;  %v4098_v7 = vrot.slane %v4092_v4, 2  ;;  %v3208_v4 = vld [vmem:[%s6984_s4 + $0x140] sm:$0xff]  ;;  %v3207_v55 = vld [vmem:[%s6984_s4 + $0x130] sm:$0xff] }
 0xf3e   :  { %v4101_v57 = vrot.slane %v4096_v31, 2 }
 0xf40   :  { %v4103_v40 = vsel %vm3987_vm3, %v4098_v7, %v4101_v57  ;;  %v3206_v7 = vld [vmem:[%s6984_s4 + $0x120] sm:$0xff]  ;;  %v3205_v57 = vld [vmem:[%s6984_s4 + $0x110] sm:$0xff] }
 0xf41   :  { %5402 = vtanh.f32 %v4103_v40  ;;  %v4891_v63 = vmul.f32 -1.442695, %v4103_v40  ;;  %v3204_v40 = vld [vmem:[%s6984_s4 + $0x100] sm:$0xff] }
 0xf43   :  { %5404 = vpow2.f32 %v4891_v63  ;;  %v3214_v63 = vld [vmem:[%s6984_s4 + $0x1a0] sm:$0xff] }
 0xf4e   :  { %v5403_v59 = vpop.eup %5402 }
 0xf4f   :  { %4113 = vrot.lane.b32.xlu1 %v5403_v59, %s5450_s25  ;;  %v3215_v59 = vld [vmem:[%s6984_s4 + $0x1b0] sm:$0xff] }
 0xf50   :  { %v5405_v42 = vpop.eup %5404 }
 0xf51   :  { %v4107_v43 = vadd.f32 1.0, %v5405_v42 }
 0xf53   :  { %5406 = vrcp.f32 %v4107_v43 }
 0xf60   :  { %v5407_v44 = vpop.eup %5406 }
 0xf61   :  { %v4111_v49 = vmul.f32 %v5407_v44, %v4006_v34 }
 0xfc1   :  { %v4114_v32 = vpop.permute.xlu1 %4113 }
 0xfc2   :  { %v4116_v46 = vmul.f32 %v5407_v44, %v4114_v32 }
 0xfc4   :  { %4118 = vrot.lane.b32.xlu0 %v4116_v46, %s5451_s26 }
0x1036   :  { %v4119_v33 = vpop.permute.xlu0 %4118 }
0x1037   :  { %v4121_v50 = vadd.f32 %v4119_v33, %v4111_v49  ;;  %v3213_v33 = vld [vmem:[%s6984_s4 + $0x190] sm:$0xff] }
0x1039   :  { %5408 = vtanh.f32 %v4121_v50 }
0x1046   :  { %v5409_v51 = vpop.eup %5408 }
0x1047   :  { %4124 = vrot.lane.b32.xlu1 %v5409_v51, %s5450_s25  ;;  %v3811_v51 = vld [vmem:[%s6985_s5 + $0x5] ss:$0 sm:$0xff] }
0x10b9   :  { %v4125_v52 = vpop.permute.xlu1 %4124 }
0x10ba   :  { %v4127_v53 = vmul.f32 %v5407_v44, %v4125_v52 }
0x10bc   :  { %4129 = vrot.lane.b32.xlu0 %v4127_v53, %s5451_s26 }
0x112e   :  { %v4130_v54 = vpop.permute.xlu0 %4129 }
0x112f   :  { %4892 = vmatmul.mubr.msk.f32.vlgmr.msra.gmra.mxu1 %vm3258_vm1, %v4130_v54 }
0x1130   :  { %5180 = vmatprep.mubr.msk.f32.mxu1 %vm5452_vm2, %v5449_v61  ;;  %5165 = vmatpush3.msra.mxu1 %v3211_v47 }
0x1131   :  { %5166 = vmatprep.subr.mxu1 %v5449_v61 }
0x1132   :  { %5167 = vmatpush3.msra.mxu1 %v3210_v45 }
0x1133   :  { %5168 = vmatprep.subr.mxu1 %v5449_v61 }
0x1134   :  { %5169 = vmatpush3.msra.mxu1 %v3209_v39 }
0x1135   :  { %5170 = vmatprep.subr.mxu1 %v5449_v61 }
0x1136   :  { %5171 = vmatpush3.msra.mxu1 %v3208_v4 }
0x1137   :  { %5172 = vmatprep.subr.mxu1 %v5449_v61 }
0x1138   :  { %5173 = vmatpush3.msra.mxu1 %v3207_v55 }
0x1139   :  { %5174 = vmatprep.subr.mxu1 %v5449_v61 }
0x113a   :  { %5175 = vmatpush3.msra.mxu1 %v3206_v7 }
0x113b   :  { %5176 = vmatprep.subr.mxu1 %v5449_v61 }
0x113c   :  { %5177 = vmatpush3.msra.mxu1 %v3205_v57 }
0x113d   :  { %5178 = vmatprep.subr.mxu1 %v5449_v61 }
0x113e   :  { %5179 = vmatpush3.msra.mxu1 %v3204_v40 }
0x11ef   :  { %v4199_v60 = vpop.f32.mrf.mxu1 }
0x11f0   :  { %v4205_v62 = vrot.slane %v4199_v60, 4  ;;  %v4434_v60 = vld [vmem:[%s6985_s5 + $0x6] ss:$0 sm:$0xff] }
0x11f1   :  { %v4201_v5 = vpop.f32.mrf.mxu1 }
0x11f2   :  { %v4207_v6 = vadd.f32 %v4205_v62, %v6873_v48  ;;  %v4208_v9 = vadd.f32 %v4201_v5, %v6875_v20 }
0x11f4   :  { %v4210_v8 = vrot.slane %v4207_v6, 4 }
0x11f6   :  { %v4212_v10 = vsel %vm3987_vm3, %v4210_v8, %v4208_v9 }
0x11f7   :  { %5410 = vtanh.f32 %v4212_v10  ;;  %v4893_v12 = vmul.f32 -1.442695, %v4212_v10 }
0x11f9   :  { %5412 = vpow2.f32 %v4893_v12 }
0x1204   :  { %v5411_v11 = vpop.eup %5410 }
0x1205   :  { %4222 = vrot.lane.b32.xlu1 %v5411_v11, %s5450_s25 }
0x1206   :  { %v5413_v13 = vpop.eup %5412 }
0x1207   :  { %v4216_v38 = vadd.f32 1.0, %v5413_v13 }
0x1209   :  { %5414 = vrcp.f32 %v4216_v38 }
0x1216   :  { %v5415_v14 = vpop.eup %5414 }
0x1217   :  { %v4220_v18 = vmul.f32 %v5415_v14, %v4121_v50  ;;  %v3212_v50 = vld [vmem:[%s6984_s4 + $0x180] sm:$0xff]  ;;  %s5426_s4 = scalar_lea.vmem %s4516_s29, 32 }
0x1218   :  { %p5427_p0 = scmp.ne.s32.totalorder %s4516_s29, %s5426_s4  ;;  %p5432_p2 = scmp.lt.s32.totalorder %s5426_s4, %s5426_s4 }
0x121a   :  { %p5433_p3 = por %p5432_p2, %p5431_p1 }
0x121c   :  { %p5434_p4 = pnand %p5433_p3, %p5427_p0 }
0x1277   :  { %v4223_v16 = vpop.permute.xlu1 %4222 }
0x1278   :  { %v4225_v17 = vmul.f32 %v5415_v14, %v4223_v16 }
0x127a   :  { %4227 = vrot.lane.b32.xlu0 %v4225_v17, %s5451_s26 }
0x12ec   :  { %v4228_v58 = vpop.permute.xlu0 %4227 }
0x12ed   :  { %v4230_v19 = vadd.f32 %v4228_v58, %v4220_v18 }
0x12ef   :  { %5416 = vtanh.f32 %v4230_v19 }
0x12fc   :  { %v5417_v15 = vpop.eup %5416 }
0x12fd   :  { %4233 = vrot.lane.b32.xlu1 %v5417_v15, %s5450_s25 }
0x136f   :  { %v4234_v21 = vpop.permute.xlu1 %4233 }
0x1370   :  { %v4236_v41 = vmul.f32 %v5415_v14, %v4234_v21 }
0x1372   :  { %4238 = vrot.lane.b32.xlu0 %v4236_v41, %s5451_s26 }
0x13e4   :  { %v4239_v0 = vpop.permute.xlu0 %4238 }
0x13e5   :  { %4894 = vmatmul.mubr.msk.f32.vlgmr.msra.gmra.mxu0 %vm3258_vm1, %v4239_v0 }
0x13e6   :  { %5191 = vmatprep.mubr.msk.f32.mxu0 %vm5452_vm2, %v5449_v61  ;;  %5184 = vmatpush3.msra.mxu0 %v3215_v59 }
0x13e7   :  { %5185 = vmatprep.subr.mxu0 %v5449_v61 }
0x13e8   :  { %5186 = vmatpush3.msra.mxu0 %v3214_v63 }
0x13e9   :  { %5187 = vmatprep.subr.mxu0 %v5449_v61 }
0x13ea   :  { %5188 = vmatpush3.msra.mxu0 %v3213_v33 }
0x13eb   :  { %5189 = vmatprep.subr.mxu0 %v5449_v61 }
0x13ec   :  { %5190 = vmatpush3.msra.mxu0 %v3212_v50 }
0x14a5   :  { %v4308_v22 = vpop.f32.mrf.mxu0 }
0x14a6   :  { %v4314_v23 = vrot.slane %v4308_v22, 2 }
0x14a7   :  { %v4310_v2 = vpop.f32.mrf.mxu0 }
0x14a8   :  { %v4316_v1 = vadd.f32 %v4314_v23, %v6873_v48  ;;  %v4318_v24 = vrot.slane %v4310_v2, 2 }
0x14aa   :  { %v4320_v25 = vadd.f32 %v4318_v24, %v6875_v20  ;;  %v4322_v26 = vrot.slane %v4316_v1, 6 }
0x14ac   :  { %v4325_v27 = vrot.slane %v4320_v25, 6 }
0x14ae   :  { %v4327_v28 = vsel %vm3987_vm3, %v4322_v26, %v4325_v27 }
0x14af   :  { %5418 = vtanh.f32 %v4327_v28  ;;  %v4895_v56 = vmul.f32 -1.442695, %v4327_v28 }
0x14b1   :  { %5420 = vpow2.f32 %v4895_v56 }
0x14bc   :  { %v5419_v29 = vpop.eup %5418 }
0x14bd   :  { %4337 = vrot.lane.b32.xlu1 %v5419_v29, %s5450_s25 }
0x14be   :  { %v5421_v30 = vpop.eup %5420 }
0x14bf   :  { %v4331_v34 = vadd.f32 1.0, %v5421_v30 }
0x14c1   :  { %5422 = vrcp.f32 %v4331_v34 }
0x14ce   :  { %v5423_v3 = vpop.eup %5422 }
0x14cf   :  { %v4335_v48 = vmul.f32 %v5423_v3, %v4230_v19 }
0x152f   :  { %v4338_v35 = vpop.permute.xlu1 %4337 }
0x1530   :  { %v4340_v36 = vmul.f32 %v5423_v3, %v4338_v35 }
0x1532   :  { %4342 = vrot.lane.b32.xlu0 %v4340_v36, %s5451_s26 }
0x15a4   :  { %v4343_v20 = vpop.permute.xlu0 %4342 }
0x15a5   :  { %v4345_v37 = vadd.f32 %v4343_v20, %v4335_v48 }
0x15a7   :  { %5424 = vtanh.f32 %v4345_v37 }
0x15b4   :  { %v5425_v31 = vpop.eup %5424 }
0x15b5   :  { %4348 = vrot.lane.b32.xlu1 %v5425_v31, %s5450_s25 }
0x1627   :  { %v4349_v42 = vpop.permute.xlu1 %4348 }
0x1628   :  { %v4351_v43 = vmul.f32 %v5423_v3, %v4349_v42 }
0x162a   :  { %v4356_v44 = vrot.slane %v4351_v43, 2  ;;  %4353 = vrot.lane.b32.xlu0 %v4351_v43, %s5451_s26 }
0x162c   :  { %4357 = vrot.lane.b32.xlu1 %v4356_v44, %s5450_s25 }
0x169c   :  { %v4354_v32 = vpop.permute.xlu0 %4353 }
0x169e   :  { %v4358_v46 = vpop.permute.xlu1 %4357 }
0x169f   :  { %v4360_v49 = vsel %vm3258_vm1, %v4354_v32, %v4358_v46 }
0x16a0   :  { %5181 = vmatmul.mubr.msk.f32.vlgmr.msra.gmra.mxu1 %vm1276_vm0, %v4360_v49 }
0x1760   :  { %v4430_v52 = vpop.f32.mrf.mxu1 }
0x1761   :  { %v4431_v53 = vadd.f32 %v4430_v52, %v3811_v51 }
0x1762   :  { %v5182_v54 = vpop.f32.mrf.mxu1 }
0x1763   :  { %5192 = vmatmul.mubr.msk.f32.vlgmr.msra.gmra.mxu0 %vm3258_vm1, %v4431_v53 }
0x1823   :  { %v4504_v61 = vpop.f32.mrf.mxu0 }
0x1824   :  { %v4505_v62 = vadd.f32 %v4504_v61, %v4434_v60 }
0x1825   :  { %v5193_v5 = vpop.f32.mrf.mxu0 }
0x1826   :  { %4508 = vst [vmem:[#allocation2] sm:$0x3] %v4505_v62 }
0x1827   :  { %5437 = shalt.err (!%p5434_p4)
}
0x1828   :  { %4518 = dma.vmem_to_hbm [thread:$0]  %s4516_s29, 32, %s6986_s6, [#allocation3]  }
0x1829   :  { %5446 = dma.done.wait [#allocation3], 32  }
0x182a   :  { %5447 = vsyncadd [#allocation3], 4294967264 }
0x182b   :  { %4522 = vsyncpa [#allocation3], 1 }

</bundles_post_ra>
